<compile_context>
chip_gen: v5e
topology: v5e:2x2
jax: 0.10.0
libtpu: 0.0.40
codegen_flags: <defaults>
</compile_context>

<pallas_src>
import jax
import jax.numpy as jnp
import numpy as np
from jax import lax
from jax.experimental import pallas as pl
from jax.experimental.pallas import tpu as pltpu


# ------------------------------- helpers ----------------------------------- #

def _round_up(n, m):
    return ((n + m - 1) // m) * m


def _sigmoid(x):
    # Exact identity sigmoid(x) = 0.5*tanh(0.5*x) + 0.5 (cheaper EUP path).
    return 0.5 * jnp.tanh(0.5 * x) + 0.5


def _pad_gate_cols(w_t, H, Hp):
    """(in_dim, 4H) -> (in_dim, 4Hp); gate k's H real cols land at k*Hp."""
    blocks = []
    for k in range(4):
        blk = w_t[:, k * H:(k + 1) * H]
        blocks.append(jnp.pad(blk, ((0, 0), (0, Hp - H))))
    return jnp.concatenate(blocks, axis=1)


# ------------------------------ fused kernel -------------------------------- #

def _make_fused_kernel(T, Bp, Hp):
    """Fused per-layer LSTM body + MLP head; grid axis = layer index (3)."""
    G = 4 * Hp

    def kernel(x_ref,                                  # (T*Bp, Hp) f32 (resident)
               wih_ref, whh_ref, b_ref,                # (1,Hp,G) bf16 / (1,1,G) f32
               wd_ref, bd_ref, wf_ref, bf_ref,         # head (resident)
               out_ref,                                # (Bp, Cp) f32 (resident)
               seq_scr,                                # (T*Bp, Hp) f32 scratch
               gx_scr):                                # (T*Bp, G)  f32 scratch
        layer = pl.program_id(0)
        last = pl.num_programs(0) - 1

        # Layer 0 consumes the (feature-zero-padded) input sequence; later
        # layers consume the previous layer's outputs already in seq_scr.
        @pl.when(layer == 0)
        def _():
            seq_scr[...] = x_ref[...]

        # Hoisted input projection: one big MXU matmul for the whole sequence,
        # result kept in VMEM scratch (not vregs) to avoid spills in the loop.
        gx_scr[...] = (jnp.dot(seq_scr[...].astype(jnp.bfloat16), wih_ref[0],
                               preferred_element_type=jnp.float32)
                       + b_ref[0])

        h = jnp.zeros((Bp, Hp), jnp.float32)
        c = jnp.zeros((Bp, Hp), jnp.float32)
        for t in range(T):                             # static -> fully unrolled
            # TODO(synk): weight-stationary MXU (pltpu.matmul_push_rhs once per
            # layer + matmul_acc_lhs per step) if Mosaic re-latches the RHS.
            gates = gx_scr[t * Bp:(t + 1) * Bp, :] + jnp.dot(
                h.astype(jnp.bfloat16), whh_ref[0],
                preferred_element_type=jnp.float32)
            # Each gate occupies a full 128-lane block -> lane-aligned slices.
            i = _sigmoid(gates[:, 0 * Hp:1 * Hp])
            f = _sigmoid(gates[:, 1 * Hp:2 * Hp])
            g = jnp.tanh(gates[:, 2 * Hp:3 * Hp])
            o = _sigmoid(gates[:, 3 * Hp:4 * Hp])
            c = f * c + i * g
            h = o * jnp.tanh(c)
            seq_scr[t * Bp:(t + 1) * Bp, :] = h        # feeds the next layer

        # Head only on the last layer: dens -> ReLU -> fc, lane-dense store.
        @pl.when(layer == last)
        def _():
            z = jnp.maximum(
                jnp.dot(h.astype(jnp.bfloat16), wd_ref[...],
                        preferred_element_type=jnp.float32) + bd_ref[...], 0.0)
            out_ref[...] = (jnp.dot(z.astype(jnp.bfloat16), wf_ref[...],
                                    preferred_element_type=jnp.float32)
                            + bf_ref[...])

    return kernel


# -------------------------------- wrappers ---------------------------------- #

def lstm_classification_forward(packed, x):
    """x: (B, T, D) batch-first, like the PyTorch module. Returns (B, C)."""
    B, T, D = x.shape
    Bp = _round_up(B, 8)
    Hp, Cp, C = packed["Hp"], packed["Cp"], packed["C"]
    G = 4 * Hp

    # time-major, batch padded to 8 sublanes, features zero-padded to Hp so all
    # three layers share the same stacked (Hp, 4Hp) W_ih layout.
    x_tm = jnp.transpose(x, (1, 0, 2))                 # (T, B, D)
    x_tm = jnp.pad(x_tm, ((0, 0), (0, Bp - B), (0, Hp - D)))
    x2d = x_tm.reshape(T * Bp, Hp)

    wih_all, whh_all, b_all = packed["lstm"]           # (3,Hp,G) bf16 x2, (3,1,G) f32
    wd, bd, wf, bf = packed["head"]
    HIDp = wd.shape[1]

    out = pl.pallas_call(
        _make_fused_kernel(T, Bp, Hp),
        out_shape=jax.ShapeDtypeStruct((Bp, Cp), jnp.float32),
        grid=(3,),                                     # layer pipeline axis
        in_specs=[
            pl.BlockSpec((T * Bp, Hp), lambda l: (0, 0)),    # x (VMEM-resident)
            pl.BlockSpec((1, Hp, G), lambda l: (l, 0, 0)),   # W_ih[layer]
            pl.BlockSpec((1, Hp, G), lambda l: (l, 0, 0)),   # W_hh[layer]
            pl.BlockSpec((1, 1, G), lambda l: (l, 0, 0)),    # bias[layer]
            pl.BlockSpec((Hp, HIDp), lambda l: (0, 0)),      # dens W (resident)
            pl.BlockSpec((1, HIDp), lambda l: (0, 0)),       # dens b
            pl.BlockSpec((HIDp, Cp), lambda l: (0, 0)),      # fc W
            pl.BlockSpec((1, Cp), lambda l: (0, 0)),         # fc b
        ],
        out_specs=pl.BlockSpec((Bp, Cp), lambda l: (0, 0)),
        scratch_shapes=[pltpu.VMEM((T * Bp, Hp), jnp.float32),   # seq_scr
                        pltpu.VMEM((T * Bp, G), jnp.float32)],   # gx_scr
        compiler_params=pltpu.CompilerParams(
            dimension_semantics=("arbitrary",)),       # layers are serial
    )(x2d, wih_all, whh_all, b_all, wd, bd, wf, bf)

    return out[:B, :C]


# -------------------------- parameter construction -------------------------- #

def init_params(key, num_input_features, num_classes, LSTM_size=64, hidden_size=20):
    """Raw params mirroring nn.LSTM / nn.Linear (uniform +-1/sqrt(fan))."""
    H = LSTM_size
    k_lstm = 1.0 / np.sqrt(H)
    layers = []
    in_dim = num_input_features
    for _ in range(3):                                 # 3 stacked LSTM layers
        key, k1, k2, k3, k4 = jax.random.split(key, 5)
        layers.append(dict(
            w_ih=jax.random.uniform(k1, (4 * H, in_dim), jnp.float32, -k_lstm, k_lstm),
            w_hh=jax.random.uniform(k2, (4 * H, H), jnp.float32, -k_lstm, k_lstm),
            b_ih=jax.random.uniform(k3, (4 * H,), jnp.float32, -k_lstm, k_lstm),
            b_hh=jax.random.uniform(k4, (4 * H,), jnp.float32, -k_lstm, k_lstm)))
        in_dim = H

    key, k1, k2, k3, k4 = jax.random.split(key, 5)
    kd = 1.0 / np.sqrt(H)
    dens_w = jax.random.uniform(k1, (hidden_size, H), jnp.float32, -kd, kd)
    dens_b = jax.random.uniform(k2, (hidden_size,), jnp.float32, -kd, kd)
    kf = 1.0 / np.sqrt(hidden_size)
    fc_w = jax.random.uniform(k3, (num_classes, hidden_size), jnp.float32, -kf, kf)
    fc_b = jax.random.uniform(k4, (num_classes,), jnp.float32, -kf, kf)

    return dict(lstm=layers, dens_w=dens_w, dens_b=dens_b, fc_w=fc_w, fc_b=fc_b,
                H=H, hidden=hidden_size, C=num_classes)


def pack_params(raw):
    """Transpose + zero-pad + bf16-cast weights; stack the 3 LSTM layers."""
    H, hidden, C = raw["H"], raw["hidden"], raw["C"]
    Hp = _round_up(H, 128)
    HIDp = _round_up(hidden, 128)
    Cp = _round_up(C, 128)

    wihs, whhs, bs = [], [], []
    for layer in raw["lstm"]:
        wih_t = layer["w_ih"].T                        # (in_dim, 4H)
        whh_t = layer["w_hh"].T                        # (H, 4H)
        bias = (layer["b_ih"] + layer["b_hh"])[None]   # (1, 4H)
        wih_p = _pad_gate_cols(wih_t, H, Hp)           # (in_dim, 4Hp)
        wih_p = jnp.pad(wih_p, ((0, Hp - wih_p.shape[0]), (0, 0)))   # rows -> Hp
        whh_p = jnp.pad(_pad_gate_cols(whh_t, H, Hp), ((0, Hp - H), (0, 0)))
        wihs.append(wih_p.astype(jnp.bfloat16))
        whhs.append(whh_p.astype(jnp.bfloat16))
        bs.append(_pad_gate_cols(bias, H, Hp))         # f32, added post-accum

    wih_all = jnp.stack(wihs)                          # (3, Hp, 4Hp) bf16
    whh_all = jnp.stack(whhs)                          # (3, Hp, 4Hp) bf16
    b_all = jnp.stack(bs)                              # (3, 1, 4Hp) f32

    wd = jnp.pad(raw["dens_w"].T, ((0, Hp - H), (0, HIDp - hidden))).astype(jnp.bfloat16)
    bd = jnp.pad(raw["dens_b"][None], ((0, 0), (0, HIDp - hidden)))
    wf = jnp.pad(raw["fc_w"].T, ((0, HIDp - hidden), (0, Cp - C))).astype(jnp.bfloat16)
    bf = jnp.pad(raw["fc_b"][None], ((0, 0), (0, Cp - C)))

    return dict(lstm=(wih_all, whh_all, b_all), head=(wd, bd, wf, bf),
                Hp=Hp, Cp=Cp, C=C)


# ---------------------------- pure-JAX reference ----------------------------- #

def reference_forward(raw, x):
    H = raw["H"]
    out = x
    for layer in raw["lstm"]:
        wih_t, whh_t = layer["w_ih"].T, layer["w_hh"].T
        bias = (layer["b_ih"] + layer["b_hh"])[None]
        B = out.shape[0]

        def step(carry, x_t, wih_t=wih_t, whh_t=whh_t, bias=bias):
            h, c = carry
            gates = x_t @ wih_t + h @ whh_t + bias
            i = jax.nn.sigmoid(gates[:, :H])
            f = jax.nn.sigmoid(gates[:, H:2 * H])
            g = jnp.tanh(gates[:, 2 * H:3 * H])
            o = jax.nn.sigmoid(gates[:, 3 * H:])
            c = f * c + i * g
            h = o * jnp.tanh(c)
            return (h, c), h

        init = (jnp.zeros((B, H), jnp.float32), jnp.zeros((B, H), jnp.float32))
        _, hs = lax.scan(step, init, jnp.transpose(out, (1, 0, 2)))
        out = jnp.transpose(hs, (1, 0, 2))

    z = jnp.maximum(out[:, -1, :] @ raw["dens_w"].T + raw["dens_b"], 0.0)
    return z @ raw["fc_w"].T + raw["fc_b"]


# ------------------------------------ main ----------------------------------- #

if __name__ == "__main__":
    B, T, D, C = 2, 8, 16, 5          # batch, seq, num_input_features, num_classes
    key = jax.random.PRNGKey(0)
    key, kx, kp = jax.random.split(key, 3)

    x = jax.random.normal(kx, (B, T, D), jnp.float32)
    raw = init_params(kp, num_input_features=D, num_classes=C,
                      LSTM_size=64, hidden_size=20)
    packed = pack_params(raw)

    fwd = jax.jit(lambda xx: lstm_classification_forward(packed, xx))
    out = jax.block_until_ready(fwd(x))
    ref = jax.block_until_ready(reference_forward(raw, x))

    assert out.shape == (B, C)
    # Tolerance relaxed vs. the f32 version: matmul operands are bf16
    # (f32 accumulation), per the perf review for v5e/v6e/v7x MXUs.
    np.testing.assert_allclose(np.asarray(out), np.asarray(ref),
                               rtol=2e-2, atol=2e-2)
    print("KERNEL_OK")
</pallas_src>

<mosaic_0001>
module attributes {stable_mosaic.version = 11 : i64} {
  func.func @kernel(%arg0: i32, %arg1: memref<64x128xf32, #tpu.memory_space<vmem>>, %arg2: memref<1x128x512xbf16, #tpu.memory_space<vmem>>, %arg3: memref<1x128x512xbf16, #tpu.memory_space<vmem>>, %arg4: memref<1x1x512xf32, #tpu.memory_space<vmem>>, %arg5: memref<128x128xbf16, #tpu.memory_space<vmem>>, %arg6: memref<1x128xf32, #tpu.memory_space<vmem>>, %arg7: memref<128x128xbf16, #tpu.memory_space<vmem>>, %arg8: memref<1x128xf32, #tpu.memory_space<vmem>>, %arg9: memref<8x128xf32, #tpu.memory_space<vmem>>, %arg10: memref<64x128xf32, #tpu.memory_space<vmem>>, %arg11: memref<64x512xf32, #tpu.memory_space<vmem>>) attributes {dimension_semantics = [#tpu.dimension_semantics<arbitrary>], iteration_bounds = array<i64: 3>, scalar_prefetch = 0 : i64, scratch_operands = 2 : i64, tpu.core_type = #tpu.core_type<tc>, window_params = [{pipeline_mode = #tpu.pipeline_mode<synchronous>, transform_indices = @transform_0, window_bounds = array<i64: 64, 128>}, {transform_indices = @transform_1, window_bounds = array<i64: 1, 128, 512>}, {transform_indices = @transform_2, window_bounds = array<i64: 1, 128, 512>}, {transform_indices = @transform_3, window_bounds = array<i64: 1, 1, 512>}, {pipeline_mode = #tpu.pipeline_mode<synchronous>, transform_indices = @transform_4, window_bounds = array<i64: 128, 128>}, {pipeline_mode = #tpu.pipeline_mode<synchronous>, transform_indices = @transform_5, window_bounds = array<i64: 1, 128>}, {pipeline_mode = #tpu.pipeline_mode<synchronous>, transform_indices = @transform_6, window_bounds = array<i64: 128, 128>}, {pipeline_mode = #tpu.pipeline_mode<synchronous>, transform_indices = @transform_7, window_bounds = array<i64: 1, 128>}, {pipeline_mode = #tpu.pipeline_mode<synchronous>, transform_indices = @transform_8, window_bounds = array<i64: 8, 128>}]} {
    %c0_i32 = arith.constant 0 : i32
    %0 = arith.cmpi eq, %arg0, %c0_i32 : i32
    %1 = arith.extui %0 : i1 to i32
    %c0_i32_0 = arith.constant 0 : i32
    %2 = arith.cmpi ne, %1, %c0_i32_0 : i32
    scf.if %2 {
      %c0_142 = arith.constant 0 : index
      %c0_143 = arith.constant 0 : index
      %322 = vector.load %arg1[%c0_142, %c0_143] : memref<64x128xf32, #tpu.memory_space<vmem>>, vector<64x128xf32>
      %c0_144 = arith.constant 0 : index
      %c0_145 = arith.constant 0 : index
      %323 = vector.load %arg10[%c0_144, %c0_145] : memref<64x128xf32, #tpu.memory_space<vmem>>, vector<64x128xf32>
      tpu.vector_store %arg10[%c0_144, %c0_145], %322 {strides = array<i32>} : memref<64x128xf32, #tpu.memory_space<vmem>>, vector<64x128xf32>,
    } else {
    }
    %c0 = arith.constant 0 : index
    %c0_1 = arith.constant 0 : index
    %3 = vector.load %arg10[%c0, %c0_1] : memref<64x128xf32, #tpu.memory_space<vmem>>, vector<64x128xf32>
    %4 = arith.truncf %3 : vector<64x128xf32> to vector<64x128xbf16>
    %c0_2 = arith.constant 0 : index
    %c0_3 = arith.constant 0 : index
    %c0_4 = arith.constant 0 : index
    %5 = vector.load %arg2[%c0_2, %c0_3, %c0_4] : memref<1x128x512xbf16, #tpu.memory_space<vmem>>, vector<1x128x512xbf16>
    %6 = vector.shape_cast %5 : vector<1x128x512xbf16> to vector<128x512xbf16>
    %cst = arith.constant dense<0.000000e+00> : vector<64x512xf32>
    %7 = tpu.matmul %4, %6, %cst {dimension_numbers = #tpu.dot_dimension_numbers<[1], [0], [0], [1], [0, 0, 1, 1], [], []>} : vector<64x128xbf16>, vector<128x512xbf16>, vector<64x512xf32> -> vector<64x512xf32>
    %c0_5 = arith.constant 0 : index
    %c0_6 = arith.constant 0 : index
    %c0_7 = arith.constant 0 : index
    %8 = vector.load %arg4[%c0_5, %c0_6, %c0_7] : memref<1x1x512xf32, #tpu.memory_space<vmem>>, vector<1x1x512xf32>
    %9 = vector.shape_cast %8 : vector<1x1x512xf32> to vector<1x512xf32>
    %10 = vector.broadcast %9 : vector<1x512xf32> to vector<64x512xf32>
    %11 = arith.addf %7, %10 : vector<64x512xf32>
    %c0_8 = arith.constant 0 : index
    %c0_9 = arith.constant 0 : index
    %12 = vector.load %arg11[%c0_8, %c0_9] : memref<64x512xf32, #tpu.memory_space<vmem>>, vector<64x512xf32>
    tpu.vector_store %arg11[%c0_8, %c0_9], %11 {strides = array<i32>} : memref<64x512xf32, #tpu.memory_space<vmem>>, vector<64x512xf32>,
    %cst_10 = arith.constant 0.000000e+00 : f32
    %13 = vector.broadcast %cst_10 : f32 to vector<8x128xf32>
    %cst_11 = arith.constant 0.000000e+00 : f32
    %14 = vector.broadcast %cst_11 : f32 to vector<8x128xf32>
    %c0_12 = arith.constant 0 : index
    %c0_13 = arith.constant 0 : index
    %15 = vector.load %arg11[%c0_12, %c0_13] : memref<64x512xf32, #tpu.memory_space<vmem>>, vector<8x512xf32>
    %16 = arith.truncf %13 : vector<8x128xf32> to vector<8x128xbf16>
    %c0_14 = arith.constant 0 : index
    %c0_15 = arith.constant 0 : index
    %c0_16 = arith.constant 0 : index
    %17 = vector.load %arg3[%c0_14, %c0_15, %c0_16] : memref<1x128x512xbf16, #tpu.memory_space<vmem>>, vector<1x128x512xbf16>
    %18 = vector.shape_cast %17 : vector<1x128x512xbf16> to vector<128x512xbf16>
    %cst_17 = arith.constant dense<0.000000e+00> : vector<8x512xf32>
    %19 = tpu.matmul %16, %18, %cst_17 {dimension_numbers = #tpu.dot_dimension_numbers<[1], [0], [0], [1], [0, 0, 1, 1], [], []>} : vector<8x128xbf16>, vector<128x512xbf16>, vector<8x512xf32> -> vector<8x512xf32>
    %20 = arith.addf %15, %19 : vector<8x512xf32>
    %21 = vector.extract_strided_slice %20 {offsets = [0, 0], sizes = [8, 128], strides = [1, 1]} : vector<8x512xf32> to vector<8x128xf32>
    %cst_18 = arith.constant 5.000000e-01 : f32
    %22 = vector.broadcast %cst_18 : f32 to vector<8x128xf32>
    %23 = arith.mulf %22, %21 : vector<8x128xf32>
    %24 = math.tanh %23 : vector<8x128xf32>
    %cst_19 = arith.constant 5.000000e-01 : f32
    %25 = vector.broadcast %cst_19 : f32 to vector<8x128xf32>
    %26 = arith.mulf %25, %24 : vector<8x128xf32>
    %cst_20 = arith.constant 5.000000e-01 : f32
    %27 = vector.broadcast %cst_20 : f32 to vector<8x128xf32>
    %28 = arith.addf %26, %27 : vector<8x128xf32>
    %29 = vector.extract_strided_slice %20 {offsets = [0, 128], sizes = [8, 128], strides = [1, 1]} : vector<8x512xf32> to vector<8x128xf32>
    %cst_21 = arith.constant 5.000000e-01 : f32
    %30 = vector.broadcast %cst_21 : f32 to vector<8x128xf32>
    %31 = arith.mulf %30, %29 : vector<8x128xf32>
    %32 = math.tanh %31 : vector<8x128xf32>
    %cst_22 = arith.constant 5.000000e-01 : f32
    %33 = vector.broadcast %cst_22 : f32 to vector<8x128xf32>
    %34 = arith.mulf %33, %32 : vector<8x128xf32>
    %cst_23 = arith.constant 5.000000e-01 : f32
    %35 = vector.broadcast %cst_23 : f32 to vector<8x128xf32>
    %36 = arith.addf %34, %35 : vector<8x128xf32>
    %37 = vector.extract_strided_slice %20 {offsets = [0, 256], sizes = [8, 128], strides = [1, 1]} : vector<8x512xf32> to vector<8x128xf32>
    %38 = math.tanh %37 : vector<8x128xf32>
    %39 = vector.extract_strided_slice %20 {offsets = [0, 384], sizes = [8, 128], strides = [1, 1]} : vector<8x512xf32> to vector<8x128xf32>
    %cst_24 = arith.constant 5.000000e-01 : f32
    %40 = vector.broadcast %cst_24 : f32 to vector<8x128xf32>
    %41 = arith.mulf %40, %39 : vector<8x128xf32>
    %42 = math.tanh %41 : vector<8x128xf32>
    %cst_25 = arith.constant 5.000000e-01 : f32
    %43 = vector.broadcast %cst_25 : f32 to vector<8x128xf32>
    %44 = arith.mulf %43, %42 : vector<8x128xf32>
    %cst_26 = arith.constant 5.000000e-01 : f32
    %45 = vector.broadcast %cst_26 : f32 to vector<8x128xf32>
    %46 = arith.addf %44, %45 : vector<8x128xf32>
    %47 = arith.mulf %36, %14 : vector<8x128xf32>
    %48 = arith.mulf %28, %38 : vector<8x128xf32>
    %49 = arith.addf %47, %48 : vector<8x128xf32>
    %50 = math.tanh %49 : vector<8x128xf32>
    %51 = arith.mulf %46, %50 : vector<8x128xf32>
    %c0_27 = arith.constant 0 : index
    %c0_28 = arith.constant 0 : index
    %52 = vector.load %arg10[%c0_27, %c0_28] : memref<64x128xf32, #tpu.memory_space<vmem>>, vector<8x128xf32>
    tpu.vector_store %arg10[%c0_27, %c0_28], %51 {strides = array<i32>} : memref<64x128xf32, #tpu.memory_space<vmem>>, vector<8x128xf32>,
    %c8 = arith.constant 8 : index
    %c0_29 = arith.constant 0 : index
    %53 = vector.load %arg11[%c8, %c0_29] : memref<64x512xf32, #tpu.memory_space<vmem>>, vector<8x512xf32>
    %54 = arith.truncf %51 : vector<8x128xf32> to vector<8x128xbf16>
    %c0_30 = arith.constant 0 : index
    %c0_31 = arith.constant 0 : index
    %c0_32 = arith.constant 0 : index
    %55 = vector.load %arg3[%c0_30, %c0_31, %c0_32] : memref<1x128x512xbf16, #tpu.memory_space<vmem>>, vector<1x128x512xbf16>
    %56 = vector.shape_cast %55 : vector<1x128x512xbf16> to vector<128x512xbf16>
    %cst_33 = arith.constant dense<0.000000e+00> : vector<8x512xf32>
    %57 = tpu.matmul %54, %56, %cst_33 {dimension_numbers = #tpu.dot_dimension_numbers<[1], [0], [0], [1], [0, 0, 1, 1], [], []>} : vector<8x128xbf16>, vector<128x512xbf16>, vector<8x512xf32> -> vector<8x512xf32>
    %58 = arith.addf %53, %57 : vector<8x512xf32>
    %59 = vector.extract_strided_slice %58 {offsets = [0, 0], sizes = [8, 128], strides = [1, 1]} : vector<8x512xf32> to vector<8x128xf32>
    %cst_34 = arith.constant 5.000000e-01 : f32
    %60 = vector.broadcast %cst_34 : f32 to vector<8x128xf32>
    %61 = arith.mulf %60, %59 : vector<8x128xf32>
    %62 = math.tanh %61 : vector<8x128xf32>
    %cst_35 = arith.constant 5.000000e-01 : f32
    %63 = vector.broadcast %cst_35 : f32 to vector<8x128xf32>
    %64 = arith.mulf %63, %62 : vector<8x128xf32>
    %cst_36 = arith.constant 5.000000e-01 : f32
    %65 = vector.broadcast %cst_36 : f32 to vector<8x128xf32>
    %66 = arith.addf %64, %65 : vector<8x128xf32>
    %67 = vector.extract_strided_slice %58 {offsets = [0, 128], sizes = [8, 128], strides = [1, 1]} : vector<8x512xf32> to vector<8x128xf32>
    %cst_37 = arith.constant 5.000000e-01 : f32
    %68 = vector.broadcast %cst_37 : f32 to vector<8x128xf32>
    %69 = arith.mulf %68, %67 : vector<8x128xf32>
    %70 = math.tanh %69 : vector<8x128xf32>
    %cst_38 = arith.constant 5.000000e-01 : f32
    %71 = vector.broadcast %cst_38 : f32 to vector<8x128xf32>
    %72 = arith.mulf %71, %70 : vector<8x128xf32>
    %cst_39 = arith.constant 5.000000e-01 : f32
    %73 = vector.broadcast %cst_39 : f32 to vector<8x128xf32>
    %74 = arith.addf %72, %73 : vector<8x128xf32>
    %75 = vector.extract_strided_slice %58 {offsets = [0, 256], sizes = [8, 128], strides = [1, 1]} : vector<8x512xf32> to vector<8x128xf32>
    %76 = math.tanh %75 : vector<8x128xf32>
    %77 = vector.extract_strided_slice %58 {offsets = [0, 384], sizes = [8, 128], strides = [1, 1]} : vector<8x512xf32> to vector<8x128xf32>
    %cst_40 = arith.constant 5.000000e-01 : f32
    %78 = vector.broadcast %cst_40 : f32 to vector<8x128xf32>
    %79 = arith.mulf %78, %77 : vector<8x128xf32>
    %80 = math.tanh %79 : vector<8x128xf32>
    %cst_41 = arith.constant 5.000000e-01 : f32
    %81 = vector.broadcast %cst_41 : f32 to vector<8x128xf32>
    %82 = arith.mulf %81, %80 : vector<8x128xf32>
    %cst_42 = arith.constant 5.000000e-01 : f32
    %83 = vector.broadcast %cst_42 : f32 to vector<8x128xf32>
    %84 = arith.addf %82, %83 : vector<8x128xf32>
    %85 = arith.mulf %74, %49 : vector<8x128xf32>
    %86 = arith.mulf %66, %76 : vector<8x128xf32>
    %87 = arith.addf %85, %86 : vector<8x128xf32>
    %88 = math.tanh %87 : vector<8x128xf32>
    %89 = arith.mulf %84, %88 : vector<8x128xf32>
    %c8_43 = arith.constant 8 : index
    %c0_44 = arith.constant 0 : index
    %90 = vector.load %arg10[%c8_43, %c0_44] : memref<64x128xf32, #tpu.memory_space<vmem>>, vector<8x128xf32>
    tpu.vector_store %arg10[%c8_43, %c0_44], %89 {strides = array<i32>} : memref<64x128xf32, #tpu.memory_space<vmem>>, vector<8x128xf32>,
    %c16 = arith.constant 16 : index
    %c0_45 = arith.constant 0 : index
    %91 = vector.load %arg11[%c16, %c0_45] : memref<64x512xf32, #tpu.memory_space<vmem>>, vector<8x512xf32>
    %92 = arith.truncf %89 : vector<8x128xf32> to vector<8x128xbf16>
    %c0_46 = arith.constant 0 : index
    %c0_47 = arith.constant 0 : index
    %c0_48 = arith.constant 0 : index
    %93 = vector.load %arg3[%c0_46, %c0_47, %c0_48] : memref<1x128x512xbf16, #tpu.memory_space<vmem>>, vector<1x128x512xbf16>
    %94 = vector.shape_cast %93 : vector<1x128x512xbf16> to vector<128x512xbf16>
    %cst_49 = arith.constant dense<0.000000e+00> : vector<8x512xf32>
    %95 = tpu.matmul %92, %94, %cst_49 {dimension_numbers = #tpu.dot_dimension_numbers<[1], [0], [0], [1], [0, 0, 1, 1], [], []>} : vector<8x128xbf16>, vector<128x512xbf16>, vector<8x512xf32> -> vector<8x512xf32>
    %96 = arith.addf %91, %95 : vector<8x512xf32>
    %97 = vector.extract_strided_slice %96 {offsets = [0, 0], sizes = [8, 128], strides = [1, 1]} : vector<8x512xf32> to vector<8x128xf32>
    %cst_50 = arith.constant 5.000000e-01 : f32
    %98 = vector.broadcast %cst_50 : f32 to vector<8x128xf32>
    %99 = arith.mulf %98, %97 : vector<8x128xf32>
    %100 = math.tanh %99 : vector<8x128xf32>
    %cst_51 = arith.constant 5.000000e-01 : f32
    %101 = vector.broadcast %cst_51 : f32 to vector<8x128xf32>
    %102 = arith.mulf %101, %100 : vector<8x128xf32>
    %cst_52 = arith.constant 5.000000e-01 : f32
    %103 = vector.broadcast %cst_52 : f32 to vector<8x128xf32>
    %104 = arith.addf %102, %103 : vector<8x128xf32>
    %105 = vector.extract_strided_slice %96 {offsets = [0, 128], sizes = [8, 128], strides = [1, 1]} : vector<8x512xf32> to vector<8x128xf32>
    %cst_53 = arith.constant 5.000000e-01 : f32
    %106 = vector.broadcast %cst_53 : f32 to vector<8x128xf32>
    %107 = arith.mulf %106, %105 : vector<8x128xf32>
    %108 = math.tanh %107 : vector<8x128xf32>
    %cst_54 = arith.constant 5.000000e-01 : f32
    %109 = vector.broadcast %cst_54 : f32 to vector<8x128xf32>
    %110 = arith.mulf %109, %108 : vector<8x128xf32>
    %cst_55 = arith.constant 5.000000e-01 : f32
    %111 = vector.broadcast %cst_55 : f32 to vector<8x128xf32>
    %112 = arith.addf %110, %111 : vector<8x128xf32>
    %113 = vector.extract_strided_slice %96 {offsets = [0, 256], sizes = [8, 128], strides = [1, 1]} : vector<8x512xf32> to vector<8x128xf32>
    %114 = math.tanh %113 : vector<8x128xf32>
    %115 = vector.extract_strided_slice %96 {offsets = [0, 384], sizes = [8, 128], strides = [1, 1]} : vector<8x512xf32> to vector<8x128xf32>
    %cst_56 = arith.constant 5.000000e-01 : f32
    %116 = vector.broadcast %cst_56 : f32 to vector<8x128xf32>
    %117 = arith.mulf %116, %115 : vector<8x128xf32>
    %118 = math.tanh %117 : vector<8x128xf32>
    %cst_57 = arith.constant 5.000000e-01 : f32
    %119 = vector.broadcast %cst_57 : f32 to vector<8x128xf32>
    %120 = arith.mulf %119, %118 : vector<8x128xf32>
    %cst_58 = arith.constant 5.000000e-01 : f32
    %121 = vector.broadcast %cst_58 : f32 to vector<8x128xf32>
    %122 = arith.addf %120, %121 : vector<8x128xf32>
    %123 = arith.mulf %112, %87 : vector<8x128xf32>
    %124 = arith.mulf %104, %114 : vector<8x128xf32>
    %125 = arith.addf %123, %124 : vector<8x128xf32>
    %126 = math.tanh %125 : vector<8x128xf32>
    %127 = arith.mulf %122, %126 : vector<8x128xf32>
    %c16_59 = arith.constant 16 : index
    %c0_60 = arith.constant 0 : index
    %128 = vector.load %arg10[%c16_59, %c0_60] : memref<64x128xf32, #tpu.memory_space<vmem>>, vector<8x128xf32>
    tpu.vector_store %arg10[%c16_59, %c0_60], %127 {strides = array<i32>} : memref<64x128xf32, #tpu.memory_space<vmem>>, vector<8x128xf32>,
    %c24 = arith.constant 24 : index
    %c0_61 = arith.constant 0 : index
    %129 = vector.load %arg11[%c24, %c0_61] : memref<64x512xf32, #tpu.memory_space<vmem>>, vector<8x512xf32>
    %130 = arith.truncf %127 : vector<8x128xf32> to vector<8x128xbf16>
    %c0_62 = arith.constant 0 : index
    %c0_63 = arith.constant 0 : index
    %c0_64 = arith.constant 0 : index
    %131 = vector.load %arg3[%c0_62, %c0_63, %c0_64] : memref<1x128x512xbf16, #tpu.memory_space<vmem>>, vector<1x128x512xbf16>
    %132 = vector.shape_cast %131 : vector<1x128x512xbf16> to vector<128x512xbf16>
    %cst_65 = arith.constant dense<0.000000e+00> : vector<8x512xf32>
    %133 = tpu.matmul %130, %132, %cst_65 {dimension_numbers = #tpu.dot_dimension_numbers<[1], [0], [0], [1], [0, 0, 1, 1], [], []>} : vector<8x128xbf16>, vector<128x512xbf16>, vector<8x512xf32> -> vector<8x512xf32>
    %134 = arith.addf %129, %133 : vector<8x512xf32>
    %135 = vector.extract_strided_slice %134 {offsets = [0, 0], sizes = [8, 128], strides = [1, 1]} : vector<8x512xf32> to vector<8x128xf32>
    %cst_66 = arith.constant 5.000000e-01 : f32
    %136 = vector.broadcast %cst_66 : f32 to vector<8x128xf32>
    %137 = arith.mulf %136, %135 : vector<8x128xf32>
    %138 = math.tanh %137 : vector<8x128xf32>
    %cst_67 = arith.constant 5.000000e-01 : f32
    %139 = vector.broadcast %cst_67 : f32 to vector<8x128xf32>
    %140 = arith.mulf %139, %138 : vector<8x128xf32>
    %cst_68 = arith.constant 5.000000e-01 : f32
    %141 = vector.broadcast %cst_68 : f32 to vector<8x128xf32>
    %142 = arith.addf %140, %141 : vector<8x128xf32>
    %143 = vector.extract_strided_slice %134 {offsets = [0, 128], sizes = [8, 128], strides = [1, 1]} : vector<8x512xf32> to vector<8x128xf32>
    %cst_69 = arith.constant 5.000000e-01 : f32
    %144 = vector.broadcast %cst_69 : f32 to vector<8x128xf32>
    %145 = arith.mulf %144, %143 : vector<8x128xf32>
    %146 = math.tanh %145 : vector<8x128xf32>
    %cst_70 = arith.constant 5.000000e-01 : f32
    %147 = vector.broadcast %cst_70 : f32 to vector<8x128xf32>
    %148 = arith.mulf %147, %146 : vector<8x128xf32>
    %cst_71 = arith.constant 5.000000e-01 : f32
    %149 = vector.broadcast %cst_71 : f32 to vector<8x128xf32>
    %150 = arith.addf %148, %149 : vector<8x128xf32>
    %151 = vector.extract_strided_slice %134 {offsets = [0, 256], sizes = [8, 128], strides = [1, 1]} : vector<8x512xf32> to vector<8x128xf32>
    %152 = math.tanh %151 : vector<8x128xf32>
    %153 = vector.extract_strided_slice %134 {offsets = [0, 384], sizes = [8, 128], strides = [1, 1]} : vector<8x512xf32> to vector<8x128xf32>
    %cst_72 = arith.constant 5.000000e-01 : f32
    %154 = vector.broadcast %cst_72 : f32 to vector<8x128xf32>
    %155 = arith.mulf %154, %153 : vector<8x128xf32>
    %156 = math.tanh %155 : vector<8x128xf32>
    %cst_73 = arith.constant 5.000000e-01 : f32
    %157 = vector.broadcast %cst_73 : f32 to vector<8x128xf32>
    %158 = arith.mulf %157, %156 : vector<8x128xf32>
    %cst_74 = arith.constant 5.000000e-01 : f32
    %159 = vector.broadcast %cst_74 : f32 to vector<8x128xf32>
    %160 = arith.addf %158, %159 : vector<8x128xf32>
    %161 = arith.mulf %150, %125 : vector<8x128xf32>
    %162 = arith.mulf %142, %152 : vector<8x128xf32>
    %163 = arith.addf %161, %162 : vector<8x128xf32>
    %164 = math.tanh %163 : vector<8x128xf32>
    %165 = arith.mulf %160, %164 : vector<8x128xf32>
    %c24_75 = arith.constant 24 : index
    %c0_76 = arith.constant 0 : index
    %166 = vector.load %arg10[%c24_75, %c0_76] : memref<64x128xf32, #tpu.memory_space<vmem>>, vector<8x128xf32>
    tpu.vector_store %arg10[%c24_75, %c0_76], %165 {strides = array<i32>} : memref<64x128xf32, #tpu.memory_space<vmem>>, vector<8x128xf32>,
    %c32 = arith.constant 32 : index
    %c0_77 = arith.constant 0 : index
    %167 = vector.load %arg11[%c32, %c0_77] : memref<64x512xf32, #tpu.memory_space<vmem>>, vector<8x512xf32>
    %168 = arith.truncf %165 : vector<8x128xf32> to vector<8x128xbf16>
    %c0_78 = arith.constant 0 : index
    %c0_79 = arith.constant 0 : index
    %c0_80 = arith.constant 0 : index
    %169 = vector.load %arg3[%c0_78, %c0_79, %c0_80] : memref<1x128x512xbf16, #tpu.memory_space<vmem>>, vector<1x128x512xbf16>
    %170 = vector.shape_cast %169 : vector<1x128x512xbf16> to vector<128x512xbf16>
    %cst_81 = arith.constant dense<0.000000e+00> : vector<8x512xf32>
    %171 = tpu.matmul %168, %170, %cst_81 {dimension_numbers = #tpu.dot_dimension_numbers<[1], [0], [0], [1], [0, 0, 1, 1], [], []>} : vector<8x128xbf16>, vector<128x512xbf16>, vector<8x512xf32> -> vector<8x512xf32>
    %172 = arith.addf %167, %171 : vector<8x512xf32>
    %173 = vector.extract_strided_slice %172 {offsets = [0, 0], sizes = [8, 128], strides = [1, 1]} : vector<8x512xf32> to vector<8x128xf32>
    %cst_82 = arith.constant 5.000000e-01 : f32
    %174 = vector.broadcast %cst_82 : f32 to vector<8x128xf32>
    %175 = arith.mulf %174, %173 : vector<8x128xf32>
    %176 = math.tanh %175 : vector<8x128xf32>
    %cst_83 = arith.constant 5.000000e-01 : f32
    %177 = vector.broadcast %cst_83 : f32 to vector<8x128xf32>
    %178 = arith.mulf %177, %176 : vector<8x128xf32>
    %cst_84 = arith.constant 5.000000e-01 : f32
    %179 = vector.broadcast %cst_84 : f32 to vector<8x128xf32>
    %180 = arith.addf %178, %179 : vector<8x128xf32>
    %181 = vector.extract_strided_slice %172 {offsets = [0, 128], sizes = [8, 128], strides = [1, 1]} : vector<8x512xf32> to vector<8x128xf32>
    %cst_85 = arith.constant 5.000000e-01 : f32
    %182 = vector.broadcast %cst_85 : f32 to vector<8x128xf32>
    %183 = arith.mulf %182, %181 : vector<8x128xf32>
    %184 = math.tanh %183 : vector<8x128xf32>
    %cst_86 = arith.constant 5.000000e-01 : f32
    %185 = vector.broadcast %cst_86 : f32 to vector<8x128xf32>
    %186 = arith.mulf %185, %184 : vector<8x128xf32>
    %cst_87 = arith.constant 5.000000e-01 : f32
    %187 = vector.broadcast %cst_87 : f32 to vector<8x128xf32>
    %188 = arith.addf %186, %187 : vector<8x128xf32>
    %189 = vector.extract_strided_slice %172 {offsets = [0, 256], sizes = [8, 128], strides = [1, 1]} : vector<8x512xf32> to vector<8x128xf32>
    %190 = math.tanh %189 : vector<8x128xf32>
    %191 = vector.extract_strided_slice %172 {offsets = [0, 384], sizes = [8, 128], strides = [1, 1]} : vector<8x512xf32> to vector<8x128xf32>
    %cst_88 = arith.constant 5.000000e-01 : f32
    %192 = vector.broadcast %cst_88 : f32 to vector<8x128xf32>
    %193 = arith.mulf %192, %191 : vector<8x128xf32>
    %194 = math.tanh %193 : vector<8x128xf32>
    %cst_89 = arith.constant 5.000000e-01 : f32
    %195 = vector.broadcast %cst_89 : f32 to vector<8x128xf32>
    %196 = arith.mulf %195, %194 : vector<8x128xf32>
    %cst_90 = arith.constant 5.000000e-01 : f32
    %197 = vector.broadcast %cst_90 : f32 to vector<8x128xf32>
    %198 = arith.addf %196, %197 : vector<8x128xf32>
    %199 = arith.mulf %188, %163 : vector<8x128xf32>
    %200 = arith.mulf %180, %190 : vector<8x128xf32>
    %201 = arith.addf %199, %200 : vector<8x128xf32>
    %202 = math.tanh %201 : vector<8x128xf32>
    %203 = arith.mulf %198, %202 : vector<8x128xf32>
    %c32_91 = arith.constant 32 : index
    %c0_92 = arith.constant 0 : index
    %204 = vector.load %arg10[%c32_91, %c0_92] : memref<64x128xf32, #tpu.memory_space<vmem>>, vector<8x128xf32>
    tpu.vector_store %arg10[%c32_91, %c0_92], %203 {strides = array<i32>} : memref<64x128xf32, #tpu.memory_space<vmem>>, vector<8x128xf32>,
    %c40 = arith.constant 40 : index
    %c0_93 = arith.constant 0 : index
    %205 = vector.load %arg11[%c40, %c0_93] : memref<64x512xf32, #tpu.memory_space<vmem>>, vector<8x512xf32>
    %206 = arith.truncf %203 : vector<8x128xf32> to vector<8x128xbf16>
    %c0_94 = arith.constant 0 : index
    %c0_95 = arith.constant 0 : index
    %c0_96 = arith.constant 0 : index
    %207 = vector.load %arg3[%c0_94, %c0_95, %c0_96] : memref<1x128x512xbf16, #tpu.memory_space<vmem>>, vector<1x128x512xbf16>
    %208 = vector.shape_cast %207 : vector<1x128x512xbf16> to vector<128x512xbf16>
    %cst_97 = arith.constant dense<0.000000e+00> : vector<8x512xf32>
    %209 = tpu.matmul %206, %208, %cst_97 {dimension_numbers = #tpu.dot_dimension_numbers<[1], [0], [0], [1], [0, 0, 1, 1], [], []>} : vector<8x128xbf16>, vector<128x512xbf16>, vector<8x512xf32> -> vector<8x512xf32>
    %210 = arith.addf %205, %209 : vector<8x512xf32>
    %211 = vector.extract_strided_slice %210 {offsets = [0, 0], sizes = [8, 128], strides = [1, 1]} : vector<8x512xf32> to vector<8x128xf32>
    %cst_98 = arith.constant 5.000000e-01 : f32
    %212 = vector.broadcast %cst_98 : f32 to vector<8x128xf32>
    %213 = arith.mulf %212, %211 : vector<8x128xf32>
    %214 = math.tanh %213 : vector<8x128xf32>
    %cst_99 = arith.constant 5.000000e-01 : f32
    %215 = vector.broadcast %cst_99 : f32 to vector<8x128xf32>
    %216 = arith.mulf %215, %214 : vector<8x128xf32>
    %cst_100 = arith.constant 5.000000e-01 : f32
    %217 = vector.broadcast %cst_100 : f32 to vector<8x128xf32>
    %218 = arith.addf %216, %217 : vector<8x128xf32>
    %219 = vector.extract_strided_slice %210 {offsets = [0, 128], sizes = [8, 128], strides = [1, 1]} : vector<8x512xf32> to vector<8x128xf32>
    %cst_101 = arith.constant 5.000000e-01 : f32
    %220 = vector.broadcast %cst_101 : f32 to vector<8x128xf32>
    %221 = arith.mulf %220, %219 : vector<8x128xf32>
    %222 = math.tanh %221 : vector<8x128xf32>
    %cst_102 = arith.constant 5.000000e-01 : f32
    %223 = vector.broadcast %cst_102 : f32 to vector<8x128xf32>
    %224 = arith.mulf %223, %222 : vector<8x128xf32>
    %cst_103 = arith.constant 5.000000e-01 : f32
    %225 = vector.broadcast %cst_103 : f32 to vector<8x128xf32>
    %226 = arith.addf %224, %225 : vector<8x128xf32>
    %227 = vector.extract_strided_slice %210 {offsets = [0, 256], sizes = [8, 128], strides = [1, 1]} : vector<8x512xf32> to vector<8x128xf32>
    %228 = math.tanh %227 : vector<8x128xf32>
    %229 = vector.extract_strided_slice %210 {offsets = [0, 384], sizes = [8, 128], strides = [1, 1]} : vector<8x512xf32> to vector<8x128xf32>
    %cst_104 = arith.constant 5.000000e-01 : f32
    %230 = vector.broadcast %cst_104 : f32 to vector<8x128xf32>
    %231 = arith.mulf %230, %229 : vector<8x128xf32>
    %232 = math.tanh %231 : vector<8x128xf32>
    %cst_105 = arith.constant 5.000000e-01 : f32
    %233 = vector.broadcast %cst_105 : f32 to vector<8x128xf32>
    %234 = arith.mulf %233, %232 : vector<8x128xf32>
    %cst_106 = arith.constant 5.000000e-01 : f32
    %235 = vector.broadcast %cst_106 : f32 to vector<8x128xf32>
    %236 = arith.addf %234, %235 : vector<8x128xf32>
    %237 = arith.mulf %226, %201 : vector<8x128xf32>
    %238 = arith.mulf %218, %228 : vector<8x128xf32>
    %239 = arith.addf %237, %238 : vector<8x128xf32>
    %240 = math.tanh %239 : vector<8x128xf32>
    %241 = arith.mulf %236, %240 : vector<8x128xf32>
    %c40_107 = arith.constant 40 : index
    %c0_108 = arith.constant 0 : index
    %242 = vector.load %arg10[%c40_107, %c0_108] : memref<64x128xf32, #tpu.memory_space<vmem>>, vector<8x128xf32>
    tpu.vector_store %arg10[%c40_107, %c0_108], %241 {strides = array<i32>} : memref<64x128xf32, #tpu.memory_space<vmem>>, vector<8x128xf32>,
    %c48 = arith.constant 48 : index
    %c0_109 = arith.constant 0 : index
    %243 = vector.load %arg11[%c48, %c0_109] : memref<64x512xf32, #tpu.memory_space<vmem>>, vector<8x512xf32>
    %244 = arith.truncf %241 : vector<8x128xf32> to vector<8x128xbf16>
    %c0_110 = arith.constant 0 : index
    %c0_111 = arith.constant 0 : index
    %c0_112 = arith.constant 0 : index
    %245 = vector.load %arg3[%c0_110, %c0_111, %c0_112] : memref<1x128x512xbf16, #tpu.memory_space<vmem>>, vector<1x128x512xbf16>
    %246 = vector.shape_cast %245 : vector<1x128x512xbf16> to vector<128x512xbf16>
    %cst_113 = arith.constant dense<0.000000e+00> : vector<8x512xf32>
    %247 = tpu.matmul %244, %246, %cst_113 {dimension_numbers = #tpu.dot_dimension_numbers<[1], [0], [0], [1], [0, 0, 1, 1], [], []>} : vector<8x128xbf16>, vector<128x512xbf16>, vector<8x512xf32> -> vector<8x512xf32>
    %248 = arith.addf %243, %247 : vector<8x512xf32>
    %249 = vector.extract_strided_slice %248 {offsets = [0, 0], sizes = [8, 128], strides = [1, 1]} : vector<8x512xf32> to vector<8x128xf32>
    %cst_114 = arith.constant 5.000000e-01 : f32
    %250 = vector.broadcast %cst_114 : f32 to vector<8x128xf32>
    %251 = arith.mulf %250, %249 : vector<8x128xf32>
    %252 = math.tanh %251 : vector<8x128xf32>
    %cst_115 = arith.constant 5.000000e-01 : f32
    %253 = vector.broadcast %cst_115 : f32 to vector<8x128xf32>
    %254 = arith.mulf %253, %252 : vector<8x128xf32>
    %cst_116 = arith.constant 5.000000e-01 : f32
    %255 = vector.broadcast %cst_116 : f32 to vector<8x128xf32>
    %256 = arith.addf %254, %255 : vector<8x128xf32>
    %257 = vector.extract_strided_slice %248 {offsets = [0, 128], sizes = [8, 128], strides = [1, 1]} : vector<8x512xf32> to vector<8x128xf32>
    %cst_117 = arith.constant 5.000000e-01 : f32
    %258 = vector.broadcast %cst_117 : f32 to vector<8x128xf32>
    %259 = arith.mulf %258, %257 : vector<8x128xf32>
    %260 = math.tanh %259 : vector<8x128xf32>
    %cst_118 = arith.constant 5.000000e-01 : f32
    %261 = vector.broadcast %cst_118 : f32 to vector<8x128xf32>
    %262 = arith.mulf %261, %260 : vector<8x128xf32>
    %cst_119 = arith.constant 5.000000e-01 : f32
    %263 = vector.broadcast %cst_119 : f32 to vector<8x128xf32>
    %264 = arith.addf %262, %263 : vector<8x128xf32>
    %265 = vector.extract_strided_slice %248 {offsets = [0, 256], sizes = [8, 128], strides = [1, 1]} : vector<8x512xf32> to vector<8x128xf32>
    %266 = math.tanh %265 : vector<8x128xf32>
    %267 = vector.extract_strided_slice %248 {offsets = [0, 384], sizes = [8, 128], strides = [1, 1]} : vector<8x512xf32> to vector<8x128xf32>
    %cst_120 = arith.constant 5.000000e-01 : f32
    %268 = vector.broadcast %cst_120 : f32 to vector<8x128xf32>
    %269 = arith.mulf %268, %267 : vector<8x128xf32>
    %270 = math.tanh %269 : vector<8x128xf32>
    %cst_121 = arith.constant 5.000000e-01 : f32
    %271 = vector.broadcast %cst_121 : f32 to vector<8x128xf32>
    %272 = arith.mulf %271, %270 : vector<8x128xf32>
    %cst_122 = arith.constant 5.000000e-01 : f32
    %273 = vector.broadcast %cst_122 : f32 to vector<8x128xf32>
    %274 = arith.addf %272, %273 : vector<8x128xf32>
    %275 = arith.mulf %264, %239 : vector<8x128xf32>
    %276 = arith.mulf %256, %266 : vector<8x128xf32>
    %277 = arith.addf %275, %276 : vector<8x128xf32>
    %278 = math.tanh %277 : vector<8x128xf32>
    %279 = arith.mulf %274, %278 : vector<8x128xf32>
    %c48_123 = arith.constant 48 : index
    %c0_124 = arith.constant 0 : index
    %280 = vector.load %arg10[%c48_123, %c0_124] : memref<64x128xf32, #tpu.memory_space<vmem>>, vector<8x128xf32>
    tpu.vector_store %arg10[%c48_123, %c0_124], %279 {strides = array<i32>} : memref<64x128xf32, #tpu.memory_space<vmem>>, vector<8x128xf32>,
    %c56 = arith.constant 56 : index
    %c0_125 = arith.constant 0 : index
    %281 = vector.load %arg11[%c56, %c0_125] : memref<64x512xf32, #tpu.memory_space<vmem>>, vector<8x512xf32>
    %282 = arith.truncf %279 : vector<8x128xf32> to vector<8x128xbf16>
    %c0_126 = arith.constant 0 : index
    %c0_127 = arith.constant 0 : index
    %c0_128 = arith.constant 0 : index
    %283 = vector.load %arg3[%c0_126, %c0_127, %c0_128] : memref<1x128x512xbf16, #tpu.memory_space<vmem>>, vector<1x128x512xbf16>
    %284 = vector.shape_cast %283 : vector<1x128x512xbf16> to vector<128x512xbf16>
    %cst_129 = arith.constant dense<0.000000e+00> : vector<8x512xf32>
    %285 = tpu.matmul %282, %284, %cst_129 {dimension_numbers = #tpu.dot_dimension_numbers<[1], [0], [0], [1], [0, 0, 1, 1], [], []>} : vector<8x128xbf16>, vector<128x512xbf16>, vector<8x512xf32> -> vector<8x512xf32>
    %286 = arith.addf %281, %285 : vector<8x512xf32>
    %287 = vector.extract_strided_slice %286 {offsets = [0, 0], sizes = [8, 128], strides = [1, 1]} : vector<8x512xf32> to vector<8x128xf32>
    %cst_130 = arith.constant 5.000000e-01 : f32
    %288 = vector.broadcast %cst_130 : f32 to vector<8x128xf32>
    %289 = arith.mulf %288, %287 : vector<8x128xf32>
    %290 = math.tanh %289 : vector<8x128xf32>
    %cst_131 = arith.constant 5.000000e-01 : f32
    %291 = vector.broadcast %cst_131 : f32 to vector<8x128xf32>
    %292 = arith.mulf %291, %290 : vector<8x128xf32>
    %cst_132 = arith.constant 5.000000e-01 : f32
    %293 = vector.broadcast %cst_132 : f32 to vector<8x128xf32>
    %294 = arith.addf %292, %293 : vector<8x128xf32>
    %295 = vector.extract_strided_slice %286 {offsets = [0, 128], sizes = [8, 128], strides = [1, 1]} : vector<8x512xf32> to vector<8x128xf32>
    %cst_133 = arith.constant 5.000000e-01 : f32
    %296 = vector.broadcast %cst_133 : f32 to vector<8x128xf32>
    %297 = arith.mulf %296, %295 : vector<8x128xf32>
    %298 = math.tanh %297 : vector<8x128xf32>
    %cst_134 = arith.constant 5.000000e-01 : f32
    %299 = vector.broadcast %cst_134 : f32 to vector<8x128xf32>
    %300 = arith.mulf %299, %298 : vector<8x128xf32>
    %cst_135 = arith.constant 5.000000e-01 : f32
    %301 = vector.broadcast %cst_135 : f32 to vector<8x128xf32>
    %302 = arith.addf %300, %301 : vector<8x128xf32>
    %303 = vector.extract_strided_slice %286 {offsets = [0, 256], sizes = [8, 128], strides = [1, 1]} : vector<8x512xf32> to vector<8x128xf32>
    %304 = math.tanh %303 : vector<8x128xf32>
    %305 = vector.extract_strided_slice %286 {offsets = [0, 384], sizes = [8, 128], strides = [1, 1]} : vector<8x512xf32> to vector<8x128xf32>
    %cst_136 = arith.constant 5.000000e-01 : f32
    %306 = vector.broadcast %cst_136 : f32 to vector<8x128xf32>
    %307 = arith.mulf %306, %305 : vector<8x128xf32>
    %308 = math.tanh %307 : vector<8x128xf32>
    %cst_137 = arith.constant 5.000000e-01 : f32
    %309 = vector.broadcast %cst_137 : f32 to vector<8x128xf32>
    %310 = arith.mulf %309, %308 : vector<8x128xf32>
    %cst_138 = arith.constant 5.000000e-01 : f32
    %311 = vector.broadcast %cst_138 : f32 to vector<8x128xf32>
    %312 = arith.addf %310, %311 : vector<8x128xf32>
    %313 = arith.mulf %302, %277 : vector<8x128xf32>
    %314 = arith.mulf %294, %304 : vector<8x128xf32>
    %315 = arith.addf %313, %314 : vector<8x128xf32>
    %316 = math.tanh %315 : vector<8x128xf32>
    %317 = arith.mulf %312, %316 : vector<8x128xf32>
    %c56_139 = arith.constant 56 : index
    %c0_140 = arith.constant 0 : index
    %318 = vector.load %arg10[%c56_139, %c0_140] : memref<64x128xf32, #tpu.memory_space<vmem>>, vector<8x128xf32>
    tpu.vector_store %arg10[%c56_139, %c0_140], %317 {strides = array<i32>} : memref<64x128xf32, #tpu.memory_space<vmem>>, vector<8x128xf32>,
    %c2_i32 = arith.constant 2 : i32
    %319 = arith.cmpi eq, %arg0, %c2_i32 : i32
    %320 = arith.extui %319 : i1 to i32
    %c0_i32_141 = arith.constant 0 : i32
    %321 = arith.cmpi ne, %320, %c0_i32_141 : i32
    scf.if %321 {
      %322 = arith.truncf %317 : vector<8x128xf32> to vector<8x128xbf16>
      %c0_142 = arith.constant 0 : index
      %c0_143 = arith.constant 0 : index
      %323 = vector.load %arg5[%c0_142, %c0_143] : memref<128x128xbf16, #tpu.memory_space<vmem>>, vector<128x128xbf16>
      %cst_144 = arith.constant dense<0.000000e+00> : vector<8x128xf32>
      %324 = tpu.matmul %322, %323, %cst_144 {dimension_numbers = #tpu.dot_dimension_numbers<[1], [0], [0], [1], [0, 0, 1, 1], [], []>} : vector<8x128xbf16>, vector<128x128xbf16>, vector<8x128xf32> -> vector<8x128xf32>
      %c0_145 = arith.constant 0 : index
      %c0_146 = arith.constant 0 : index
      %325 = vector.load %arg6[%c0_145, %c0_146] : memref<1x128xf32, #tpu.memory_space<vmem>>, vector<1x128xf32>
      %326 = vector.broadcast %325 : vector<1x128xf32> to vector<8x128xf32>
      %327 = arith.addf %324, %326 : vector<8x128xf32>
      %cst_147 = arith.constant 0.000000e+00 : f32
      %328 = vector.broadcast %cst_147 : f32 to vector<8x128xf32>
      %329 = arith.maximumf %327, %328 : vector<8x128xf32>
      %330 = arith.truncf %329 : vector<8x128xf32> to vector<8x128xbf16>
      %c0_148 = arith.constant 0 : index
      %c0_149 = arith.constant 0 : index
      %331 = vector.load %arg7[%c0_148, %c0_149] : memref<128x128xbf16, #tpu.memory_space<vmem>>, vector<128x128xbf16>
      %cst_150 = arith.constant dense<0.000000e+00> : vector<8x128xf32>
      %332 = tpu.matmul %330, %331, %cst_150 {dimension_numbers = #tpu.dot_dimension_numbers<[1], [0], [0], [1], [0, 0, 1, 1], [], []>} : vector<8x128xbf16>, vector<128x128xbf16>, vector<8x128xf32> -> vector<8x128xf32>
      %c0_151 = arith.constant 0 : index
      %c0_152 = arith.constant 0 : index
      %333 = vector.load %arg8[%c0_151, %c0_152] : memref<1x128xf32, #tpu.memory_space<vmem>>, vector<1x128xf32>
      %334 = vector.broadcast %333 : vector<1x128xf32> to vector<8x128xf32>
      %335 = arith.addf %332, %334 : vector<8x128xf32>
      %c0_153 = arith.constant 0 : index
      %c0_154 = arith.constant 0 : index
      %336 = vector.load %arg9[%c0_153, %c0_154] : memref<8x128xf32, #tpu.memory_space<vmem>>, vector<8x128xf32>
      tpu.vector_store %arg9[%c0_153, %c0_154], %335 {strides = array<i32>} : memref<8x128xf32, #tpu.memory_space<vmem>>, vector<8x128xf32>,
    } else {
    }
    return
  }
  func.func @transform_0(%arg0: i32) -> (i32, i32) {
    %c0_i32 = arith.constant 0 : i32
    %c0_i32_0 = arith.constant 0 : i32
    %c0_i32_1 = arith.constant 0 : i32
    return %c0_i32, %c0_i32_0 : i32, i32
  }
  func.func @transform_1(%arg0: i32) -> (i32, i32, i32) {
    %c0_i32 = arith.constant 0 : i32
    %c0_i32_0 = arith.constant 0 : i32
    %c0_i32_1 = arith.constant 0 : i32
    return %arg0, %c0_i32, %c0_i32_0 : i32, i32, i32
  }
  func.func @transform_2(%arg0: i32) -> (i32, i32, i32) {
    %c0_i32 = arith.constant 0 : i32
    %c0_i32_0 = arith.constant 0 : i32
    %c0_i32_1 = arith.constant 0 : i32
    return %arg0, %c0_i32, %c0_i32_0 : i32, i32, i32
  }
  func.func @transform_3(%arg0: i32) -> (i32, i32, i32) {
    %c0_i32 = arith.constant 0 : i32
    %c0_i32_0 = arith.constant 0 : i32
    %c0_i32_1 = arith.constant 0 : i32
    return %arg0, %c0_i32, %c0_i32_0 : i32, i32, i32
  }
  func.func @transform_4(%arg0: i32) -> (i32, i32) {
    %c0_i32 = arith.constant 0 : i32
    %c0_i32_0 = arith.constant 0 : i32
    %c0_i32_1 = arith.constant 0 : i32
    return %c0_i32, %c0_i32_0 : i32, i32
  }
  func.func @transform_5(%arg0: i32) -> (i32, i32) {
    %c0_i32 = arith.constant 0 : i32
    %c0_i32_0 = arith.constant 0 : i32
    %c0_i32_1 = arith.constant 0 : i32
    return %c0_i32, %c0_i32_0 : i32, i32
  }
  func.func @transform_6(%arg0: i32) -> (i32, i32) {
    %c0_i32 = arith.constant 0 : i32
    %c0_i32_0 = arith.constant 0 : i32
    %c0_i32_1 = arith.constant 0 : i32
    return %c0_i32, %c0_i32_0 : i32, i32
  }
  func.func @transform_7(%arg0: i32) -> (i32, i32) {
    %c0_i32 = arith.constant 0 : i32
    %c0_i32_0 = arith.constant 0 : i32
    %c0_i32_1 = arith.constant 0 : i32
    return %c0_i32, %c0_i32_0 : i32, i32
  }
  func.func @transform_8(%arg0: i32) -> (i32, i32) {
    %c0_i32 = arith.constant 0 : i32
    %c0_i32_0 = arith.constant 0 : i32
    %c0_i32_1 = arith.constant 0 : i32
    return %c0_i32, %c0_i32_0 : i32, i32
  }
}

</mosaic_0001>

<bundles_post_ra>
// kernel: _lambda_.1
= control target key start
LH: loop header
LB: loop body
LE: loop exit
PB: predicated region body
PF: predicated region fallthrough
CT: control target
= control target key end

     0   :  { %s6005_s0 = inlined_call_operand.vmem [shape: f32[64,128], index: 0, kind: input, shape index: {}]   ;;  %s6006_s1 = inlined_call_operand.hbm [shape: bf16[3,128,512], index: 1, kind: input, shape index: {}]   ;;  %s6007_s2 = inlined_call_operand.hbm [shape: bf16[3,128,512], index: 2, kind: input, shape index: {}]   ;;  %s6008_s3 = inlined_call_operand.vmem [shape: f32[3,1,512], index: 3, kind: input, shape index: {}]   ;;  %s6009_s4 = inlined_call_operand.hbm [shape: bf16[128,128], index: 4, kind: input, shape index: {}]   ;;  %s6010_s5 = inlined_call_operand.vmem [shape: f32[1,128], index: 5, kind: input, shape index: {}]   ;;  %s6011_s6 = inlined_call_operand.vmem [shape: bf16[128,128], index: 6, kind: input, shape index: {}]   ;;  %s6012_s7 = inlined_call_operand.vmem [shape: f32[1,128], index: 7, kind: input, shape index: {}]   ;;  %s6013_s8 = inlined_call_operand.vmem [shape: f32[8,128], index: 8, kind: output, shape index: {}]  }
   0x1   :  { %6016 = sst [smem:[#allocation14_spill]] %s6006_s1 }
   0x2   :  { %6017 = sst [smem:[#allocation15_spill]] %s6009_s4 }
   0x3   :  { %13 = vsyncpa [#allocation5], 0 }
   0x4   :  { %15 = vsyncpa [#allocation5 + $0x1], 0 }
   0x5   :  { %16 = vsyncpa [#allocation7], 0 }
   0x6   :  { %18 = vsyncpa [#allocation7 + $0x1], 0  ;;  %s5067_s27 = smov 0   ;;  %s5069_s28 = smov 0  }
   0x7   :  { %s5071_s29 = smov 0   ;;  %s5073_s30 = smov 0  }
   0x8 LB: > { %6018 = sst [smem:[#allocation12_spill]] %s5010_s29  ;;  %s5086_s9 = sadd.s32 4294967295, %s5014_s30   ;;  %s5014_s30 = sphi %s5073_s30, %s6030_s30   ;;  %s5010_s29 = sphi %s5071_s29, %s6027_s29   ;;  %s5006_s28 = sphi %s5069_s28, %s6029_s28   ;;  %s5002_s27 = sphi %s5067_s27, %s6028_s27  }
   0x9   : > { %p65_p0 = scmp.ne.s32.totalorder %s5006_s28, %s5002_s27  ;;  %p66_p1 = scmp.eq.s32.totalorder %s5086_s9, 0 }
   0xa   : > { %p3200_p2 = scmp.ge.s32.totalorder %s5014_s30, 1  ;;  %p233_p3 = scmp.lt.s32.totalorder %s5014_s30, 4 }
   0xb   : > { %p3201_p4 = scmp.ne.s32.totalorder %s5086_s9, 0  ;;  %p5095_p5 = por %p66_p1, %p65_p0 }
   0xc   : > { %s6020_s4 = sld [smem:[#allocation15_spill]]  ;;  %p5102_p6 = pnand %p3200_p2, %p233_p3 }
   0xd   : > { %s5016_s15 = smov [#allocation8]   ;;  %s5111_s17 = sadd.s32 1, %s5014_s30  }
   0xe   : > { %p4748_p7 = pneg %p5102_p6  ;;  %s249_s16 = sshll.u32 %s5016_s15, 4  ;;  %s250_s16 = int_to_ptr.vmem [resolvable:$true] %s249_s16 }
   0xf   : > { %s5017_s18 = smov 64   ;;  %s5018_s19 = smov 4  }
  0x10   : > { %p4749_p8 = pnand %p4748_p7, %p66_p1  ;;  %s49_s20 = ssub.s32 %s5014_s30, %s5111_s17 }
  0x11   : > { %s52_s21 = sadd.s32 1, %s5010_s29  ;;  %p50_p9 = scmp.eq.s32.totalorder %s49_s20, 0 }
  0x12   : > { %s247_s13 = sshll.u32 %s6020_s4, 4  ;;  %p59_p10 = scmp.ne.s32.totalorder %s5010_s29, %s5006_s28  ;;  %s248_s13 = int_to_ptr.hbm [resolvable:$true] %s247_s13 }
  0x13   : > { %4751 = dma.hbm_to_vmem [thread:$0]  (!%p4749_p8), %s248_s13, 1024, %s250_s16, [#allocation7], %s5017_s18, %s5017_s18, %s5018_s19  }
  0x14   : > { %p60_p11 = scmp.eq.s32.totalorder %s5014_s30, 0  ;;  %p4760_p12 = scmp.lt.s32.totalorder %s5014_s30, 3 }
  0x15   : > { %s5121_s22 = scalar_select %p50_p9, %s5010_s29, %s52_s21  }
  0x16   : > { %p61_p13 = por %p60_p11, %p59_p10  ;;  %s272_s23 = sand.u32 1, %s5010_s29  }
  0x17   : > { %6022 = sst [smem:[#allocation13_spill]] %s5121_s22  ;;  %s5124_s24 = sshll.u32 %s272_s23, 8 }
  0x18   : > { %s6014_s25 = sshll.u32 %s5014_s30, 8  ;;  %s6023_s1 = sld [smem:[#allocation14_spill]] }
  0x19   : > { %s276_s12 = scalar_lea.vmem [#allocation4], %s5124_s24  ;;  %p5133_p0 = pnand %p4760_p12, %p61_p13 }
  0x1a   : > { %s284_s13 = sshll.u32 %s276_s12, 4  ;;  %s273_s18 = scalar_lea.sflag [#allocation5], %s272_s23  ;;  %s285_s13 = int_to_ptr.vmem [resolvable:$true] %s284_s13 }
  0x1b   : > { %p4916_p3 = pneg %p5133_p0 }
  0x1e   : > { %s281_s11 = scalar_lea.hbm %s6023_s1, %s6014_s25  ;;  %s4919_s27 = scalar_lea.hbm %s6023_s1, 768 }
  0x1f   : > { %s282_s15 = sshll.u32 %s281_s11, 4  ;;  %s283_s15 = int_to_ptr.hbm [resolvable:$true] %s282_s15 }
  0x20   : > { %s4912_s19 = sshra.s32 %s283_s15, 4  ;;  %s4913_s19 = int_to_ptr.hbm [resolvable:$true] %s4912_s19 }
  0x21   : > { %s4914_s20 = scalar_lea.hbm %s4913_s19, 256  ;;  %p4920_p9 = scmp.lt.s32.totalorder %s4913_s19, %s6023_s1 }
  0x22   : > { %p4915_p2 = scmp.ne.s32.totalorder %s4913_s19, %s4914_s20  ;;  %p4921_p10 = scmp.lt.s32.totalorder %s4919_s27, %s4914_s20 }
  0x24   : > { %p4917_p7 = pnand %p4916_p3, %p4915_p2  ;;  %p4922_p11 = por %p4921_p10, %p4920_p9 }
  0x26   : > { %p4918_p8 = pneg %p4917_p7 }
  0x28   : > { %p4923_p12 = pnand %p4922_p11, %p4918_p8 }
  0x2a   : > { %4926 = shalt.err (!%p4923_p12)
}
  0x2b   : > { %s5019_s23 = smov 256   ;;  %s5020_s25 = smov 16  }
  0x2c   : > { %4755 = dma.hbm_to_vmem [thread:$0]  (!%p5133_p0), %s283_s15, 4096, %s285_s13, %s273_s18, %s5019_s23, %s5019_s23, %s5020_s25  }
  0x2d   : > { %s6025_s4 = sshll.u32 %s5014_s30, 8  ;;  %s298_s11 = scalar_lea.vmem [#allocation6], %s5124_s24 }
  0x2e   : > { %s303_s22 = scalar_lea.hbm %s6007_s2, %s6025_s4  ;;  %s306_s19 = sshll.u32 %s298_s11, 4  ;;  %s307_s19 = int_to_ptr.vmem [resolvable:$true] %s306_s19 }
  0x2f   : > { %s304_s20 = sshll.u32 %s303_s22, 4  ;;  %s294_s27 = sand.u32 1, %s5014_s30   ;;  %s305_s20 = int_to_ptr.hbm [resolvable:$true] %s304_s20 }
  0x30   : > { %s295_s12 = scalar_lea.sflag [#allocation7], %s294_s27  ;;  %s4942_s1 = sshra.s32 %s305_s20, 4  ;;  %s4943_s1 = int_to_ptr.hbm [resolvable:$true] %s4942_s1 }
  0x31   : > { %s4944_s29 = scalar_lea.hbm %s4943_s1, 256  ;;  %s4949_s18 = scalar_lea.hbm %s6007_s2, 768 }
  0x32   : > { %p4945_p13 = scmp.ne.s32.totalorder %s4943_s1, %s4944_s29  ;;  %p4950_p8 = scmp.lt.s32.totalorder %s4943_s1, %s6007_s2 }
  0x33   : > { %p4951_p9 = scmp.lt.s32.totalorder %s4949_s18, %s4944_s29 }
  0x34   : > { %p4947_p2 = pnand %p4945_p13, %p4916_p3 }
  0x35   : > { %p4952_p10 = por %p4951_p9, %p4950_p8 }
  0x36   : > { %p4948_p7 = pneg %p4947_p2 }
  0x38   : > { %p4953_p11 = pnand %p4952_p10, %p4948_p7 }
  0x3a   : > { %4956 = shalt.err (!%p4953_p11)
}
  0x3b   : > { %4758 = dma.hbm_to_vmem [thread:$0]  (!%p5133_p0), %s305_s20, 4096, %s307_s19, %s295_s12, %s5019_s23, %s5019_s23, %s5020_s25  }
  0x3c   : > { %325 = sbr.rel (%p5102_p6) target bundleno = 1738 (0x6ca), region = 52  ;;  %s327_s30 = sand.u32 (!%p5102_p6), 1, %s5006_s28  }
  0x3d   : > { %s3210_s22 = sshll.u32 (!%p5102_p6), %s327_s30, 8  ;;  %s328_s21 = scalar_lea.sflag (!%p5102_p6), [#allocation5], %s327_s30 }
  0x3e   : > { %s5171_s26 = scalar_lea.vmem (!%p5102_p6), [#allocation4], %s3210_s22 }
  0x41   : > { %4989 = dma.done.wait (%p5095_p5), %s328_s21, 4096  }
  0x42   : > { %4991 = vsyncadd (%p5095_p5), %s328_s21, 4294963200  ;;  %s337_s1 = sand.u32 1, %s5086_s9   ;;  %s5178_s25 = scalar_lea.vmem [#allocation6], %s3210_s22 }
  0x43   : > { %s338_s29 = scalar_lea.sflag [#allocation7], %s337_s1 }
  0x44   : > { %4993 = dma.done.wait (%p5095_p5), %s338_s29, 4096  }
  0x45   : > { %4995 = vsyncadd (%p5095_p5), %s338_s29, 4294963200 }
  0x46   : > { %4997 = dma.done.wait (%p66_p1), [#allocation7], 1024  }
  0x47   : > { %4999 = vsyncadd (%p66_p1), [#allocation7], 4294966272  ;;  %p384_p6 = scmp.lt.s32.totalorder %s5086_s9, 2 }
  0x48   : > { %392 = sbr.rel (%p3201_p4) target bundleno = 86 (0x56), region = 68 }
  0x49   : > { %s385_s14 = scalar_select %p384_p6, %s5086_s9, 2 }
  0x4b   : > { %s3213_s16 = sshll.u32 %s385_s14, 2 }
  0x4c   : > { %s5193_s19 = scalar_lea.vmem %s6008_s3, %s3213_s16 }
  0x4d   : > { %v393_v0 = vld [vmem:[%s6005_s0] sm:$0xff]  ;;  %v394_v1 = vld [vmem:[%s6005_s0 + $0x8] sm:$0xff]  ;;  %v395_v2 = vld [vmem:[%s6005_s0 + $0x10] sm:$0xff] }
  0x4e   : > { %401 = vst [vmem:[#allocation2 + $0x30] sm:$0xff] %v393_v0  ;;  %v396_v3 = vld [vmem:[%s6005_s0 + $0x18] sm:$0xff]  ;;  %v397_v4 = vld [vmem:[%s6005_s0 + $0x20] sm:$0xff]  ;;  %v398_v5 = vld [vmem:[%s6005_s0 + $0x28] sm:$0xff] }
  0x4f   : > { %402 = vst [vmem:[#allocation2] sm:$0xff] %v394_v1  ;;  %v399_v6 = vld [vmem:[%s6005_s0 + $0x30] sm:$0xff]  ;;  %v400_v7 = vld [vmem:[%s6005_s0 + $0x38] sm:$0xff] }
  0x50   : > { %403 = vst [vmem:[#allocation2 + $0x18] sm:$0xff] %v395_v2 }
  0x51   : > { %404 = vst [vmem:[#allocation2 + $0x10] sm:$0xff] %v396_v3 }
  0x52   : > { %405 = vst [vmem:[#allocation2 + $0x8] sm:$0xff] %v397_v4 }
  0x53   : > { %406 = vst [vmem:[#allocation2 + $0x20] sm:$0xff] %v398_v5 }
  0x54   : > { %407 = vst [vmem:[#allocation2 + $0x28] sm:$0xff] %v399_v6 }
  0x55   : > { %408 = vst [vmem:[#allocation2 + $0x38] sm:$0xff] %v400_v7 }
  0x56 PF: > { %v3329_v8 = vld [vmem:[%s5171_s26 + $0xe0] sm:$0xf]  ;;  %v4466_v9 = vld [vmem:[%s5171_s26 + $0xec] sm:$0xf0]  ;;  %v4464_v10 = vld [vmem:[%s5171_s26 + $0xe4] sm:$0xf] }
  0x57   : > { %v3330_v11 = vor.u32 %v4466_v9, %v3329_v8  ;;  %v3331_v12 = vld [vmem:[%s5171_s26 + $0xf0] sm:$0xf0]  ;;  %v3337_v13 = vld [vmem:[%s5171_s26 + $0xe8] sm:$0xf]  ;;  %v4467_v14 = vld [vmem:[%s5171_s26 + $0xf4] sm:$0xf0] }
  0x58   : > { %v3334_v15 = vor.u32 %v4464_v10, %v3331_v12  ;;  %v3338_v16 = vor.u32 %v4467_v14, %v3337_v13  ;;  %v4465_v17 = vld [vmem:[%s5171_s26 + $0xec] sm:$0xf]  ;;  %v3339_v18 = vld [vmem:[%s5171_s26 + $0xf8] sm:$0xf0]  ;;  %v3313_v19 = vld [vmem:[%s5171_s26 + $0xc0] sm:$0xf] }
  0x59   : > { %623 = vmatpush.bf16.msra.mxu0 %v3330_v11  ;;  %v3342_v20 = vor.u32 %v4465_v17, %v3339_v18  ;;  %v4462_v21 = vld [vmem:[%s5171_s26 + $0xcc] sm:$0xf0]  ;;  %v4460_v22 = vld [vmem:[%s5171_s26 + $0xc4] sm:$0xf]  ;;  %v3315_v23 = vld [vmem:[%s5171_s26 + $0xd0] sm:$0xf0] }
  0x5a   : > { %652 = vmatpush.bf16.msra.mxu1 %v3334_v15  ;;  %681 = vmatpush.bf16.msra.mxu2 %v3338_v16  ;;  %v3314_v24 = vor.u32 %v4462_v21, %v3313_v19  ;;  %v3318_v25 = vor.u32 %v4460_v22, %v3315_v23  ;;  %v3321_v26 = vld [vmem:[%s5171_s26 + $0xc8] sm:$0xf]  ;;  %v4463_v27 = vld [vmem:[%s5171_s26 + $0xd4] sm:$0xf0]  ;;  %v4461_v28 = vld [vmem:[%s5171_s26 + $0xcc] sm:$0xf] }
  0x5b   : > { %710 = vmatpush.bf16.msra.mxu3 %v3342_v20  ;;  %v3322_v29 = vor.u32 %v4463_v27, %v3321_v26  ;;  %v3323_v30 = vld [vmem:[%s5171_s26 + $0xd8] sm:$0xf0]  ;;  %v3297_v31 = vld [vmem:[%s5171_s26 + $0xa0] sm:$0xf]  ;;  %v4458_v32 = vld [vmem:[%s5171_s26 + $0xac] sm:$0xf0] }
  0x5c   : > { %v3326_v33 = vor.u32 %v4461_v28, %v3323_v30  ;;  %v4456_v34 = vld [vmem:[%s5171_s26 + $0xa4] sm:$0xf]  ;;  %v3299_v35 = vld [vmem:[%s5171_s26 + $0xb0] sm:$0xf0]  ;;  %v3305_v36 = vld [vmem:[%s5171_s26 + $0xa8] sm:$0xf]  ;;  %v3298_v37 = vor.u32 %v4458_v32, %v3297_v31 }
  0x5d   : > { %624 = vmatpush.bf16.msra.mxu0 %v3314_v24  ;;  %v4459_v38 = vld [vmem:[%s5171_s26 + $0xb4] sm:$0xf0]  ;;  %v4457_v39 = vld [vmem:[%s5171_s26 + $0xac] sm:$0xf]  ;;  %v3307_v40 = vld [vmem:[%s5171_s26 + $0xb8] sm:$0xf0]  ;;  %v3302_v41 = vor.u32 %v4456_v34, %v3299_v35 }
  0x5e   : > { %653 = vmatpush.bf16.msra.mxu1 %v3318_v25  ;;  %682 = vmatpush.bf16.msra.mxu2 %v3322_v29  ;;  %v3306_v42 = vor.u32 %v4459_v38, %v3305_v36  ;;  %v3281_v43 = vld [vmem:[%s5171_s26 + $0x80] sm:$0xf]  ;;  %v4454_v44 = vld [vmem:[%s5171_s26 + $0x8c] sm:$0xf0]  ;;  %v4452_v45 = vld [vmem:[%s5171_s26 + $0x84] sm:$0xf]  ;;  %v3310_v46 = vor.u32 %v4457_v39, %v3307_v40 }
  0x5f   : > { %711 = vmatpush.bf16.msra.mxu3 %v3326_v33  ;;  %v3283_v47 = vld [vmem:[%s5171_s26 + $0x90] sm:$0xf0]  ;;  %v3289_v48 = vld [vmem:[%s5171_s26 + $0x88] sm:$0xf]  ;;  %v4455_v49 = vld [vmem:[%s5171_s26 + $0x94] sm:$0xf0]  ;;  %v3282_v52 = vor.u32 %v4454_v44, %v3281_v43 }
  0x60   : > { %v4453_v50 = vld [vmem:[%s5171_s26 + $0x8c] sm:$0xf]  ;;  %v3291_v51 = vld [vmem:[%s5171_s26 + $0x98] sm:$0xf0]  ;;  %v3286_v53 = vor.u32 %v4452_v45, %v3283_v47  ;;  %v3290_v54 = vor.u32 %v4455_v49, %v3289_v48  ;;  %v3265_v55 = vld [vmem:[%s5171_s26 + $0x60] sm:$0xf] }
  0x61   : > { %625 = vmatpush.bf16.msra.mxu0 %v3298_v37  ;;  %v4450_v56 = vld [vmem:[%s5171_s26 + $0x6c] sm:$0xf0]  ;;  %v4448_v57 = vld [vmem:[%s5171_s26 + $0x64] sm:$0xf]  ;;  %v3294_v58 = vor.u32 %v4453_v50, %v3291_v51  ;;  %v3267_v59 = vld [vmem:[%s5171_s26 + $0x70] sm:$0xf0] }
  0x62   : > { %654 = vmatpush.bf16.msra.mxu1 %v3302_v41  ;;  %683 = vmatpush.bf16.msra.mxu2 %v3306_v42  ;;  %v3273_v60 = vld [vmem:[%s5171_s26 + $0x68] sm:$0xf]  ;;  %v4451_v61 = vld [vmem:[%s5171_s26 + $0x74] sm:$0xf0]  ;;  %v4449_v62 = vld [vmem:[%s5171_s26 + $0x6c] sm:$0xf]  ;;  %v3266_v0 = vor.u32 %v4450_v56, %v3265_v55  ;;  %v3270_v1 = vor.u32 %v4448_v57, %v3267_v59 }
  0x63   : > { %712 = vmatpush.bf16.msra.mxu3 %v3310_v46  ;;  %v3275_v63 = vld [vmem:[%s5171_s26 + $0x78] sm:$0xf0]  ;;  %v3274_v2 = vor.u32 %v4451_v61, %v3273_v60  ;;  %v3249_v3 = vld [vmem:[%s5171_s26 + $0x40] sm:$0xf]  ;;  %v4446_v4 = vld [vmem:[%s5171_s26 + $0x4c] sm:$0xf0] }
  0x64   : > { %v4444_v5 = vld [vmem:[%s5171_s26 + $0x44] sm:$0xf]  ;;  %v3278_v6 = vor.u32 %v4449_v62, %v3275_v63  ;;  %v3251_v7 = vld [vmem:[%s5171_s26 + $0x50] sm:$0xf0]  ;;  %v3257_v8 = vld [vmem:[%s5171_s26 + $0x48] sm:$0xf]  ;;  %v3250_v12 = vor.u32 %v4446_v4, %v3249_v3 }
  0x65   : > { %626 = vmatpush.bf16.msra.mxu0 %v3282_v52  ;;  %v4447_v9 = vld [vmem:[%s5171_s26 + $0x54] sm:$0xf0]  ;;  %v4445_v10 = vld [vmem:[%s5171_s26 + $0x4c] sm:$0xf]  ;;  %v3259_v11 = vld [vmem:[%s5171_s26 + $0x58] sm:$0xf0]  ;;  %v3254_v13 = vor.u32 %v4444_v5, %v3251_v7 }
  0x66   : > { %655 = vmatpush.bf16.msra.mxu1 %v3286_v53  ;;  %684 = vmatpush.bf16.msra.mxu2 %v3290_v54  ;;  %v3258_v14 = vor.u32 %v4447_v9, %v3257_v8  ;;  %v3233_v15 = vld [vmem:[%s5171_s26 + $0x20] sm:$0xf]  ;;  %v4442_v16 = vld [vmem:[%s5171_s26 + $0x2c] sm:$0xf0]  ;;  %v4440_v17 = vld [vmem:[%s5171_s26 + $0x24] sm:$0xf]  ;;  %v3262_v18 = vor.u32 %v4445_v10, %v3259_v11 }
  0x67   : > { %713 = vmatpush.bf16.msra.mxu3 %v3294_v58  ;;  %v3235_v19 = vld [vmem:[%s5171_s26 + $0x30] sm:$0xf0]  ;;  %v3241_v20 = vld [vmem:[%s5171_s26 + $0x28] sm:$0xf]  ;;  %v4443_v21 = vld [vmem:[%s5171_s26 + $0x34] sm:$0xf0]  ;;  %v3234_v24 = vor.u32 %v4442_v16, %v3233_v15 }
  0x68   : > { %v4441_v22 = vld [vmem:[%s5171_s26 + $0x2c] sm:$0xf]  ;;  %v3243_v23 = vld [vmem:[%s5171_s26 + $0x38] sm:$0xf0]  ;;  %v3217_v25 = vld [vmem:[%s5171_s26] sm:$0xf]  ;;  %v3238_v27 = vor.u32 %v4440_v17, %v3235_v19  ;;  %v3242_v28 = vor.u32 %v4443_v21, %v3241_v20 }
  0x69   : > { %627 = vmatpush.bf16.msra.mxu0 %v3266_v0  ;;  %v4438_v26 = vld [vmem:[%s5171_s26 + $0xc] sm:$0xf0]  ;;  %v4436_v29 = vld [vmem:[%s5171_s26 + $0x4] sm:$0xf]  ;;  %v3219_v30 = vld [vmem:[%s5171_s26 + $0x10] sm:$0xf0]  ;;  %v3246_v32 = vor.u32 %v4441_v22, %v3243_v23 }
  0x6a   : > { %656 = vmatpush.bf16.msra.mxu1 %v3270_v1  ;;  %685 = vmatpush.bf16.msra.mxu2 %v3274_v2  ;;  %v3225_v31 = vld [vmem:[%s5171_s26 + $0x8] sm:$0xf]  ;;  %v4439_v33 = vld [vmem:[%s5171_s26 + $0x14] sm:$0xf0]  ;;  %v4437_v34 = vld [vmem:[%s5171_s26 + $0xc] sm:$0xf]  ;;  %v3218_v39 = vor.u32 %v4438_v26, %v3217_v25  ;;  %v3222_v43 = vor.u32 %v4436_v29, %v3219_v30 }
  0x6b   : > { %714 = vmatpush.bf16.msra.mxu3 %v3278_v6  ;;  %v3227_v35 = vld [vmem:[%s5171_s26 + $0x18] sm:$0xf0]  ;;  %v409_v36 = vld [vmem:[#allocation2 + $0x30] sm:$0xff]  ;;  %v3457_v37 = vld [vmem:[%s5178_s25 + $0xe0] sm:$0xf]  ;;  %v3226_v44 = vor.u32 %v4439_v33, %v3225_v31  ;;  %p4367_p1 = scmp.ne.s32.totalorder %s5086_s9, 2 }
  0x6c   : > { %v4498_v38 = vld [vmem:[%s5178_s25 + $0xec] sm:$0xf0]  ;;  %v410_v40 = vld [vmem:[#allocation2] sm:$0xff]  ;;  %v3459_v42 = vld [vmem:[%s5178_s25 + $0xf0] sm:$0xf0]  ;;  %v3230_v45 = vor.u32 %v4437_v34, %v3227_v35 }
  0x6d   : > { %628 = vmatpush.bf16.msra.mxu0 %v3250_v12  ;;  %v4496_v41 = vld [vmem:[%s5178_s25 + $0xe4] sm:$0xf]  ;;  %v3458_v46 = vor.u32 %v4498_v38, %v3457_v37  ;;  %v3465_v47 = vld [vmem:[%s5178_s25 + $0xe8] sm:$0xf]  ;;  %v4499_v48 = vld [vmem:[%s5178_s25 + $0xf4] sm:$0xf0]  ;;  %v417_v50 = vpack.c.bf16 %v410_v40, %v409_v36 }
  0x6e   : > { %657 = vmatpush.bf16.msra.mxu1 %v3254_v13  ;;  %686 = vmatpush.bf16.msra.mxu2 %v3258_v14  ;;  %v4497_v49 = vld [vmem:[%s5178_s25 + $0xec] sm:$0xf]  ;;  %v3462_v51 = vor.u32 %v4496_v41, %v3459_v42  ;;  %v3467_v52 = vld [vmem:[%s5178_s25 + $0xf8] sm:$0xf0]  ;;  %v3441_v53 = vld [vmem:[%s5178_s25 + $0xc0] sm:$0xf]  ;;  %v3466_v57 = vor.u32 %v4499_v48, %v3465_v47 }
  0x6f   : > { %715 = vmatpush.bf16.msra.mxu3 %v3262_v18  ;;  %v4494_v54 = vld [vmem:[%s5178_s25 + $0xcc] sm:$0xf0]  ;;  %v4492_v55 = vld [vmem:[%s5178_s25 + $0xc4] sm:$0xf]  ;;  %v3443_v56 = vld [vmem:[%s5178_s25 + $0xd0] sm:$0xf0]  ;;  %v3470_v58 = vor.u32 %v4497_v49, %v3467_v52 }
  0x70   : > { %v3442_v59 = vor.u32 %v4494_v54, %v3441_v53  ;;  %v3449_v60 = vld [vmem:[%s5178_s25 + $0xc8] sm:$0xf]  ;;  %v4495_v61 = vld [vmem:[%s5178_s25 + $0xd4] sm:$0xf0]  ;;  %v4493_v62 = vld [vmem:[%s5178_s25 + $0xcc] sm:$0xf]  ;;  %v3446_v63 = vor.u32 %v4492_v55, %v3443_v56 }
  0x71   : > { %629 = vmatpush.bf16.msra.mxu0 %v3234_v24  ;;  %v3451_v0 = vld [vmem:[%s5178_s25 + $0xd8] sm:$0xf0]  ;;  %v3425_v1 = vld [vmem:[%s5178_s25 + $0xa0] sm:$0xf]  ;;  %v4490_v2 = vld [vmem:[%s5178_s25 + $0xac] sm:$0xf0]  ;;  %v3450_v5 = vor.u32 %v4495_v61, %v3449_v60 }
  0x72   : > { %658 = vmatpush.bf16.msra.mxu1 %v3238_v27  ;;  %687 = vmatpush.bf16.msra.mxu2 %v3242_v28  ;;  %v4488_v3 = vld [vmem:[%s5178_s25 + $0xa4] sm:$0xf]  ;;  %v3427_v4 = vld [vmem:[%s5178_s25 + $0xb0] sm:$0xf0]  ;;  %v3454_v6 = vor.u32 %v4493_v62, %v3451_v0  ;;  %v3426_v7 = vor.u32 %v4490_v2, %v3425_v1  ;;  %v3433_v8 = vld [vmem:[%s5178_s25 + $0xa8] sm:$0xf] }
  0x73   : > { %716 = vmatpush.bf16.msra.mxu3 %v3246_v32  ;;  %v4491_v9 = vld [vmem:[%s5178_s25 + $0xb4] sm:$0xf0]  ;;  %v4489_v10 = vld [vmem:[%s5178_s25 + $0xac] sm:$0xf]  ;;  %v3430_v11 = vor.u32 %v4488_v3, %v3427_v4  ;;  %v3435_v12 = vld [vmem:[%s5178_s25 + $0xb8] sm:$0xf0] }
  0x74   : > { %v3409_v13 = vld [vmem:[%s5178_s25 + $0x80] sm:$0xf]  ;;  %v4486_v14 = vld [vmem:[%s5178_s25 + $0x8c] sm:$0xf0]  ;;  %v4484_v15 = vld [vmem:[%s5178_s25 + $0x84] sm:$0xf]  ;;  %v3434_v17 = vor.u32 %v4491_v9, %v3433_v8  ;;  %v3438_v19 = vor.u32 %v4489_v10, %v3435_v12 }
  0x75   : > { %630 = vmatpush.bf16.msra.mxu0 %v3218_v39  ;;  %v3411_v16 = vld [vmem:[%s5178_s25 + $0x90] sm:$0xf0]  ;;  %v411_v18 = vld [vmem:[#allocation2 + $0x18] sm:$0xff]  ;;  %v3410_v20 = vor.u32 %v4486_v14, %v3409_v13  ;;  %v3417_v21 = vld [vmem:[%s5178_s25 + $0x88] sm:$0xf] }
  0x76   : > { %659 = vmatpush.bf16.msra.mxu1 %v3222_v43  ;;  %688 = vmatpush.bf16.msra.mxu2 %v3226_v44  ;;  %v4487_v22 = vld [vmem:[%s5178_s25 + $0x94] sm:$0xf0]  ;;  %v4485_v23 = vld [vmem:[%s5178_s25 + $0x8c] sm:$0xf]  ;;  %v3414_v24 = vor.u32 %v4484_v15, %v3411_v16  ;;  %v3419_v25 = vld [vmem:[%s5178_s25 + $0x98] sm:$0xf0] }
  0x77   : > { %717 = vmatpush.bf16.msra.mxu3 %v3230_v45  ;;  %v3393_v26 = vld [vmem:[%s5178_s25 + $0x60] sm:$0xf]  ;;  %v4482_v27 = vld [vmem:[%s5178_s25 + $0x6c] sm:$0xf0]  ;;  %v4480_v29 = vld [vmem:[%s5178_s25 + $0x64] sm:$0xf]  ;;  %v3418_v31 = vor.u32 %v4487_v22, %v3417_v21  ;;  %v3422_v32 = vor.u32 %v4485_v23, %v3419_v25 }
  0x78   : > { %631 = vmatmul.bf16.vlgmr.msra.gmra.mxu0 %v417_v50  ;;  %v412_v28 = vld [vmem:[#allocation2 + $0x10] sm:$0xff]  ;;  %v3394_v33 = vor.u32 %v4482_v27, %v3393_v26  ;;  %v3401_v34 = vld [vmem:[%s5178_s25 + $0x68] sm:$0xf]  ;;  %v4483_v35 = vld [vmem:[%s5178_s25 + $0x74] sm:$0xf0] }
  0x79   : > { %967 = vmatpush.bf16.msrb.mxu0 %v3458_v46  ;;  %660 = vmatmul.bf16.vlgmr.msra.gmra.mxu1 %v417_v50  ;;  %v3395_v30 = vld [vmem:[%s5178_s25 + $0x70] sm:$0xf0]  ;;  %v4481_v36 = vld [vmem:[%s5178_s25 + $0x6c] sm:$0xf]  ;;  %v418_v37 = vpack.c.bf16 %v412_v28, %v411_v18  ;;  %v3403_v39 = vld [vmem:[%s5178_s25 + $0x78] sm:$0xf0]  ;;  %v3402_v44 = vor.u32 %v4483_v35, %v3401_v34 }
  0x7a   : > { %980 = vmatpush.bf16.msrb.mxu1 %v3462_v51  ;;  %689 = vmatmul.bf16.vlgmr.msra.gmra.mxu2 %v417_v50  ;;  %v3398_v38 = vor.u32 %v4480_v29, %v3395_v30  ;;  %v3377_v40 = vld [vmem:[%s5178_s25 + $0x40] sm:$0xf]  ;;  %v4478_v41 = vld [vmem:[%s5178_s25 + $0x4c] sm:$0xf0]  ;;  %v4476_v42 = vld [vmem:[%s5178_s25 + $0x44] sm:$0xf]  ;;  %v3406_v45 = vor.u32 %v4481_v36, %v3403_v39 }
  0x7b   : > { %718 = vmatmul.bf16.vlgmr.msra.gmra.mxu3 %v417_v50  ;;  %993 = vmatpush.bf16.msrb.mxu2 %v3466_v57  ;;  %v3379_v43 = vld [vmem:[%s5178_s25 + $0x50] sm:$0xf0]  ;;  %v3378_v46 = vor.u32 %v4478_v41, %v3377_v40  ;;  %v3385_v47 = vld [vmem:[%s5178_s25 + $0x48] sm:$0xf]  ;;  %v4479_v48 = vld [vmem:[%s5178_s25 + $0x54] sm:$0xf0] }
  0x7c   : > { %1006 = vmatpush.bf16.msrb.mxu3 %v3470_v58  ;;  %v3382_v49 = vor.u32 %v4476_v42, %v3379_v43  ;;  %v4477_v50 = vld [vmem:[%s5178_s25 + $0x4c] sm:$0xf]  ;;  %v3387_v51 = vld [vmem:[%s5178_s25 + $0x58] sm:$0xf0]  ;;  %v3386_v52 = vor.u32 %v4479_v48, %v3385_v47  ;;  %v3361_v53 = vld [vmem:[%s5178_s25 + $0x20] sm:$0xf] }
  0x7d   : > { %968 = vmatpush.bf16.msrb.mxu0 %v3442_v59  ;;  %v4474_v54 = vld [vmem:[%s5178_s25 + $0x2c] sm:$0xf0]  ;;  %v4472_v55 = vld [vmem:[%s5178_s25 + $0x24] sm:$0xf]  ;;  %v3390_v56 = vor.u32 %v4477_v50, %v3387_v51  ;;  %v3363_v58 = vld [vmem:[%s5178_s25 + $0x30] sm:$0xf0] }
  0x7e   : > { %981 = vmatpush.bf16.msrb.mxu1 %v3446_v63  ;;  %v3362_v57 = vor.u32 %v4474_v54, %v3361_v53  ;;  %v3369_v59 = vld [vmem:[%s5178_s25 + $0x28] sm:$0xf]  ;;  %v4475_v60 = vld [vmem:[%s5178_s25 + $0x34] sm:$0xf0]  ;;  %v3366_v61 = vor.u32 %v4472_v55, %v3363_v58  ;;  %v4473_v62 = vld [vmem:[%s5178_s25 + $0x2c] sm:$0xf] }
  0x7f   : > { %994 = vmatpush.bf16.msrb.mxu2 %v3450_v5  ;;  %v3371_v63 = vld [vmem:[%s5178_s25 + $0x38] sm:$0xf0]  ;;  %v3345_v0 = vld [vmem:[%s5178_s25] sm:$0xf]  ;;  %v4470_v1 = vld [vmem:[%s5178_s25 + $0xc] sm:$0xf0]  ;;  %v3370_v4 = vor.u32 %v4475_v60, %v3369_v59 }
  0x80   : > { %1007 = vmatpush.bf16.msrb.mxu3 %v3454_v6  ;;  %v4468_v2 = vld [vmem:[%s5178_s25 + $0x4] sm:$0xf]  ;;  %v3347_v3 = vld [vmem:[%s5178_s25 + $0x10] sm:$0xf0]  ;;  %v3374_v5 = vor.u32 %v4473_v62, %v3371_v63  ;;  %v3346_v6 = vor.u32 %v4470_v1, %v3345_v0  ;;  %v4471_v8 = vld [vmem:[%s5178_s25 + $0x14] sm:$0xf0] }
  0x81   : > { %969 = vmatpush.bf16.msrb.mxu0 %v3426_v7  ;;  %v3353_v7 = vld [vmem:[%s5178_s25 + $0x8] sm:$0xf]  ;;  %v3350_v9 = vor.u32 %v4468_v2, %v3347_v3  ;;  %v4469_v10 = vld [vmem:[%s5178_s25 + $0xc] sm:$0xf]  ;;  %v414_v13 = vld [vmem:[#allocation2 + $0x20] sm:$0xff] }
  0x82   : > { %982 = vmatpush.bf16.msrb.mxu1 %v3430_v11  ;;  %v3355_v11 = vld [vmem:[%s5178_s25 + $0x18] sm:$0xf0]  ;;  %v413_v12 = vld [vmem:[#allocation2 + $0x8] sm:$0xff]  ;;  %v3354_v14 = vor.u32 %v4471_v8, %v3353_v7  ;;  %v453_v23 = vld [vmem:[%s5193_s19] sm:$0xf] }
  0x83   : > { %995 = vmatpush.bf16.msrb.mxu2 %v3434_v17  ;;  %v3358_v15 = vor.u32 %v4469_v10, %v3355_v11  ;;  %v419_v16 = vpack.c.bf16 %v414_v13, %v413_v12  ;;  %v415_v17 = vld [vmem:[#allocation2 + $0x28] sm:$0xff]  ;;  %v416_v18 = vld [vmem:[#allocation2 + $0x38] sm:$0xff]  ;;  %v5358_v26 = vperm.slane %v453_v23, 1  ;;  %v3585_v51 = vld [vmem:[%s5178_s25 + $0xe0] sm:$0xf] }
  0x84   : > { %1008 = vmatpush.bf16.msrb.mxu3 %v3438_v19  ;;  %v420_v19 = vpack.c.bf16 %v416_v18, %v415_v17  ;;  %v4528_v53 = vld [vmem:[%s5178_s25 + $0xe4] sm:$0xf]  ;;  %v3587_v58 = vld [vmem:[%s5178_s25 + $0xf0] sm:$0xf0]  ;;  %v3593_v59 = vld [vmem:[%s5178_s25 + $0xe8] sm:$0xf] }
  0x85   : > { %970 = vmatpush.bf16.msrb.mxu0 %v3410_v20  ;;  %v5021_v20 = vmov 0   ;;  %v4531_v60 = vld [vmem:[%s5178_s25 + $0xf4] sm:$0xf0]  ;;  %v3590_v0 = vor.u32 %v4528_v53, %v3587_v58  ;;  %v4529_v2 = vld [vmem:[%s5178_s25 + $0xec] sm:$0xf] }
  0x86   : > { %983 = vmatpush.bf16.msrb.mxu1 %v3414_v24  ;;  %v5354_v24 = vperm.slane %v453_v23, 0  ;;  %v3594_v1 = vor.u32 %v4531_v60, %v3593_v59  ;;  %v3595_v3 = vld [vmem:[%s5178_s25 + $0xf8] sm:$0xf0]  ;;  %v4526_v7 = vld [vmem:[%s5178_s25 + $0xcc] sm:$0xf0] }
  0x87   : > { %996 = vmatpush.bf16.msrb.mxu2 %v3418_v31  ;;  %v4524_v8 = vld [vmem:[%s5178_s25 + $0xc4] sm:$0xf]  ;;  %v3571_v10 = vld [vmem:[%s5178_s25 + $0xd0] sm:$0xf0]  ;;  %v3577_v11 = vld [vmem:[%s5178_s25 + $0xc8] sm:$0xf] }
  0x88   : > { %1009 = vmatpush.bf16.msrb.mxu3 %v3422_v32  ;;  %636 = vmatmul.bf16.gmra.mxu0 %v418_v37  ;;  %v5368_v32 = vperm.slane %v453_v23, 2  ;;  %v4527_v12 = vld [vmem:[%s5178_s25 + $0xd4] sm:$0xf0]  ;;  %v3574_v13 = vor.u32 %v4524_v8, %v3571_v10  ;;  %v3563_v53 = vld [vmem:[%s5178_s25 + $0xb8] sm:$0xf0] }
  0x89   : > { %971 = vmatpush.bf16.msrb.mxu0 %v3394_v33  ;;  %665 = vmatmul.bf16.gmra.mxu1 %v418_v37  ;;  %v5370_v33 = vperm.slane %v453_v23, 3  ;;  %v4520_v23 = vld [vmem:[%s5178_s25 + $0xa4] sm:$0xf]  ;;  %v4518_v58 = vld [vmem:[%s5178_s25 + $0x8c] sm:$0xf0] }
  0x8a   : > { %984 = vmatpush.bf16.msrb.mxu1 %v3398_v38  ;;  %694 = vmatmul.bf16.gmra.mxu2 %v418_v37  ;;  %v4516_v59 = vld [vmem:[%s5178_s25 + $0x84] sm:$0xf]  ;;  %v4514_v10 = vld [vmem:[%s5178_s25 + $0x6c] sm:$0xf0] }
  0x8b   : > { %723 = vmatmul.bf16.gmra.mxu3 %v418_v37  ;;  %997 = vmatpush.bf16.msrb.mxu2 %v3402_v44 }
  0x8c   : > { %1010 = vmatpush.bf16.msrb.mxu3 %v3406_v45 }
  0x8d   : > { %972 = vmatpush.bf16.msrb.mxu0 %v3378_v46 }
  0x8e   : > { %985 = vmatpush.bf16.msrb.mxu1 %v3382_v49 }
  0x8f   : > { %998 = vmatpush.bf16.msrb.mxu2 %v3386_v52  ;;  %v4530_v52 = vld [vmem:[%s5178_s25 + $0xec] sm:$0xf0] }
  0x90   : > { %1011 = vmatpush.bf16.msrb.mxu3 %v3390_v56 }
  0x91   : > { %973 = vmatpush.bf16.msrb.mxu0 %v3362_v57  ;;  %v3586_v57 = vor.u32 %v4530_v52, %v3585_v51  ;;  %v4521_v52 = vld [vmem:[%s5178_s25 + $0xac] sm:$0xf] }
  0x92   : > { %986 = vmatpush.bf16.msrb.mxu1 %v3366_v61 }
  0x93   : > { %999 = vmatpush.bf16.msrb.mxu2 %v3370_v4 }
  0x94   : > { %1012 = vmatpush.bf16.msrb.mxu3 %v3374_v5  ;;  %v3598_v5 = vor.u32 %v4529_v2, %v3595_v3 }
  0x95   : > { %974 = vmatpush.bf16.msrb.mxu0 %v3346_v6  ;;  %v3569_v6 = vld [vmem:[%s5178_s25 + $0xc0] sm:$0xf] }
  0x96   : > { %987 = vmatpush.bf16.msrb.mxu1 %v3350_v9  ;;  %v3570_v9 = vor.u32 %v4526_v7, %v3569_v6  ;;  %v3547_v6 = vld [vmem:[%s5178_s25 + $0x98] sm:$0xf0] }
  0x97   : > { %1000 = vmatpush.bf16.msrb.mxu2 %v3354_v14  ;;  %v3578_v14 = vor.u32 %v4527_v12, %v3577_v11  ;;  %v4512_v11 = vld [vmem:[%s5178_s25 + $0x64] sm:$0xf] }
  0x98   : > { %1013 = vmatpush.bf16.msrb.mxu3 %v3358_v15  ;;  %641 = vmatmul.bf16.gmra.mxu0 %v419_v16  ;;  %v4525_v15 = vld [vmem:[%s5178_s25 + $0xcc] sm:$0xf] }
  0x99   : > { %670 = vmatmul.bf16.gmra.mxu1 %v419_v16  ;;  %1239 = vmatpush.bf16.msra.mxu0 %v3586_v57  ;;  %v3537_v57 = vld [vmem:[%s5178_s25 + $0x80] sm:$0xf] }
  0x9a   : > { %699 = vmatmul.bf16.gmra.mxu2 %v419_v16  ;;  %1252 = vmatpush.bf16.msra.mxu1 %v3590_v0  ;;  %v3538_v60 = vor.u32 %v4518_v58, %v3537_v57  ;;  %v3545_v0 = vld [vmem:[%s5178_s25 + $0x88] sm:$0xf]  ;;  %v4511_v57 = vld [vmem:[%s5178_s25 + $0x54] sm:$0xf0] }
  0x9b   : > { %728 = vmatmul.bf16.gmra.mxu3 %v419_v16  ;;  %1265 = vmatpush.bf16.msra.mxu2 %v3594_v1  ;;  %v3579_v16 = vld [vmem:[%s5178_s25 + $0xd8] sm:$0xf0]  ;;  %v4519_v1 = vld [vmem:[%s5178_s25 + $0x94] sm:$0xf0] }
  0x9c   : > { %1278 = vmatpush.bf16.msra.mxu3 %v3598_v5  ;;  %v3582_v17 = vor.u32 %v4525_v15, %v3579_v16  ;;  %v3546_v3 = vor.u32 %v4519_v1, %v3545_v0  ;;  %v4517_v5 = vld [vmem:[%s5178_s25 + $0x8c] sm:$0xf]  ;;  %v3523_v16 = vld [vmem:[%s5178_s25 + $0x70] sm:$0xf0] }
  0x9d   : > { %1240 = vmatpush.bf16.msra.mxu0 %v3570_v9  ;;  %v3550_v7 = vor.u32 %v4517_v5, %v3547_v6  ;;  %v3521_v9 = vld [vmem:[%s5178_s25 + $0x60] sm:$0xf]  ;;  %v4504_v5 = vld [vmem:[%s5178_s25 + $0x24] sm:$0xf] }
  0x9e   : > { %1253 = vmatpush.bf16.msra.mxu1 %v3574_v13  ;;  %v3522_v15 = vor.u32 %v4514_v10, %v3521_v9  ;;  %v3491_v10 = vld [vmem:[%s5178_s25 + $0x30] sm:$0xf0] }
  0x9f   : > { %1266 = vmatpush.bf16.msra.mxu2 %v3578_v14 }
  0xa0   : > { %1279 = vmatpush.bf16.msra.mxu3 %v3582_v17  ;;  %v3529_v17 = vld [vmem:[%s5178_s25 + $0x68] sm:$0xf] }
  0xa8   : > { %646 = vmatmul.bf16.gmra.mxu0 %v420_v19 }
  0xa9   : > { %675 = vmatmul.bf16.gmra.mxu1 %v420_v19 }
  0xaa   : > { %704 = vmatmul.bf16.gmra.mxu2 %v420_v19 }
  0xab   : > { %733 = vmatmul.bf16.gmra.mxu3 %v420_v19  ;;  %v3553_v19 = vld [vmem:[%s5178_s25 + $0xa0] sm:$0xf] }
  0xb8   : > { %975 = vmatmul.bf16.vlgmr.msrb.gmra.mxu0 %v5021_v20 }
  0xb9   : > { %988 = vmatmul.bf16.vlgmr.msrb.gmra.mxu1 %v5021_v20 }
  0xba   : > { %1001 = vmatmul.bf16.vlgmr.msrb.gmra.mxu2 %v5021_v20 }
  0xbb   : > { %1014 = vmatmul.bf16.vlgmr.msrb.gmra.mxu3 %v5021_v20  ;;  %v4522_v20 = vld [vmem:[%s5178_s25 + $0xac] sm:$0xf0] }
  0xf5   : > { %v5349_v21 = vpop.f32.mrf.mxu0 }
  0xf6   : > { %v5351_v22 = vpop.f32.mrf.mxu1 }
  0xfd   : > { %v5356_v25 = vpop.f32.mrf.mxu2  ;;  %v634_v28 = vpop.f32.mrf.mxu0 }
  0xfe   : > { %v5360_v27 = vpop.f32.mrf.mxu3  ;;  %v5363_v29 = vadd.f32 %v634_v28, %v5354_v24  ;;  %v663_v30 = vpop.f32.mrf.mxu1 }
  0xff   : > { %v5366_v31 = vadd.f32 %v663_v30, %v5358_v26 }
 0x105   : > { %v692_v34 = vpop.f32.mrf.mxu2  ;;  %v637_v37 = vpop.f32.mrf.mxu0 }
 0x106   : > { %v5373_v35 = vadd.f32 %v692_v34, %v5368_v32  ;;  %v721_v36 = vpop.f32.mrf.mxu3  ;;  %v5379_v39 = vadd.f32 %v637_v37, %v5354_v24  ;;  %v666_v40 = vpop.f32.mrf.mxu1  ;;  %v3555_v37 = vld [vmem:[%s5178_s25 + $0xb0] sm:$0xf0] }
 0x107   : > { %v5376_v38 = vadd.f32 %v721_v36, %v5370_v33  ;;  %v5382_v41 = vadd.f32 %v666_v40, %v5358_v26  ;;  %v3554_v36 = vor.u32 %v4522_v20, %v3553_v19  ;;  %v3561_v40 = vld [vmem:[%s5178_s25 + $0xa8] sm:$0xf] }
 0x109   : > { %1241 = vmatpush.bf16.msra.mxu0 %v3554_v36  ;;  %v4513_v36 = vld [vmem:[%s5178_s25 + $0x6c] sm:$0xf] }
 0x10d   : > { %v695_v42 = vpop.f32.mrf.mxu2  ;;  %v639_v45 = vpop.f32.mrf.mxu0  ;;  %1242 = vmatpush.bf16.msra.mxu0 %v3538_v60  ;;  %v4509_v60 = vld [vmem:[%s5178_s25 + $0x4c] sm:$0xf] }
 0x10e   : > { %v5385_v43 = vadd.f32 %v695_v42, %v5368_v32  ;;  %v724_v44 = vpop.f32.mrf.mxu3  ;;  %v5391_v47 = vadd.f32 %v639_v45, %v5354_v24  ;;  %v668_v48 = vpop.f32.mrf.mxu1  ;;  %v4523_v42 = vld [vmem:[%s5178_s25 + $0xb4] sm:$0xf0] }
 0x10f   : > { %v5388_v46 = vadd.f32 %v724_v44, %v5370_v33  ;;  %v5394_v49 = vadd.f32 %v668_v48, %v5358_v26  ;;  %v3562_v51 = vor.u32 %v4523_v42, %v3561_v40 }
 0x111   : > { %1267 = vmatpush.bf16.msra.mxu2 %v3562_v51  ;;  %1243 = vmatpush.bf16.msra.mxu0 %v3522_v15  ;;  %v4508_v51 = vld [vmem:[%s5178_s25 + $0x44] sm:$0xf] }
 0x115   : > { %v697_v50 = vpop.f32.mrf.mxu2  ;;  %v642_v56 = vpop.f32.mrf.mxu0  ;;  %1268 = vmatpush.bf16.msra.mxu2 %v3546_v3  ;;  %v4506_v3 = vld [vmem:[%s5178_s25 + $0x2c] sm:$0xf0] }
 0x116   : > { %v5400_v54 = vadd.f32 %v697_v50, %v5368_v32  ;;  %v726_v55 = vpop.f32.mrf.mxu3  ;;  %v5409_v62 = vadd.f32 %v642_v56, %v5354_v24  ;;  %v671_v63 = vpop.f32.mrf.mxu1  ;;  %v3558_v50 = vor.u32 %v4520_v23, %v3555_v37  ;;  %v3566_v56 = vor.u32 %v4521_v52, %v3563_v53  ;;  %v3531_v37 = vld [vmem:[%s5178_s25 + $0x78] sm:$0xf0]  ;;  %v3507_v53 = vld [vmem:[%s5178_s25 + $0x50] sm:$0xf0] }
 0x117   : > { %v5406_v61 = vadd.f32 %v726_v55, %v5370_v33  ;;  %v5414_v4 = vadd.f32 %v671_v63, %v5358_v26  ;;  %v3539_v63 = vld [vmem:[%s5178_s25 + $0x90] sm:$0xf0]  ;;  %v3534_v42 = vor.u32 %v4513_v36, %v3531_v37  ;;  %v3510_v58 = vor.u32 %v4508_v51, %v3507_v53  ;;  %v3473_v37 = vld [vmem:[%s5178_s25] sm:$0xf]  ;;  %v4503_v53 = vld [vmem:[%s5178_s25 + $0x14] sm:$0xf0] }
 0x118   : > { %1254 = vmatpush.bf16.msra.mxu1 %v3558_v50  ;;  %1280 = vmatpush.bf16.msra.mxu3 %v3566_v56  ;;  %v3542_v2 = vor.u32 %v4516_v59, %v3539_v63  ;;  %v4510_v50 = vld [vmem:[%s5178_s25 + $0x4c] sm:$0xf0]  ;;  %v3513_v56 = vld [vmem:[%s5178_s25 + $0x48] sm:$0xf]  ;;  %v3515_v63 = vld [vmem:[%s5178_s25 + $0x58] sm:$0xf0] }
 0x119   : > { %v3514_v59 = vor.u32 %v4511_v57, %v3513_v56  ;;  %v3518_v0 = vor.u32 %v4509_v60, %v3515_v63  ;;  %v3475_v51 = vld [vmem:[%s5178_s25 + $0x10] sm:$0xf0]  ;;  %v633_v63 = vadd.f32 %v5349_v21, %v5354_v24 }
 0x11c   : > { %1255 = vmatpush.bf16.msra.mxu1 %v3542_v2  ;;  %1281 = vmatpush.bf16.msra.mxu3 %v3550_v7  ;;  %v3489_v2 = vld [vmem:[%s5178_s25 + $0x20] sm:$0xf] }
 0x11d   : > { %v700_v18 = vpop.f32.mrf.mxu2  ;;  %v644_v34 = vpop.f32.mrf.mxu0  ;;  %v3490_v9 = vor.u32 %v4506_v3, %v3489_v2 }
 0x11e   : > { %v5428_v28 = vadd.f32 %v700_v18, %v5368_v32  ;;  %v729_v30 = vpop.f32.mrf.mxu3  ;;  %v5437_v45 = vadd.f32 %v644_v34, %v5354_v24  ;;  %v673_v48 = vpop.f32.mrf.mxu1  ;;  %v4515_v18 = vld [vmem:[%s5178_s25 + $0x74] sm:$0xf0] }
 0x11f   : > { %v5434_v44 = vadd.f32 %v729_v30, %v5370_v33  ;;  %v5442_v55 = vadd.f32 %v673_v48, %v5358_v26  ;;  %v3526_v30 = vor.u32 %v4512_v11, %v3523_v16  ;;  %v3530_v34 = vor.u32 %v4515_v18, %v3529_v17  ;;  %v3505_v48 = vld [vmem:[%s5178_s25 + $0x40] sm:$0xf]  ;;  %v3497_v11 = vld [vmem:[%s5178_s25 + $0x28] sm:$0xf] }
 0x120   : > { %1282 = vmatpush.bf16.msra.mxu3 %v3534_v42  ;;  %v3506_v52 = vor.u32 %v4510_v50, %v3505_v48  ;;  %v3494_v17 = vor.u32 %v4504_v5, %v3491_v10  ;;  %v4502_v42 = vld [vmem:[%s5178_s25 + $0xc] sm:$0xf0]  ;;  %v4500_v48 = vld [vmem:[%s5178_s25 + $0x4] sm:$0xf] }
 0x121   : > { %1256 = vmatpush.bf16.msra.mxu1 %v3526_v30  ;;  %1269 = vmatpush.bf16.msra.mxu2 %v3530_v34  ;;  %v3499_v30 = vld [vmem:[%s5178_s25 + $0x38] sm:$0xf0]  ;;  %v3474_v50 = vor.u32 %v4502_v42, %v3473_v37  ;;  %v3478_v56 = vor.u32 %v4500_v48, %v3475_v51 }
 0x122   : > { %1244 = vmatpush.bf16.msra.mxu0 %v3506_v52  ;;  %v3481_v52 = vld [vmem:[%s5178_s25 + $0x8] sm:$0xf] }
 0x123   : > { %v3482_v57 = vor.u32 %v4503_v53, %v3481_v52 }
 0x124   : > { %1283 = vmatpush.bf16.msra.mxu3 %v3518_v0 }
 0x125   : > { %v702_v8 = vpop.f32.mrf.mxu2  ;;  %v647_v14 = vpop.f32.mrf.mxu0  ;;  %1257 = vmatpush.bf16.msra.mxu1 %v3510_v58  ;;  %1270 = vmatpush.bf16.msra.mxu2 %v3514_v59  ;;  %v4501_v58 = vld [vmem:[%s5178_s25 + $0xc] sm:$0xf]  ;;  %v3483_v59 = vld [vmem:[%s5178_s25 + $0x18] sm:$0xf0] }
 0x126   : > { %v5456_v12 = vadd.f32 %v702_v8, %v5368_v32  ;;  %v731_v13 = vpop.f32.mrf.mxu3  ;;  %v5465_v20 = vadd.f32 %v647_v14, %v5354_v24  ;;  %v676_v23 = vpop.f32.mrf.mxu1  ;;  %1245 = vmatpush.bf16.msra.mxu0 %v3490_v9  ;;  %v3486_v60 = vor.u32 %v4501_v58, %v3483_v59 }
 0x127   : > { %v5462_v19 = vadd.f32 %v731_v13, %v5370_v33  ;;  %v5470_v40 = vadd.f32 %v676_v23, %v5358_v26  ;;  %v4507_v13 = vld [vmem:[%s5178_s25 + $0x34] sm:$0xf0]  ;;  %v4505_v23 = vld [vmem:[%s5178_s25 + $0x2c] sm:$0xf] }
 0x128   : > { %v3498_v18 = vor.u32 %v4507_v13, %v3497_v11  ;;  %v3502_v36 = vor.u32 %v4505_v23, %v3499_v30 }
 0x129   : > { %1258 = vmatpush.bf16.msra.mxu1 %v3494_v17 }
 0x12a   : > { %1271 = vmatpush.bf16.msra.mxu2 %v3498_v18  ;;  %1284 = vmatpush.bf16.msra.mxu3 %v3502_v36 }
 0x12b   : > { %1246 = vmatpush.bf16.msra.mxu0 %v3474_v50 }
 0x12d   : > { %v705_v1 = vpop.f32.mrf.mxu2  ;;  %v649_v8 = vpop.f32.mrf.mxu0  ;;  %1259 = vmatpush.bf16.msra.mxu1 %v3478_v56 }
 0x12e   : > { %v5484_v6 = vadd.f32 %v705_v1, %v5368_v32  ;;  %v734_v7 = vpop.f32.mrf.mxu3  ;;  %v5493_v15 = vadd.f32 %v649_v8, %v5354_v24  ;;  %v678_v16 = vpop.f32.mrf.mxu1  ;;  %1272 = vmatpush.bf16.msra.mxu2 %v3482_v57  ;;  %v662_v1 = vadd.f32 %v5351_v22, %v5358_v26  ;;  %1285 = vmatpush.bf16.msra.mxu3 %v3486_v60 }
 0x12f   : > { %v5490_v14 = vadd.f32 %v734_v7, %v5370_v33  ;;  %v5498_v34 = vadd.f32 %v678_v16, %v5358_v26  ;;  %v691_v24 = vadd.f32 %v5356_v25, %v5368_v32  ;;  %v720_v22 = vadd.f32 %v5360_v27, %v5370_v33 }
 0x135   : > { %v707_v0 = vpop.f32.mrf.mxu2  ;;  %v976_v5 = vpop.f32.mrf.mxu0 }
 0x136   : > { %v5513_v2 = vadd.f32 %v707_v0, %v5368_v32  ;;  %v736_v3 = vpop.f32.mrf.mxu3  ;;  %v1019_v8 = vadd.f32 %v976_v5, %v633_v63  ;;  %v989_v9 = vpop.f32.mrf.mxu1  ;;  %v3713_v0 = vld [vmem:[%s5178_s25 + $0xe0] sm:$0xf] }
 0x137   : > { %v5516_v7 = vadd.f32 %v736_v3, %v5370_v33  ;;  %v1020_v10 = vadd.f32 %v989_v9, %v662_v1  ;;  %v4562_v1 = vld [vmem:[%s5178_s25 + $0xec] sm:$0xf0]  ;;  %v4560_v3 = vld [vmem:[%s5178_s25 + $0xe4] sm:$0xf]  ;;  %v3721_v9 = vld [vmem:[%s5178_s25 + $0xe8] sm:$0xf] }
 0x138   : > { %v1023_v11 = vmul.f32 0.5, %v1019_v8  ;;  %v3714_v5 = vor.u32 %v4562_v1, %v3713_v0  ;;  %v3715_v8 = vld [vmem:[%s5178_s25 + $0xf0] sm:$0xf0]  ;;  %v3665_v1 = vld [vmem:[%s5178_s25 + $0x80] sm:$0xf] }
 0x139   : > { %v1027_v21 = vmul.f32 0.5, %v1020_v10  ;;  %v4563_v10 = vld [vmem:[%s5178_s25 + $0xf4] sm:$0xf0] }
 0x13a   : > { %4800 = vtanh.f32 %v1023_v11  ;;  %v3718_v11 = vor.u32 %v4560_v3, %v3715_v8  ;;  %1511 = vmatpush.bf16.msrb.mxu0 %v3714_v5  ;;  %v4550_v3 = vld [vmem:[%s5178_s25 + $0x8c] sm:$0xf0]  ;;  %v4548_v5 = vld [vmem:[%s5178_s25 + $0x84] sm:$0xf] }
 0x13b   : > { %4802 = vtanh.f32 %v1027_v21  ;;  %v3722_v21 = vor.u32 %v4563_v10, %v3721_v9  ;;  %v3666_v8 = vor.u32 %v4550_v3, %v3665_v1  ;;  %v3667_v9 = vld [vmem:[%s5178_s25 + $0x90] sm:$0xf0]  ;;  %v3673_v10 = vld [vmem:[%s5178_s25 + $0x88] sm:$0xf]  ;;  %v3617_v3 = vld [vmem:[%s5178_s25 + $0x20] sm:$0xf] }
 0x13c   : > { %1524 = vmatpush.bf16.msrb.mxu1 %v3718_v11  ;;  %v4551_v11 = vld [vmem:[%s5178_s25 + $0x94] sm:$0xf0] }
 0x13d   : > { %v1002_v26 = vpop.f32.mrf.mxu2  ;;  %v978_v17 = vpop.f32.mrf.mxu0  ;;  %1537 = vmatpush.bf16.msrb.mxu2 %v3722_v21  ;;  %v3670_v21 = vor.u32 %v4548_v5, %v3667_v9  ;;  %v4538_v5 = vld [vmem:[%s5178_s25 + $0x2c] sm:$0xf0] }
 0x13e   : > { %v1021_v13 = vadd.f32 %v1002_v26, %v691_v24  ;;  %v1015_v16 = vpop.f32.mrf.mxu3  ;;  %v991_v23 = vpop.f32.mrf.mxu1  ;;  %v4561_v24 = vld [vmem:[%s5178_s25 + $0xec] sm:$0xf]  ;;  %v4556_v17 = vld [vmem:[%s5178_s25 + $0xc4] sm:$0xf]  ;;  %v3618_v9 = vor.u32 %v4538_v5, %v3617_v3 }
 0x13f   : > { %v1022_v18 = vadd.f32 %v1015_v16, %v720_v22  ;;  %v3723_v22 = vld [vmem:[%s5178_s25 + $0xf8] sm:$0xf0]  ;;  %v4558_v16 = vld [vmem:[%s5178_s25 + $0xcc] sm:$0xf0]  ;;  %v3699_v23 = vld [vmem:[%s5178_s25 + $0xd0] sm:$0xf0] }
 0x140   : > { %4804 = vtanh.f32 %v1021_v13  ;;  %v4801_v30 = vpop.eup %4800  ;;  %v3726_v26 = vor.u32 %v4561_v24, %v3723_v22  ;;  %v3697_v13 = vld [vmem:[%s5178_s25 + $0xc0] sm:$0xf]  ;;  %v3674_v24 = vor.u32 %v4551_v11, %v3673_v10  ;;  %v4549_v22 = vld [vmem:[%s5178_s25 + $0x8c] sm:$0xf]  ;;  %v3619_v10 = vld [vmem:[%s5178_s25 + $0x30] sm:$0xf0] }
 0x141   : > { %v1032_v36 = vmul.f32 0.5, %v1022_v18  ;;  %v4803_v37 = vpop.eup %4802  ;;  %v1025_v42 = vmul.f32 0.5, %v4801_v30  ;;  %v3698_v18 = vor.u32 %v4558_v16, %v3697_v13  ;;  %v3705_v30 = vld [vmem:[%s5178_s25 + $0xc8] sm:$0xf]  ;;  %v3649_v16 = vld [vmem:[%s5178_s25 + $0x60] sm:$0xf] }
 0x142   : > { %v1029_v48 = vmul.f32 0.5, %v4803_v37  ;;  %1550 = vmatpush.bf16.msrb.mxu3 %v3726_v26  ;;  %v3702_v37 = vor.u32 %v4556_v17, %v3699_v23  ;;  %v3675_v26 = vld [vmem:[%s5178_s25 + $0x98] sm:$0xf0]  ;;  %v4546_v17 = vld [vmem:[%s5178_s25 + $0x6c] sm:$0xf0] }
 0x143   : > { %4806 = vtanh.f32 %v1032_v36  ;;  %v1026_v50 = vadd.f32 0.5, %v1025_v42  ;;  %v4559_v36 = vld [vmem:[%s5178_s25 + $0xd4] sm:$0xf0]  ;;  %1512 = vmatpush.bf16.msrb.mxu0 %v3698_v18  ;;  %v3678_v13 = vor.u32 %v4549_v22, %v3675_v26  ;;  %v4544_v18 = vld [vmem:[%s5178_s25 + $0x64] sm:$0xf]  ;;  %v3650_v23 = vor.u32 %v4546_v17, %v3649_v16 }
 0x144   : > { %v1030_v51 = vadd.f32 0.5, %v1029_v48  ;;  %v3706_v42 = vor.u32 %v4559_v36, %v3705_v30  ;;  %v4557_v48 = vld [vmem:[%s5178_s25 + $0xcc] sm:$0xf]  ;;  %1525 = vmatpush.bf16.msrb.mxu1 %v3702_v37  ;;  %v3651_v30 = vld [vmem:[%s5178_s25 + $0x70] sm:$0xf0] }
 0x145   : > { %v1004_v25 = vpop.f32.mrf.mxu2  ;;  %v3657_v36 = vld [vmem:[%s5178_s25 + $0x68] sm:$0xf]  ;;  %v4547_v37 = vld [vmem:[%s5178_s25 + $0x74] sm:$0xf0]  ;;  %v4537_v26 = vld [vmem:[%s5178_s25 + $0x2c] sm:$0xf] }
 0x146   : > { %v4805_v32 = vpop.eup %4804  ;;  %v1017_v52 = vpop.f32.mrf.mxu3  ;;  %v1036_v27 = vmul.f32 0.0, %v1030_v51  ;;  %1538 = vmatpush.bf16.msrb.mxu2 %v3706_v42  ;;  %v3681_v25 = vld [vmem:[%s5178_s25 + $0xa0] sm:$0xf]  ;;  %v3654_v42 = vor.u32 %v4544_v18, %v3651_v30  ;;  %v3625_v11 = vld [vmem:[%s5178_s25 + $0x28] sm:$0xf] }
 0x147   : > { %v1037_v33 = vmul.f32 %v4805_v32, %v1026_v50  ;;  %v3707_v50 = vld [vmem:[%s5178_s25 + $0xd8] sm:$0xf0]  ;;  %v4554_v32 = vld [vmem:[%s5178_s25 + $0xac] sm:$0xf0]  ;;  %v4552_v52 = vld [vmem:[%s5178_s25 + $0xa4] sm:$0xf] }
 0x148   : > { %v3710_v51 = vor.u32 %v4557_v48, %v3707_v50  ;;  %v3658_v48 = vor.u32 %v4547_v37, %v3657_v36  ;;  %v4545_v50 = vld [vmem:[%s5178_s25 + $0x6c] sm:$0xf]  ;;  %v3601_v17 = vld [vmem:[%s5178_s25] sm:$0xf]  ;;  %v4534_v18 = vld [vmem:[%s5178_s25 + $0xc] sm:$0xf0] }
 0x149   : > { %v4807_v53 = vpop.eup %4806  ;;  %v5522_v56 = vadd.f32 %v1037_v33, %v1036_v27  ;;  %v3682_v27 = vor.u32 %v4554_v32, %v3681_v25  ;;  %v3683_v33 = vld [vmem:[%s5178_s25 + $0xb0] sm:$0xf0]  ;;  %v3633_v32 = vld [vmem:[%s5178_s25 + $0x40] sm:$0xf]  ;;  %v3602_v30 = vor.u32 %v4534_v18, %v3601_v17  ;;  %v3609_v37 = vld [vmem:[%s5178_s25 + $0x8] sm:$0xf] }
 0x14a   : > { %v1034_v57 = vmul.f32 0.5, %v4807_v53  ;;  %1551 = vmatpush.bf16.msrb.mxu3 %v3710_v51  ;;  %v3689_v53 = vld [vmem:[%s5178_s25 + $0xa8] sm:$0xf]  ;;  %v3659_v51 = vld [vmem:[%s5178_s25 + $0x78] sm:$0xf0] }
 0x14b   : > { %4808 = vtanh.f32 %v5522_v56  ;;  %1513 = vmatpush.bf16.msrb.mxu0 %v3682_v27  ;;  %v3662_v25 = vor.u32 %v4545_v50, %v3659_v51  ;;  %v4540_v27 = vld [vmem:[%s5178_s25 + $0x44] sm:$0xf]  ;;  %v3603_v36 = vld [vmem:[%s5178_s25 + $0x10] sm:$0xf0]  ;;  %v4533_v51 = vld [vmem:[%s5178_s25 + $0xc] sm:$0xf] }
 0x14c   : > { %v1035_v58 = vadd.f32 0.5, %v1034_v57  ;;  %v4555_v57 = vld [vmem:[%s5178_s25 + $0xb4] sm:$0xf0] }
 0x14f   : > { %1514 = vmatpush.bf16.msrb.mxu0 %v3666_v8  ;;  %v4536_v8 = vld [vmem:[%s5178_s25 + $0x24] sm:$0xf] }
 0x151   : > { %v4809_v59 = vpop.eup %4808 }
 0x152   : > { %v1040_v60 = vmul.f32 %v4809_v59, %v1035_v58  ;;  %v3686_v58 = vor.u32 %v4552_v52, %v3683_v33  ;;  %v3690_v59 = vor.u32 %v4555_v57, %v3689_v53  ;;  %v4542_v52 = vld [vmem:[%s5178_s25 + $0x4c] sm:$0xf0]  ;;  %v3635_v53 = vld [vmem:[%s5178_s25 + $0x50] sm:$0xf0]  ;;  %v3641_v57 = vld [vmem:[%s5178_s25 + $0x48] sm:$0xf] }
 0x153   : > { %1515 = vmatpush.bf16.msrb.mxu0 %v3650_v23  ;;  %v3634_v33 = vor.u32 %v4542_v52, %v3633_v32  ;;  %v4532_v23 = vld [vmem:[%s5178_s25 + $0x4] sm:$0xf] }
 0x154   : > { %1041 = vst [vmem:[#allocation2 + $0x30] sm:$0xff] %v1040_v60  ;;  %v1046_v63 = vpack.c.bf16 %v1040_v60, %v1040_v60  ;;  %v4553_v60 = vld [vmem:[%s5178_s25 + $0xac] sm:$0xf]  ;;  %1526 = vmatpush.bf16.msrb.mxu1 %v3686_v58  ;;  %1539 = vmatpush.bf16.msrb.mxu2 %v3690_v59  ;;  %v4543_v58 = vld [vmem:[%s5178_s25 + $0x54] sm:$0xf0]  ;;  %v3638_v59 = vor.u32 %v4540_v27, %v3635_v53 }
 0x156   : > { %1247 = vmatmul.bf16.vlgmr.msra.gmra.mxu0 %v1046_v63  ;;  %1260 = vmatmul.bf16.vlgmr.msra.gmra.mxu1 %v1046_v63 }
 0x157   : > { %1273 = vmatmul.bf16.vlgmr.msra.gmra.mxu2 %v1046_v63  ;;  %1286 = vmatmul.bf16.vlgmr.msra.gmra.mxu3 %v1046_v63  ;;  %v3691_v63 = vld [vmem:[%s5178_s25 + $0xb8] sm:$0xf0] }
 0x158   : > { %v3694_v0 = vor.u32 %v4553_v60, %v3691_v63  ;;  %1527 = vmatpush.bf16.msrb.mxu1 %v3670_v21  ;;  %1540 = vmatpush.bf16.msrb.mxu2 %v3674_v24  ;;  %v3642_v60 = vor.u32 %v4543_v58, %v3641_v57  ;;  %v4541_v63 = vld [vmem:[%s5178_s25 + $0x4c] sm:$0xf]  ;;  %v4539_v21 = vld [vmem:[%s5178_s25 + $0x34] sm:$0xf0]  ;;  %v3622_v24 = vor.u32 %v4536_v8, %v3619_v10 }
 0x159   : > { %1516 = vmatpush.bf16.msrb.mxu0 %v3634_v33  ;;  %v3626_v22 = vor.u32 %v4539_v21, %v3625_v11 }
 0x15a   : > { %1552 = vmatpush.bf16.msrb.mxu3 %v3694_v0  ;;  %v3643_v0 = vld [vmem:[%s5178_s25 + $0x58] sm:$0xf0] }
 0x15b   : > { %v3646_v1 = vor.u32 %v4541_v63, %v3643_v0 }
 0x15c   : > { %1528 = vmatpush.bf16.msrb.mxu1 %v3654_v42  ;;  %1541 = vmatpush.bf16.msrb.mxu2 %v3658_v48  ;;  %v4535_v42 = vld [vmem:[%s5178_s25 + $0x14] sm:$0xf0]  ;;  %v3606_v48 = vor.u32 %v4532_v23, %v3603_v36  ;;  %v4594_v36 = vld [vmem:[%s5178_s25 + $0xec] sm:$0xf0] }
 0x15d   : > { %1517 = vmatpush.bf16.msrb.mxu0 %v3618_v9  ;;  %v3610_v50 = vor.u32 %v4535_v42, %v3609_v37  ;;  %v4592_v37 = vld [vmem:[%s5178_s25 + $0xe4] sm:$0xf] }
 0x15e   : > { %1553 = vmatpush.bf16.msrb.mxu3 %v3678_v13  ;;  %v3627_v13 = vld [vmem:[%s5178_s25 + $0x38] sm:$0xf0] }
 0x15f   : > { %v3630_v16 = vor.u32 %v4537_v26, %v3627_v13 }
 0x160   : > { %1529 = vmatpush.bf16.msrb.mxu1 %v3638_v59  ;;  %1542 = vmatpush.bf16.msrb.mxu2 %v3642_v60 }
 0x161   : > { %1518 = vmatpush.bf16.msrb.mxu0 %v3602_v30 }
 0x162   : > { %1554 = vmatpush.bf16.msrb.mxu3 %v3662_v25  ;;  %v3611_v25 = vld [vmem:[%s5178_s25 + $0x18] sm:$0xf0] }
 0x163   : > { %v3614_v32 = vor.u32 %v4533_v51, %v3611_v25  ;;  %v4595_v51 = vld [vmem:[%s5178_s25 + $0xf4] sm:$0xf0] }
 0x164   : > { %1530 = vmatpush.bf16.msrb.mxu1 %v3622_v24  ;;  %1543 = vmatpush.bf16.msrb.mxu2 %v3626_v22 }
 0x166   : > { %1555 = vmatpush.bf16.msrb.mxu3 %v3646_v1 }
 0x168   : > { %1531 = vmatpush.bf16.msrb.mxu1 %v3606_v48  ;;  %1544 = vmatpush.bf16.msrb.mxu2 %v3610_v50  ;;  %v3843_v48 = vld [vmem:[%s5178_s25 + $0xf0] sm:$0xf0]  ;;  %v3849_v50 = vld [vmem:[%s5178_s25 + $0xe8] sm:$0xf] }
 0x169   : > { %v3846_v25 = vor.u32 %v4592_v37, %v3843_v48  ;;  %v3801_v37 = vld [vmem:[%s5178_s25 + $0x88] sm:$0xf] }
 0x16a   : > { %1556 = vmatpush.bf16.msrb.mxu3 %v3630_v16 }
 0x16c   : > { %1796 = vmatpush.bf16.msra.mxu1 %v3846_v25  ;;  %v3803_v25 = vld [vmem:[%s5178_s25 + $0x98] sm:$0xf0] }
 0x16e   : > { %1557 = vmatpush.bf16.msrb.mxu3 %v3614_v32  ;;  %v3850_v32 = vor.u32 %v4595_v51, %v3849_v50  ;;  %v4581_v51 = vld [vmem:[%s5178_s25 + $0x8c] sm:$0xf] }
 0x170   : > { %1809 = vmatpush.bf16.msra.mxu2 %v3850_v32  ;;  %v3806_v32 = vor.u32 %v4581_v51, %v3803_v25  ;;  %v3729_v51 = vld [vmem:[%s5178_s25] sm:$0xf]  ;;  %v4566_v25 = vld [vmem:[%s5178_s25 + $0xc] sm:$0xf0] }
 0x1d3   : > { %v1248_v52 = vpop.f32.mrf.mxu0  ;;  %v1261_v27 = vpop.f32.mrf.mxu1 }
 0x1d4   : > { %v1291_v33 = vadd.f32 %v1248_v52, %v5363_v29  ;;  %v1292_v53 = vadd.f32 %v1261_v27, %v5366_v31  ;;  %v4593_v52 = vld [vmem:[%s5178_s25 + $0xec] sm:$0xf]  ;;  %v3851_v27 = vld [vmem:[%s5178_s25 + $0xf8] sm:$0xf0] }
 0x1d6   : > { %v1295_v57 = vmul.f32 0.5, %v1291_v33  ;;  %v1299_v58 = vmul.f32 0.5, %v1292_v53  ;;  %v3854_v33 = vor.u32 %v4593_v52, %v3851_v27  ;;  %v3825_v53 = vld [vmem:[%s5178_s25 + $0xc0] sm:$0xf]  ;;  %v4578_v27 = vld [vmem:[%s5178_s25 + $0x6c] sm:$0xf0] }
 0x1d7   : > { %v3777_v52 = vld [vmem:[%s5178_s25 + $0x60] sm:$0xf] }
 0x1d8   : > { %4810 = vtanh.f32 %v1295_v57  ;;  %v4590_v57 = vld [vmem:[%s5178_s25 + $0xcc] sm:$0xf0]  ;;  %1822 = vmatpush.bf16.msra.mxu3 %v3854_v33  ;;  %v4576_v33 = vld [vmem:[%s5178_s25 + $0x64] sm:$0xf] }
 0x1d9   : > { %4812 = vtanh.f32 %v1299_v58  ;;  %v4588_v58 = vld [vmem:[%s5178_s25 + $0xc4] sm:$0xf] }
 0x1da   : > { %v1274_v59 = vpop.f32.mrf.mxu2  ;;  %v1287_v60 = vpop.f32.mrf.mxu3 }
 0x1db   : > { %v1293_v63 = vadd.f32 %v1274_v59, %v5373_v35  ;;  %v1294_v0 = vadd.f32 %v1287_v60, %v5376_v38  ;;  %v1250_v1 = vpop.f32.mrf.mxu0  ;;  %v1263_v3 = vpop.f32.mrf.mxu1  ;;  %v3826_v59 = vor.u32 %v4590_v57, %v3825_v53  ;;  %v3827_v60 = vld [vmem:[%s5178_s25 + $0xd0] sm:$0xf0]  ;;  %v3778_v53 = vor.u32 %v4578_v27, %v3777_v52 }
 0x1dc   : > { %v3830_v1 = vor.u32 %v4588_v58, %v3827_v60  ;;  %v3779_v57 = vld [vmem:[%s5178_s25 + $0x70] sm:$0xf0]  ;;  %v3785_v58 = vld [vmem:[%s5178_s25 + $0x68] sm:$0xf]  ;;  %v3730_v52 = vor.u32 %v4566_v25, %v3729_v51  ;;  %v4626_v51 = vld [vmem:[%s5178_s25 + $0xec] sm:$0xf0] }
 0x1dd   : > { %4814 = vtanh.f32 %v1293_v63  ;;  %v1304_v5 = vmul.f32 0.5, %v1294_v0  ;;  %v3833_v63 = vld [vmem:[%s5178_s25 + $0xc8] sm:$0xf]  ;;  %v4591_v0 = vld [vmem:[%s5178_s25 + $0xd4] sm:$0xf0]  ;;  %v3782_v60 = vor.u32 %v4576_v33, %v3779_v57 }
 0x1de   : > { %v4811_v8 = vpop.eup %4810  ;;  %v3834_v3 = vor.u32 %v4591_v0, %v3833_v63  ;;  %1797 = vmatpush.bf16.msra.mxu1 %v3830_v1  ;;  %v4577_v0 = vld [vmem:[%s5178_s25 + $0x6c] sm:$0xf]  ;;  %v3787_v1 = vld [vmem:[%s5178_s25 + $0x78] sm:$0xf0]  ;;  %v3731_v27 = vld [vmem:[%s5178_s25 + $0x10] sm:$0xf0] }
 0x1df   : > { %v4813_v9 = vpop.eup %4812  ;;  %v1297_v10 = vmul.f32 0.5, %v4811_v8  ;;  %4816 = vtanh.f32 %v1304_v5  ;;  %v4589_v5 = vld [vmem:[%s5178_s25 + $0xcc] sm:$0xf]  ;;  %v3835_v8 = vld [vmem:[%s5178_s25 + $0xd8] sm:$0xf0] }
 0x1e0   : > { %v1301_v29 = vmul.f32 0.5, %v4813_v9  ;;  %v3838_v9 = vor.u32 %v4589_v5, %v3835_v8  ;;  %1810 = vmatpush.bf16.msra.mxu2 %v3834_v3  ;;  %v3790_v3 = vor.u32 %v4577_v0, %v3787_v1  ;;  %v3761_v5 = vld [vmem:[%s5178_s25 + $0x40] sm:$0xf]  ;;  %v4574_v8 = vld [vmem:[%s5178_s25 + $0x4c] sm:$0xf0] }
 0x1e1   : > { %v1298_v31 = vadd.f32 0.5, %v1297_v10  ;;  %v3809_v10 = vld [vmem:[%s5178_s25 + $0xa0] sm:$0xf]  ;;  %v3737_v33 = vld [vmem:[%s5178_s25 + $0x8] sm:$0xf] }
 0x1e2   : > { %v1302_v11 = vadd.f32 0.5, %v1301_v29  ;;  %v1276_v21 = vpop.f32.mrf.mxu2  ;;  %v1289_v24 = vpop.f32.mrf.mxu3  ;;  %v4586_v29 = vld [vmem:[%s5178_s25 + $0xac] sm:$0xf0]  ;;  %1823 = vmatpush.bf16.msra.mxu3 %v3838_v9  ;;  %v4572_v9 = vld [vmem:[%s5178_s25 + $0x44] sm:$0xf] }
 0x1e3   : > { %v4815_v22 = vpop.eup %4814  ;;  %v3811_v21 = vld [vmem:[%s5178_s25 + $0xb0] sm:$0xf0]  ;;  %v3817_v24 = vld [vmem:[%s5178_s25 + $0xa8] sm:$0xf]  ;;  %v4624_v25 = vld [vmem:[%s5178_s25 + $0xe4] sm:$0xf] }
 0x1e4   : > { %v1308_v26 = vmul.f32 %v1302_v11, %v5522_v56  ;;  %v1309_v35 = vmul.f32 %v4815_v22, %v1298_v31  ;;  %v3841_v56 = vld [vmem:[%s5178_s25 + $0xe0] sm:$0xf]  ;;  %v4584_v31 = vld [vmem:[%s5178_s25 + $0xa4] sm:$0xf]  ;;  %v3810_v11 = vor.u32 %v4586_v29, %v3809_v10  ;;  %v4587_v22 = vld [vmem:[%s5178_s25 + $0xb4] sm:$0xf0]  ;;  %v3762_v10 = vor.u32 %v4574_v8, %v3761_v5 }
 0x1e5   : > { %v4817_v38 = vpop.eup %4816  ;;  %v3842_v42 = vor.u32 %v4594_v36, %v3841_v56  ;;  %v3795_v36 = vld [vmem:[%s5178_s25 + $0x90] sm:$0xf0] }
 0x1e6   : > { %v5594_v13 = vadd.f32 %v1309_v35, %v1308_v26  ;;  %v1306_v16 = vmul.f32 0.5, %v4817_v38  ;;  %v3814_v26 = vor.u32 %v4584_v31, %v3811_v21  ;;  %v3818_v35 = vor.u32 %v4587_v22, %v3817_v24  ;;  %v4585_v38 = vld [vmem:[%s5178_s25 + $0xac] sm:$0xf]  ;;  %v3763_v29 = vld [vmem:[%s5178_s25 + $0x50] sm:$0xf0] }
 0x1e7   : > { %1783 = vmatpush.bf16.msra.mxu0 %v3842_v42  ;;  %v4583_v42 = vld [vmem:[%s5178_s25 + $0x94] sm:$0xf0]  ;;  %v3769_v31 = vld [vmem:[%s5178_s25 + $0x48] sm:$0xf]  ;;  %v3766_v21 = vor.u32 %v4572_v9, %v3763_v29  ;;  %v4573_v22 = vld [vmem:[%s5178_s25 + $0x4c] sm:$0xf] }
 0x1e8   : > { %4818 = vtanh.f32 %v5594_v13  ;;  %v1307_v17 = vadd.f32 0.5, %v1306_v16  ;;  %v3819_v16 = vld [vmem:[%s5178_s25 + $0xb8] sm:$0xf0]  ;;  %1798 = vmatpush.bf16.msra.mxu1 %v3814_v26  ;;  %1811 = vmatpush.bf16.msra.mxu2 %v3818_v35  ;;  %v3802_v50 = vor.u32 %v4583_v42, %v3801_v37  ;;  %v4569_v42 = vld [vmem:[%s5178_s25 + $0x2c] sm:$0xf] }
 0x1e9   : > { %v3771_v26 = vld [vmem:[%s5178_s25 + $0x58] sm:$0xf0] }
 0x1ea   : > { %v3774_v35 = vor.u32 %v4573_v22, %v3771_v26 }
 0x1eb   : > { %1784 = vmatpush.bf16.msra.mxu0 %v3826_v59  ;;  %v4579_v59 = vld [vmem:[%s5178_s25 + $0x74] sm:$0xf0] }
 0x1ec   : > { %1812 = vmatpush.bf16.msra.mxu2 %v3802_v50  ;;  %v3786_v63 = vor.u32 %v4579_v59, %v3785_v58  ;;  %v4565_v59 = vld [vmem:[%s5178_s25 + $0xc] sm:$0xf] }
 0x1ee   : > { %v4819_v18 = vpop.eup %4818 }
 0x1ef   : > { %v1312_v23 = vmul.f32 %v4819_v18, %v1307_v17  ;;  %1785 = vmatpush.bf16.msra.mxu0 %v3810_v11  ;;  %v3822_v17 = vor.u32 %v4585_v38, %v3819_v16  ;;  %v3793_v18 = vld [vmem:[%s5178_s25 + $0x80] sm:$0xf]  ;;  %v4575_v11 = vld [vmem:[%s5178_s25 + $0x54] sm:$0xf0]  ;;  %v4570_v16 = vld [vmem:[%s5178_s25 + $0x2c] sm:$0xf0] }
 0x1f0   : > { %1813 = vmatpush.bf16.msra.mxu2 %v3786_v63  ;;  %v3770_v24 = vor.u32 %v4575_v11, %v3769_v31  ;;  %v3745_v38 = vld [vmem:[%s5178_s25 + $0x20] sm:$0xf] }
 0x1f1   : > { %1313 = vst [vmem:[#allocation2] sm:$0xff] %v1312_v23  ;;  %v1318_v30 = vpack.c.bf16 %v1312_v23, %v1312_v23  ;;  %v4582_v23 = vld [vmem:[%s5178_s25 + $0x8c] sm:$0xf0]  ;;  %1824 = vmatpush.bf16.msra.mxu3 %v3822_v17  ;;  %v4568_v17 = vld [vmem:[%s5178_s25 + $0x24] sm:$0xf] }
 0x1f2   : > { %v3794_v56 = vor.u32 %v4582_v23, %v3793_v18  ;;  %v3746_v18 = vor.u32 %v4570_v16, %v3745_v38  ;;  %v3747_v23 = vld [vmem:[%s5178_s25 + $0x30] sm:$0xf0] }
 0x1f3   : > { %1519 = vmatmul.bf16.vlgmr.msrb.gmra.mxu0 %v1318_v30  ;;  %1532 = vmatmul.bf16.vlgmr.msrb.gmra.mxu1 %v1318_v30 }
 0x1f4   : > { %1545 = vmatmul.bf16.vlgmr.msrb.gmra.mxu2 %v1318_v30  ;;  %1558 = vmatmul.bf16.vlgmr.msrb.gmra.mxu3 %v1318_v30  ;;  %v4580_v30 = vld [vmem:[%s5178_s25 + $0x84] sm:$0xf] }
 0x1f5   : > { %v3798_v48 = vor.u32 %v4580_v30, %v3795_v36  ;;  %1786 = vmatpush.bf16.msra.mxu0 %v3794_v56  ;;  %1825 = vmatpush.bf16.msra.mxu3 %v3806_v32  ;;  %v3753_v30 = vld [vmem:[%s5178_s25 + $0x28] sm:$0xf]  ;;  %v4571_v56 = vld [vmem:[%s5178_s25 + $0x34] sm:$0xf0]  ;;  %v3750_v36 = vor.u32 %v4568_v17, %v3747_v23  ;;  %v4564_v32 = vld [vmem:[%s5178_s25 + $0x4] sm:$0xf] }
 0x1f6   : > { %1814 = vmatpush.bf16.msra.mxu2 %v3770_v24  ;;  %v3754_v37 = vor.u32 %v4571_v56, %v3753_v30  ;;  %v3734_v57 = vor.u32 %v4564_v32, %v3731_v27  ;;  %v3977_v27 = vld [vmem:[%s5178_s25 + $0xe8] sm:$0xf] }
 0x1f7   : > { %1799 = vmatpush.bf16.msra.mxu1 %v3798_v48  ;;  %v3755_v48 = vld [vmem:[%s5178_s25 + $0x38] sm:$0xf0] }
 0x1f8   : > { %v3758_v50 = vor.u32 %v4569_v42, %v3755_v48 }
 0x1f9   : > { %1787 = vmatpush.bf16.msra.mxu0 %v3778_v53  ;;  %1826 = vmatpush.bf16.msra.mxu3 %v3790_v3  ;;  %v4567_v53 = vld [vmem:[%s5178_s25 + $0x14] sm:$0xf0] }
 0x1fa   : > { %1815 = vmatpush.bf16.msra.mxu2 %v3754_v37  ;;  %v3738_v58 = vor.u32 %v4567_v53, %v3737_v33  ;;  %v4627_v33 = vld [vmem:[%s5178_s25 + $0xf4] sm:$0xf0] }
 0x1fb   : > { %1800 = vmatpush.bf16.msra.mxu1 %v3782_v60  ;;  %v3739_v60 = vld [vmem:[%s5178_s25 + $0x18] sm:$0xf0] }
 0x1fc   : > { %v3742_v63 = vor.u32 %v4565_v59, %v3739_v60  ;;  %v3979_v59 = vld [vmem:[%s5178_s25 + $0xf8] sm:$0xf0] }
 0x1fd   : > { %1788 = vmatpush.bf16.msra.mxu0 %v3762_v10  ;;  %1827 = vmatpush.bf16.msra.mxu3 %v3774_v35 }
 0x1fe   : > { %1816 = vmatpush.bf16.msra.mxu2 %v3738_v58  ;;  %v4625_v58 = vld [vmem:[%s5178_s25 + $0xec] sm:$0xf] }
 0x1ff   : > { %1801 = vmatpush.bf16.msra.mxu1 %v3766_v21  ;;  %v3982_v60 = vor.u32 %v4625_v58, %v3979_v59  ;;  %v3907_v58 = vld [vmem:[%s5178_s25 + $0x70] sm:$0xf0]  ;;  %v3913_v59 = vld [vmem:[%s5178_s25 + $0x68] sm:$0xf] }
 0x201   : > { %1789 = vmatpush.bf16.msra.mxu0 %v3746_v18  ;;  %1828 = vmatpush.bf16.msra.mxu3 %v3758_v50 }
 0x203   : > { %1802 = vmatpush.bf16.msra.mxu1 %v3750_v36 }
 0x205   : > { %1790 = vmatpush.bf16.msra.mxu0 %v3730_v52  ;;  %1829 = vmatpush.bf16.msra.mxu3 %v3742_v63  ;;  %v3971_v52 = vld [vmem:[%s5178_s25 + $0xf0] sm:$0xf0]  ;;  %v3953_v63 = vld [vmem:[%s5178_s25 + $0xc0] sm:$0xf] }
 0x206   : > { %v3974_v53 = vor.u32 %v4624_v25, %v3971_v52  ;;  %v4613_v25 = vld [vmem:[%s5178_s25 + $0x8c] sm:$0xf] }
 0x207   : > { %1803 = vmatpush.bf16.msra.mxu1 %v3734_v57  ;;  %v3978_v57 = vor.u32 %v4627_v33, %v3977_v27  ;;  %v3905_v27 = vld [vmem:[%s5178_s25 + $0x60] sm:$0xf]  ;;  %v4610_v33 = vld [vmem:[%s5178_s25 + $0x6c] sm:$0xf0] }
 0x209   : > { %2081 = vmatpush.bf16.msrb.mxu2 %v3978_v57  ;;  %2094 = vmatpush.bf16.msrb.mxu3 %v3982_v60  ;;  %v3906_v57 = vor.u32 %v4610_v33, %v3905_v27  ;;  %v4611_v60 = vld [vmem:[%s5178_s25 + $0x74] sm:$0xf0] }
 0x20b   : > { %2068 = vmatpush.bf16.msrb.mxu1 %v3974_v53  ;;  %v4608_v53 = vld [vmem:[%s5178_s25 + $0x64] sm:$0xf] }
 0x270   : > { %v1520_v0 = vpop.f32.mrf.mxu0  ;;  %v1533_v1 = vpop.f32.mrf.mxu1 }
 0x271   : > { %v1563_v3 = vadd.f32 %v1520_v0, %v5379_v39  ;;  %v1564_v5 = vadd.f32 %v1533_v1, %v5382_v41  ;;  %v4622_v0 = vld [vmem:[%s5178_s25 + $0xcc] sm:$0xf0]  ;;  %v4620_v1 = vld [vmem:[%s5178_s25 + $0xc4] sm:$0xf] }
 0x273   : > { %v1567_v8 = vmul.f32 0.5, %v1563_v3  ;;  %v1571_v9 = vmul.f32 0.5, %v1564_v5  ;;  %v3954_v3 = vor.u32 %v4622_v0, %v3953_v63  ;;  %v3955_v5 = vld [vmem:[%s5178_s25 + $0xd0] sm:$0xf0]  ;;  %v3910_v63 = vor.u32 %v4608_v53, %v3907_v58  ;;  %v4597_v53 = vld [vmem:[%s5178_s25 + $0xc] sm:$0xf] }
 0x274   : > { %v3914_v0 = vor.u32 %v4611_v60, %v3913_v59 }
 0x275   : > { %4820 = vtanh.f32 %v1567_v8  ;;  %v3961_v8 = vld [vmem:[%s5178_s25 + $0xc8] sm:$0xf] }
 0x276   : > { %4822 = vtanh.f32 %v1571_v9  ;;  %v4623_v9 = vld [vmem:[%s5178_s25 + $0xd4] sm:$0xf0] }
 0x277   : > { %v1546_v10 = vpop.f32.mrf.mxu2  ;;  %v1559_v29 = vpop.f32.mrf.mxu3 }
 0x278   : > { %v1565_v31 = vadd.f32 %v1546_v10, %v5385_v43  ;;  %v1566_v11 = vadd.f32 %v1559_v29, %v5388_v46  ;;  %v1522_v21 = vpop.f32.mrf.mxu0  ;;  %v1535_v24 = vpop.f32.mrf.mxu1  ;;  %v3958_v10 = vor.u32 %v4620_v1, %v3955_v5  ;;  %v3962_v29 = vor.u32 %v4623_v9, %v3961_v8  ;;  %v4609_v1 = vld [vmem:[%s5178_s25 + $0x6c] sm:$0xf]  ;;  %v3889_v8 = vld [vmem:[%s5178_s25 + $0x40] sm:$0xf]  ;;  %v4606_v9 = vld [vmem:[%s5178_s25 + $0x4c] sm:$0xf0] }
 0x279   : > { %v3937_v24 = vld [vmem:[%s5178_s25 + $0xa0] sm:$0xf] }
 0x27a   : > { %4824 = vtanh.f32 %v1565_v31  ;;  %v1576_v22 = vmul.f32 0.5, %v1566_v11  ;;  %v4621_v31 = vld [vmem:[%s5178_s25 + $0xcc] sm:$0xf]  ;;  %v3963_v11 = vld [vmem:[%s5178_s25 + $0xd8] sm:$0xf0]  ;;  %2069 = vmatpush.bf16.msrb.mxu1 %v3958_v10  ;;  %2082 = vmatpush.bf16.msrb.mxu2 %v3962_v29  ;;  %v3890_v29 = vor.u32 %v4606_v9, %v3889_v8 }
 0x27b   : > { %v4821_v26 = vpop.eup %4820  ;;  %v3966_v21 = vor.u32 %v4621_v31, %v3963_v11  ;;  %v4604_v10 = vld [vmem:[%s5178_s25 + $0x44] sm:$0xf]  ;;  %v3891_v31 = vld [vmem:[%s5178_s25 + $0x50] sm:$0xf0]  ;;  %v3897_v11 = vld [vmem:[%s5178_s25 + $0x48] sm:$0xf] }
 0x27c   : > { %v4823_v35 = vpop.eup %4822  ;;  %v1569_v38 = vmul.f32 0.5, %v4821_v26  ;;  %4826 = vtanh.f32 %v1576_v22  ;;  %v4618_v22 = vld [vmem:[%s5178_s25 + $0xac] sm:$0xf0]  ;;  %v4616_v26 = vld [vmem:[%s5178_s25 + $0xa4] sm:$0xf] }
 0x27d   : > { %v1573_v39 = vmul.f32 0.5, %v4823_v35  ;;  %2095 = vmatpush.bf16.msrb.mxu3 %v3966_v21  ;;  %v3938_v35 = vor.u32 %v4618_v22, %v3937_v24  ;;  %v4607_v21 = vld [vmem:[%s5178_s25 + $0x54] sm:$0xf0]  ;;  %v3894_v24 = vor.u32 %v4604_v10, %v3891_v31 }
 0x27e   : > { %v1570_v41 = vadd.f32 0.5, %v1569_v38  ;;  %v3939_v38 = vld [vmem:[%s5178_s25 + $0xb0] sm:$0xf0]  ;;  %v3898_v22 = vor.u32 %v4607_v21, %v3897_v11 }
 0x27f   : > { %v1574_v16 = vadd.f32 0.5, %v1573_v39  ;;  %v1548_v17 = vpop.f32.mrf.mxu2  ;;  %v1561_v18 = vpop.f32.mrf.mxu3  ;;  %v3945_v39 = vld [vmem:[%s5178_s25 + $0xa8] sm:$0xf] }
 0x280   : > { %v4825_v23 = vpop.eup %4824  ;;  %v4617_v18 = vld [vmem:[%s5178_s25 + $0xac] sm:$0xf] }
 0x281   : > { %v1580_v30 = vmul.f32 %v1574_v16, %v5594_v13  ;;  %v1581_v43 = vmul.f32 %v4825_v23, %v1570_v41  ;;  %v3969_v13 = vld [vmem:[%s5178_s25 + $0xe0] sm:$0xf]  ;;  %v4619_v41 = vld [vmem:[%s5178_s25 + $0xb4] sm:$0xf0]  ;;  %v3942_v16 = vor.u32 %v4616_v26, %v3939_v38  ;;  %v3947_v23 = vld [vmem:[%s5178_s25 + $0xb8] sm:$0xf0] }
 0x282   : > { %v4827_v46 = vpop.eup %4826  ;;  %v3970_v32 = vor.u32 %v4626_v51, %v3969_v13  ;;  %v3946_v17 = vor.u32 %v4619_v41, %v3945_v39  ;;  %v4605_v26 = vld [vmem:[%s5178_s25 + $0x4c] sm:$0xf]  ;;  %v3873_v39 = vld [vmem:[%s5178_s25 + $0x20] sm:$0xf]  ;;  %v4602_v41 = vld [vmem:[%s5178_s25 + $0x2c] sm:$0xf0] }
 0x283   : > { %v5666_v56 = vadd.f32 %v1581_v43, %v1580_v30  ;;  %v1578_v36 = vmul.f32 0.5, %v4827_v46  ;;  %v3950_v30 = vor.u32 %v4617_v18, %v3947_v23  ;;  %2070 = vmatpush.bf16.msrb.mxu1 %v3942_v16  ;;  %v3921_v43 = vld [vmem:[%s5178_s25 + $0x80] sm:$0xf]  ;;  %v4614_v46 = vld [vmem:[%s5178_s25 + $0x8c] sm:$0xf0] }
 0x284   : > { %2055 = vmatpush.bf16.msrb.mxu0 %v3970_v32  ;;  %2083 = vmatpush.bf16.msrb.mxu2 %v3946_v17  ;;  %v3931_v32 = vld [vmem:[%s5178_s25 + $0x98] sm:$0xf0]  ;;  %v4600_v16 = vld [vmem:[%s5178_s25 + $0x24] sm:$0xf]  ;;  %v3874_v17 = vor.u32 %v4602_v41, %v3873_v39  ;;  %v3875_v18 = vld [vmem:[%s5178_s25 + $0x30] sm:$0xf0] }
 0x285   : > { %4828 = vtanh.f32 %v5666_v56  ;;  %v1579_v37 = vadd.f32 0.5, %v1578_v36  ;;  %v4612_v36 = vld [vmem:[%s5178_s25 + $0x84] sm:$0xf]  ;;  %2096 = vmatpush.bf16.msrb.mxu3 %v3950_v30  ;;  %v3934_v52 = vor.u32 %v4613_v25, %v3931_v32  ;;  %v3881_v23 = vld [vmem:[%s5178_s25 + $0x28] sm:$0xf] }
 0x286   : > { %v4603_v30 = vld [vmem:[%s5178_s25 + $0x34] sm:$0xf0]  ;;  %v3859_v25 = vld [vmem:[%s5178_s25 + $0x10] sm:$0xf0]  ;;  %v3865_v32 = vld [vmem:[%s5178_s25 + $0x8] sm:$0xf] }
 0x288   : > { %2056 = vmatpush.bf16.msrb.mxu0 %v3954_v3  ;;  %v3915_v3 = vld [vmem:[%s5178_s25 + $0x78] sm:$0xf0] }
 0x289   : > { %2097 = vmatpush.bf16.msrb.mxu3 %v3934_v52  ;;  %v3918_v5 = vor.u32 %v4609_v1, %v3915_v3  ;;  %v4599_v52 = vld [vmem:[%s5178_s25 + $0x14] sm:$0xf0] }
 0x28a   : > { %v3866_v33 = vor.u32 %v4599_v52, %v3865_v32  ;;  %v4107_v32 = vld [vmem:[%s5178_s25 + $0xf8] sm:$0xf0] }
 0x28b   : > { %v4829_v42 = vpop.eup %4828 }
 0x28c   : > { %v1584_v48 = vmul.f32 %v4829_v42, %v1579_v37  ;;  %2057 = vmatpush.bf16.msrb.mxu0 %v3938_v35  ;;  %v3922_v37 = vor.u32 %v4614_v46, %v3921_v43  ;;  %v3923_v42 = vld [vmem:[%s5178_s25 + $0x90] sm:$0xf0]  ;;  %v3899_v35 = vld [vmem:[%s5178_s25 + $0x58] sm:$0xf0]  ;;  %v3878_v43 = vor.u32 %v4600_v16, %v3875_v18  ;;  %v3882_v46 = vor.u32 %v4603_v30, %v3881_v23 }
 0x28d   : > { %v3926_v13 = vor.u32 %v4612_v36, %v3923_v42  ;;  %2098 = vmatpush.bf16.msrb.mxu3 %v3918_v5  ;;  %v3902_v38 = vor.u32 %v4605_v26, %v3899_v35  ;;  %v4601_v36 = vld [vmem:[%s5178_s25 + $0x2c] sm:$0xf] }
 0x28e   : > { %1585 = vst [vmem:[#allocation2 + $0x18] sm:$0xff] %v1584_v48  ;;  %v1590_v50 = vpack.c.bf16 %v1584_v48, %v1584_v48  ;;  %v3929_v48 = vld [vmem:[%s5178_s25 + $0x88] sm:$0xf] }
 0x28f   : > { %2071 = vmatpush.bf16.msrb.mxu1 %v3926_v13  ;;  %v4596_v13 = vld [vmem:[%s5178_s25 + $0x4] sm:$0xf] }
 0x290   : > { %1791 = vmatmul.bf16.vlgmr.msra.gmra.mxu0 %v1590_v50  ;;  %1804 = vmatmul.bf16.vlgmr.msra.gmra.mxu1 %v1590_v50  ;;  %v3862_v27 = vor.u32 %v4596_v13, %v3859_v25  ;;  %v4657_v25 = vld [vmem:[%s5178_s25 + $0xec] sm:$0xf] }
 0x291   : > { %1817 = vmatmul.bf16.vlgmr.msra.gmra.mxu2 %v1590_v50  ;;  %1830 = vmatmul.bf16.vlgmr.msra.gmra.mxu3 %v1590_v50  ;;  %v4615_v50 = vld [vmem:[%s5178_s25 + $0x94] sm:$0xf0]  ;;  %v4110_v52 = vor.u32 %v4657_v25, %v4107_v32  ;;  %v4641_v32 = vld [vmem:[%s5178_s25 + $0x6c] sm:$0xf] }
 0x292   : > { %v3930_v51 = vor.u32 %v4615_v50, %v3929_v48  ;;  %2058 = vmatpush.bf16.msrb.mxu0 %v3922_v37  ;;  %2099 = vmatpush.bf16.msrb.mxu3 %v3902_v38  ;;  %v3883_v37 = vld [vmem:[%s5178_s25 + $0x38] sm:$0xf0]  ;;  %v3857_v48 = vld [vmem:[%s5178_s25] sm:$0xf]  ;;  %v4598_v50 = vld [vmem:[%s5178_s25 + $0xc] sm:$0xf0] }
 0x293   : > { %2072 = vmatpush.bf16.msrb.mxu1 %v3910_v63  ;;  %v3886_v42 = vor.u32 %v4601_v36, %v3883_v37  ;;  %v4656_v36 = vld [vmem:[%s5178_s25 + $0xe4] sm:$0xf] }
 0x294   : > { %2084 = vmatpush.bf16.msrb.mxu2 %v3930_v51  ;;  %v3858_v51 = vor.u32 %v4598_v50, %v3857_v48  ;;  %v4105_v48 = vld [vmem:[%s5178_s25 + $0xe8] sm:$0xf]  ;;  %v4659_v50 = vld [vmem:[%s5178_s25 + $0xf4] sm:$0xf0] }
 0x296   : > { %2059 = vmatpush.bf16.msrb.mxu0 %v3906_v57  ;;  %2100 = vmatpush.bf16.msrb.mxu3 %v3886_v42  ;;  %v3867_v57 = vld [vmem:[%s5178_s25 + $0x18] sm:$0xf0]  ;;  %v4099_v42 = vld [vmem:[%s5178_s25 + $0xf0] sm:$0xf0] }
 0x297   : > { %2073 = vmatpush.bf16.msrb.mxu1 %v3894_v24  ;;  %v3870_v58 = vor.u32 %v4597_v53, %v3867_v57  ;;  %v4102_v13 = vor.u32 %v4656_v36, %v4099_v42  ;;  %v4652_v53 = vld [vmem:[%s5178_s25 + $0xc4] sm:$0xf]  ;;  %v4642_v36 = vld [vmem:[%s5178_s25 + $0x6c] sm:$0xf0] }
 0x298   : > { %2085 = vmatpush.bf16.msrb.mxu2 %v3914_v0 }
 0x29a   : > { %2060 = vmatpush.bf16.msrb.mxu0 %v3890_v29  ;;  %2101 = vmatpush.bf16.msrb.mxu3 %v3870_v58  ;;  %v4083_v58 = vld [vmem:[%s5178_s25 + $0xd0] sm:$0xf0] }
 0x29b   : > { %2074 = vmatpush.bf16.msrb.mxu1 %v3878_v43 }
 0x29c   : > { %2086 = vmatpush.bf16.msrb.mxu2 %v3898_v22 }
 0x29e   : > { %2061 = vmatpush.bf16.msrb.mxu0 %v3874_v17  ;;  %2366 = vmatpush.bf16.msra.mxu3 %v4110_v52  ;;  %v4043_v52 = vld [vmem:[%s5178_s25 + $0x78] sm:$0xf0] }
 0x29f   : > { %2075 = vmatpush.bf16.msrb.mxu1 %v3862_v27  ;;  %v4081_v27 = vld [vmem:[%s5178_s25 + $0xc0] sm:$0xf] }
 0x2a0   : > { %2087 = vmatpush.bf16.msrb.mxu2 %v3882_v46  ;;  %v4658_v46 = vld [vmem:[%s5178_s25 + $0xec] sm:$0xf0] }
 0x2a2   : > { %2062 = vmatpush.bf16.msrb.mxu0 %v3858_v51  ;;  %v4106_v51 = vor.u32 %v4659_v50, %v4105_v48  ;;  %v4035_v48 = vld [vmem:[%s5178_s25 + $0x70] sm:$0xf0]  ;;  %v4041_v50 = vld [vmem:[%s5178_s25 + $0x68] sm:$0xf] }
 0x2a3   : > { %2340 = vmatpush.bf16.msra.mxu1 %v4102_v13  ;;  %v4643_v13 = vld [vmem:[%s5178_s25 + $0x74] sm:$0xf0] }
 0x2a4   : > { %2088 = vmatpush.bf16.msrb.mxu2 %v3866_v33  ;;  %v4654_v33 = vld [vmem:[%s5178_s25 + $0xcc] sm:$0xf0]  ;;  %v4042_v25 = vor.u32 %v4643_v13, %v4041_v50 }
 0x2a5   : > { %v4082_v57 = vor.u32 %v4654_v33, %v4081_v27  ;;  %v4046_v27 = vor.u32 %v4641_v32, %v4043_v52  ;;  %v4017_v33 = vld [vmem:[%s5178_s25 + $0x40] sm:$0xf] }
 0x2a8   : > { %2353 = vmatpush.bf16.msra.mxu2 %v4106_v51 }
 0x30d   : > { %v1792_v59 = vpop.f32.mrf.mxu0  ;;  %v1805_v60 = vpop.f32.mrf.mxu1 }
 0x30e   : > { %v1835_v63 = vadd.f32 %v1792_v59, %v5391_v47  ;;  %v1836_v0 = vadd.f32 %v1805_v60, %v5394_v49  ;;  %v4089_v59 = vld [vmem:[%s5178_s25 + $0xc8] sm:$0xf]  ;;  %v4655_v60 = vld [vmem:[%s5178_s25 + $0xd4] sm:$0xf0] }
 0x310   : > { %v1839_v1 = vmul.f32 0.5, %v1835_v63  ;;  %v1843_v3 = vmul.f32 0.5, %v1836_v0  ;;  %v4086_v63 = vor.u32 %v4652_v53, %v4083_v58  ;;  %v4090_v0 = vor.u32 %v4655_v60, %v4089_v59  ;;  %v4638_v53 = vld [vmem:[%s5178_s25 + $0x4c] sm:$0xf0]  ;;  %v4019_v59 = vld [vmem:[%s5178_s25 + $0x50] sm:$0xf0] }
 0x311   : > { %v4018_v58 = vor.u32 %v4638_v53, %v4017_v33  ;;  %v4025_v60 = vld [vmem:[%s5178_s25 + $0x48] sm:$0xf] }
 0x312   : > { %4830 = vtanh.f32 %v1839_v1  ;;  %v4653_v1 = vld [vmem:[%s5178_s25 + $0xcc] sm:$0xf]  ;;  %2341 = vmatpush.bf16.msra.mxu1 %v4086_v63  ;;  %2354 = vmatpush.bf16.msra.mxu2 %v4090_v0  ;;  %v4639_v63 = vld [vmem:[%s5178_s25 + $0x54] sm:$0xf0] }
 0x313   : > { %4832 = vtanh.f32 %v1843_v3  ;;  %v4091_v3 = vld [vmem:[%s5178_s25 + $0xd8] sm:$0xf0] }
 0x314   : > { %v1818_v5 = vpop.f32.mrf.mxu2  ;;  %v1831_v8 = vpop.f32.mrf.mxu3 }
 0x315   : > { %v1837_v9 = vadd.f32 %v1818_v5, %v5400_v54  ;;  %v1838_v10 = vadd.f32 %v1831_v8, %v5406_v61  ;;  %v1794_v29 = vpop.f32.mrf.mxu0  ;;  %v1807_v31 = vpop.f32.mrf.mxu1  ;;  %v4094_v5 = vor.u32 %v4653_v1, %v4091_v3  ;;  %v4065_v8 = vld [vmem:[%s5178_s25 + $0xa0] sm:$0xf]  ;;  %v4026_v1 = vor.u32 %v4639_v63, %v4025_v60  ;;  %v4637_v3 = vld [vmem:[%s5178_s25 + $0x4c] sm:$0xf] }
 0x316   : > { %v4067_v31 = vld [vmem:[%s5178_s25 + $0xb0] sm:$0xf0] }
 0x317   : > { %4834 = vtanh.f32 %v1837_v9  ;;  %v1848_v11 = vmul.f32 0.5, %v1838_v10  ;;  %v4650_v9 = vld [vmem:[%s5178_s25 + $0xac] sm:$0xf0]  ;;  %v4648_v10 = vld [vmem:[%s5178_s25 + $0xa4] sm:$0xf]  ;;  %2367 = vmatpush.bf16.msra.mxu3 %v4094_v5 }
 0x318   : > { %v4831_v21 = vpop.eup %4830  ;;  %v4066_v29 = vor.u32 %v4650_v9, %v4065_v8  ;;  %v4027_v5 = vld [vmem:[%s5178_s25 + $0x58] sm:$0xf0]  ;;  %v4001_v9 = vld [vmem:[%s5178_s25 + $0x20] sm:$0xf] }
 0x319   : > { %v4833_v24 = vpop.eup %4832  ;;  %v1841_v22 = vmul.f32 0.5, %v4831_v21  ;;  %4836 = vtanh.f32 %v1848_v11  ;;  %v4073_v11 = vld [vmem:[%s5178_s25 + $0xa8] sm:$0xf]  ;;  %v4651_v21 = vld [vmem:[%s5178_s25 + $0xb4] sm:$0xf0]  ;;  %v4030_v8 = vor.u32 %v4637_v3, %v4027_v5 }
 0x31a   : > { %v1845_v47 = vmul.f32 0.5, %v4833_v24  ;;  %v4070_v24 = vor.u32 %v4648_v10, %v4067_v31  ;;  %v4634_v10 = vld [vmem:[%s5178_s25 + $0x2c] sm:$0xf0] }
 0x31b   : > { %v1842_v49 = vadd.f32 0.5, %v1841_v22  ;;  %v4074_v22 = vor.u32 %v4651_v21, %v4073_v11  ;;  %v4002_v31 = vor.u32 %v4634_v10, %v4001_v9  ;;  %v4003_v11 = vld [vmem:[%s5178_s25 + $0x30] sm:$0xf0]  ;;  %v4009_v21 = vld [vmem:[%s5178_s25 + $0x28] sm:$0xf] }
 0x31c   : > { %v1846_v26 = vadd.f32 0.5, %v1845_v47  ;;  %v1820_v35 = vpop.f32.mrf.mxu2  ;;  %v1833_v38 = vpop.f32.mrf.mxu3  ;;  %v4649_v47 = vld [vmem:[%s5178_s25 + $0xac] sm:$0xf]  ;;  %2342 = vmatpush.bf16.msra.mxu1 %v4070_v24  ;;  %v4635_v24 = vld [vmem:[%s5178_s25 + $0x34] sm:$0xf0] }
 0x31d   : > { %v4835_v39 = vpop.eup %4834  ;;  %2355 = vmatpush.bf16.msra.mxu2 %v4074_v22  ;;  %v4049_v35 = vld [vmem:[%s5178_s25 + $0x80] sm:$0xf]  ;;  %v4646_v38 = vld [vmem:[%s5178_s25 + $0x8c] sm:$0xf0] }
 0x31e   : > { %v1852_v41 = vmul.f32 %v1846_v26, %v5666_v56  ;;  %v1853_v54 = vmul.f32 %v4835_v39, %v1842_v49  ;;  %v4097_v56 = vld [vmem:[%s5178_s25 + $0xe0] sm:$0xf]  ;;  %v4075_v49 = vld [vmem:[%s5178_s25 + $0xb8] sm:$0xf0]  ;;  %v4644_v39 = vld [vmem:[%s5178_s25 + $0x84] sm:$0xf] }
 0x31f   : > { %v4837_v61 = vpop.eup %4836  ;;  %v4098_v37 = vor.u32 %v4658_v46, %v4097_v56  ;;  %v4078_v26 = vor.u32 %v4649_v47, %v4075_v49  ;;  %v4033_v46 = vld [vmem:[%s5178_s25 + $0x60] sm:$0xf]  ;;  %v4010_v47 = vor.u32 %v4635_v24, %v4009_v21  ;;  %v4633_v49 = vld [vmem:[%s5178_s25 + $0x2c] sm:$0xf]  ;;  %v4688_v21 = vld [vmem:[%s5178_s25 + $0xe4] sm:$0xf] }
 0x320   : > { %v5738_v16 = vadd.f32 %v1853_v54, %v1852_v41  ;;  %v1850_v17 = vmul.f32 0.5, %v4837_v61  ;;  %v4050_v41 = vor.u32 %v4646_v38, %v4049_v35  ;;  %v4051_v54 = vld [vmem:[%s5178_s25 + $0x90] sm:$0xf0]  ;;  %v4057_v61 = vld [vmem:[%s5178_s25 + $0x88] sm:$0xf]  ;;  %v4034_v42 = vor.u32 %v4642_v36, %v4033_v46 }
 0x321   : > { %2327 = vmatpush.bf16.msra.mxu0 %v4098_v37  ;;  %2368 = vmatpush.bf16.msra.mxu3 %v4078_v26  ;;  %v4640_v37 = vld [vmem:[%s5178_s25 + $0x64] sm:$0xf]  ;;  %v4011_v26 = vld [vmem:[%s5178_s25 + $0x38] sm:$0xf0]  ;;  %v3985_v38 = vld [vmem:[%s5178_s25] sm:$0xf] }
 0x322   : > { %4838 = vtanh.f32 %v5738_v16  ;;  %v1851_v18 = vadd.f32 0.5, %v1850_v17  ;;  %v4647_v17 = vld [vmem:[%s5178_s25 + $0x94] sm:$0xf0]  ;;  %v4038_v51 = vor.u32 %v4640_v37, %v4035_v48  ;;  %v4014_v35 = vor.u32 %v4633_v49, %v4011_v26 }
 0x323   : > { %v4691_v49 = vld [vmem:[%s5178_s25 + $0xf4] sm:$0xf0] }
 0x325   : > { %2328 = vmatpush.bf16.msra.mxu0 %v4082_v57  ;;  %v4636_v57 = vld [vmem:[%s5178_s25 + $0x44] sm:$0xf] }
 0x326   : > { %v4022_v0 = vor.u32 %v4636_v57, %v4019_v59 }
 0x328   : > { %v4839_v23 = vpop.eup %4838 }
 0x329   : > { %v1856_v30 = vmul.f32 %v4839_v23, %v1851_v18  ;;  %2329 = vmatpush.bf16.msra.mxu0 %v4066_v29  ;;  %v4054_v18 = vor.u32 %v4644_v39, %v4051_v54  ;;  %v4058_v23 = vor.u32 %v4647_v17, %v4057_v61  ;;  %v4632_v29 = vld [vmem:[%s5178_s25 + $0x24] sm:$0xf]  ;;  %v4630_v39 = vld [vmem:[%s5178_s25 + $0xc] sm:$0xf0]  ;;  %v3987_v61 = vld [vmem:[%s5178_s25 + $0x10] sm:$0xf0] }
 0x32a   : > { %v4006_v22 = vor.u32 %v4632_v29, %v4003_v11  ;;  %v3986_v54 = vor.u32 %v4630_v39, %v3985_v38  ;;  %v3993_v17 = vld [vmem:[%s5178_s25 + $0x8] sm:$0xf]  ;;  %v4690_v11 = vld [vmem:[%s5178_s25 + $0xec] sm:$0xf0]  ;;  %v4689_v38 = vld [vmem:[%s5178_s25 + $0xec] sm:$0xf] }
 0x32b   : > { %1857 = vst [vmem:[#allocation2 + $0x10] sm:$0xff] %v1856_v30  ;;  %v1862_v43 = vpack.c.bf16 %v1856_v30, %v1856_v30  ;;  %v4645_v30 = vld [vmem:[%s5178_s25 + $0x8c] sm:$0xf]  ;;  %2343 = vmatpush.bf16.msra.mxu1 %v4054_v18  ;;  %2356 = vmatpush.bf16.msra.mxu2 %v4058_v23  ;;  %v4631_v18 = vld [vmem:[%s5178_s25 + $0x14] sm:$0xf0] }
 0x32c   : > { %v4235_v39 = vld [vmem:[%s5178_s25 + $0xf8] sm:$0xf0] }
 0x32d   : > { %2063 = vmatmul.bf16.vlgmr.msrb.gmra.mxu0 %v1862_v43  ;;  %2076 = vmatmul.bf16.vlgmr.msrb.gmra.mxu1 %v1862_v43 }
 0x32e   : > { %2089 = vmatmul.bf16.vlgmr.msrb.gmra.mxu2 %v1862_v43  ;;  %2102 = vmatmul.bf16.vlgmr.msrb.gmra.mxu3 %v1862_v43  ;;  %v4059_v43 = vld [vmem:[%s5178_s25 + $0x98] sm:$0xf0] }
 0x32f   : > { %2330 = vmatpush.bf16.msra.mxu0 %v4050_v41  ;;  %v4062_v56 = vor.u32 %v4645_v30, %v4059_v43  ;;  %2344 = vmatpush.bf16.msra.mxu1 %v4038_v51  ;;  %v4628_v41 = vld [vmem:[%s5178_s25 + $0x4] sm:$0xf]  ;;  %v3994_v30 = vor.u32 %v4631_v18, %v3993_v17  ;;  %v4629_v43 = vld [vmem:[%s5178_s25 + $0xc] sm:$0xf] }
 0x330   : > { %2357 = vmatpush.bf16.msra.mxu2 %v4042_v25  ;;  %v3990_v23 = vor.u32 %v4628_v41, %v3987_v61  ;;  %v4238_v41 = vor.u32 %v4689_v38, %v4235_v39  ;;  %v4686_v61 = vld [vmem:[%s5178_s25 + $0xcc] sm:$0xf0]  ;;  %v4684_v17 = vld [vmem:[%s5178_s25 + $0xc4] sm:$0xf]  ;;  %v4145_v38 = vld [vmem:[%s5178_s25 + $0x40] sm:$0xf] }
 0x331   : > { %2369 = vmatpush.bf16.msra.mxu3 %v4062_v56  ;;  %v3995_v56 = vld [vmem:[%s5178_s25 + $0x18] sm:$0xf0]  ;;  %v4670_v39 = vld [vmem:[%s5178_s25 + $0x4c] sm:$0xf0] }
 0x332   : > { %v3998_v46 = vor.u32 %v4629_v43, %v3995_v56  ;;  %v4687_v43 = vld [vmem:[%s5178_s25 + $0xd4] sm:$0xf0] }
 0x333   : > { %2331 = vmatpush.bf16.msra.mxu0 %v4034_v42  ;;  %2345 = vmatpush.bf16.msra.mxu1 %v4022_v0 }
 0x334   : > { %2358 = vmatpush.bf16.msra.mxu2 %v4026_v1 }
 0x335   : > { %2370 = vmatpush.bf16.msra.mxu3 %v4046_v27 }
 0x337   : > { %2332 = vmatpush.bf16.msra.mxu0 %v4018_v58  ;;  %2346 = vmatpush.bf16.msra.mxu1 %v4006_v22  ;;  %v4227_v22 = vld [vmem:[%s5178_s25 + $0xf0] sm:$0xf0] }
 0x338   : > { %2359 = vmatpush.bf16.msra.mxu2 %v4010_v47  ;;  %v4233_v47 = vld [vmem:[%s5178_s25 + $0xe8] sm:$0xf]  ;;  %v4230_v26 = vor.u32 %v4688_v21, %v4227_v22 }
 0x339   : > { %2371 = vmatpush.bf16.msra.mxu3 %v4030_v8  ;;  %v4169_v21 = vld [vmem:[%s5178_s25 + $0x68] sm:$0xf] }
 0x33b   : > { %2333 = vmatpush.bf16.msra.mxu0 %v4002_v31  ;;  %2347 = vmatpush.bf16.msra.mxu1 %v3990_v23  ;;  %v4211_v23 = vld [vmem:[%s5178_s25 + $0xd0] sm:$0xf0] }
 0x33c   : > { %2360 = vmatpush.bf16.msra.mxu2 %v3994_v30  ;;  %v4217_v30 = vld [vmem:[%s5178_s25 + $0xc8] sm:$0xf]  ;;  %v4214_v56 = vor.u32 %v4684_v17, %v4211_v23 }
 0x33d   : > { %2372 = vmatpush.bf16.msra.mxu3 %v4014_v35  ;;  %v4234_v35 = vor.u32 %v4691_v49, %v4233_v47  ;;  %v4673_v49 = vld [vmem:[%s5178_s25 + $0x6c] sm:$0xf]  ;;  %v4153_v17 = vld [vmem:[%s5178_s25 + $0x48] sm:$0xf] }
 0x33f   : > { %2334 = vmatpush.bf16.msra.mxu0 %v3986_v54  ;;  %2612 = vmatpush.bf16.msrb.mxu1 %v4230_v26  ;;  %v4209_v54 = vld [vmem:[%s5178_s25 + $0xc0] sm:$0xf]  ;;  %v4171_v26 = vld [vmem:[%s5178_s25 + $0x78] sm:$0xf0] }
 0x340   : > { %2625 = vmatpush.bf16.msrb.mxu2 %v4234_v35  ;;  %v4210_v18 = vor.u32 %v4686_v61, %v4209_v54  ;;  %v4174_v35 = vor.u32 %v4673_v49, %v4171_v26  ;;  %v4146_v54 = vor.u32 %v4670_v39, %v4145_v38  ;;  %v4147_v61 = vld [vmem:[%s5178_s25 + $0x50] sm:$0xf0] }
 0x341   : > { %2373 = vmatpush.bf16.msra.mxu3 %v3998_v46  ;;  %v4218_v46 = vor.u32 %v4687_v43, %v4217_v30  ;;  %v4669_v43 = vld [vmem:[%s5178_s25 + $0x4c] sm:$0xf] }
 0x343   : > { %2613 = vmatpush.bf16.msrb.mxu1 %v4214_v56  ;;  %v4155_v56 = vld [vmem:[%s5178_s25 + $0x58] sm:$0xf0] }
 0x344   : > { %2626 = vmatpush.bf16.msrb.mxu2 %v4218_v46  ;;  %v4158_v46 = vor.u32 %v4669_v43, %v4155_v56 }
 0x345   : > { %2638 = vmatpush.bf16.msrb.mxu3 %v4238_v41  ;;  %v4668_v41 = vld [vmem:[%s5178_s25 + $0x44] sm:$0xf] }
 0x346   : > { %v4150_v23 = vor.u32 %v4668_v41, %v4147_v61 }
 0x3aa   : > { %v2064_v36 = vpop.f32.mrf.mxu0  ;;  %v2077_v37 = vpop.f32.mrf.mxu1 }
 0x3ab   : > { %v2107_v42 = vadd.f32 %v2064_v36, %v5409_v62  ;;  %v2108_v48 = vadd.f32 %v2077_v37, %v5414_v4  ;;  %v4685_v36 = vld [vmem:[%s5178_s25 + $0xcc] sm:$0xf]  ;;  %v4219_v37 = vld [vmem:[%s5178_s25 + $0xd8] sm:$0xf0] }
 0x3ad   : > { %v2111_v50 = vmul.f32 0.5, %v2107_v42  ;;  %v2115_v13 = vmul.f32 0.5, %v2108_v48  ;;  %v4222_v42 = vor.u32 %v4685_v36, %v4219_v37  ;;  %v4193_v48 = vld [vmem:[%s5178_s25 + $0xa0] sm:$0xf]  ;;  %v4666_v37 = vld [vmem:[%s5178_s25 + $0x2c] sm:$0xf0] }
 0x3ae   : > { %v4129_v36 = vld [vmem:[%s5178_s25 + $0x20] sm:$0xf] }
 0x3af   : > { %4840 = vtanh.f32 %v2111_v50  ;;  %v4682_v50 = vld [vmem:[%s5178_s25 + $0xac] sm:$0xf0]  ;;  %2639 = vmatpush.bf16.msrb.mxu3 %v4222_v42  ;;  %v4664_v42 = vld [vmem:[%s5178_s25 + $0x24] sm:$0xf] }
 0x3b0   : > { %4842 = vtanh.f32 %v2115_v13  ;;  %v4680_v13 = vld [vmem:[%s5178_s25 + $0xa4] sm:$0xf] }
 0x3b1   : > { %v2090_v51 = vpop.f32.mrf.mxu2  ;;  %v2103_v25 = vpop.f32.mrf.mxu3 }
 0x3b2   : > { %v2109_v32 = vadd.f32 %v2090_v51, %v5428_v28  ;;  %v2110_v52 = vadd.f32 %v2103_v25, %v5434_v44  ;;  %v2066_v27 = vpop.f32.mrf.mxu0  ;;  %v2079_v33 = vpop.f32.mrf.mxu1  ;;  %v4194_v51 = vor.u32 %v4682_v50, %v4193_v48  ;;  %v4195_v25 = vld [vmem:[%s5178_s25 + $0xb0] sm:$0xf0]  ;;  %v4130_v48 = vor.u32 %v4666_v37, %v4129_v36  ;;  %v4722_v36 = vld [vmem:[%s5178_s25 + $0xec] sm:$0xf0]  ;;  %v4720_v37 = vld [vmem:[%s5178_s25 + $0xe4] sm:$0xf] }
 0x3b3   : > { %v4198_v27 = vor.u32 %v4680_v13, %v4195_v25  ;;  %v4131_v50 = vld [vmem:[%s5178_s25 + $0x30] sm:$0xf0]  ;;  %v4137_v13 = vld [vmem:[%s5178_s25 + $0x28] sm:$0xf] }
 0x3b4   : > { %4844 = vtanh.f32 %v2109_v32  ;;  %v2120_v53 = vmul.f32 0.5, %v2110_v52  ;;  %v4201_v32 = vld [vmem:[%s5178_s25 + $0xa8] sm:$0xf]  ;;  %v4683_v52 = vld [vmem:[%s5178_s25 + $0xb4] sm:$0xf0]  ;;  %v4134_v25 = vor.u32 %v4664_v42, %v4131_v50 }
 0x3b5   : > { %v4841_v57 = vpop.eup %4840  ;;  %v4202_v33 = vor.u32 %v4683_v52, %v4201_v32  ;;  %2614 = vmatpush.bf16.msrb.mxu1 %v4198_v27  ;;  %v4665_v52 = vld [vmem:[%s5178_s25 + $0x2c] sm:$0xf]  ;;  %v4139_v27 = vld [vmem:[%s5178_s25 + $0x38] sm:$0xf0]  ;;  %v4361_v50 = vld [vmem:[%s5178_s25 + $0xe8] sm:$0xf] }
 0x3b6   : > { %v4843_v58 = vpop.eup %4842  ;;  %v2113_v59 = vmul.f32 0.5, %v4841_v57  ;;  %4846 = vtanh.f32 %v2120_v53  ;;  %v4681_v53 = vld [vmem:[%s5178_s25 + $0xac] sm:$0xf]  ;;  %v4203_v57 = vld [vmem:[%s5178_s25 + $0xb8] sm:$0xf0] }
 0x3b7   : > { %v2117_v62 = vmul.f32 0.5, %v4843_v58  ;;  %v4206_v58 = vor.u32 %v4681_v53, %v4203_v57  ;;  %2627 = vmatpush.bf16.msrb.mxu2 %v4202_v33  ;;  %v4142_v33 = vor.u32 %v4665_v52, %v4139_v27  ;;  %v4113_v53 = vld [vmem:[%s5178_s25] sm:$0xf]  ;;  %v4662_v57 = vld [vmem:[%s5178_s25 + $0xc] sm:$0xf0] }
 0x3b8   : > { %v2114_v4 = vadd.f32 0.5, %v2113_v59  ;;  %v4177_v59 = vld [vmem:[%s5178_s25 + $0x80] sm:$0xf]  ;;  %v4363_v52 = vld [vmem:[%s5178_s25 + $0xf8] sm:$0xf0] }
 0x3b9   : > { %v2118_v60 = vadd.f32 0.5, %v2117_v62  ;;  %v2092_v63 = vpop.f32.mrf.mxu2  ;;  %v2105_v0 = vpop.f32.mrf.mxu3  ;;  %v4678_v62 = vld [vmem:[%s5178_s25 + $0x8c] sm:$0xf0]  ;;  %2640 = vmatpush.bf16.msrb.mxu3 %v4206_v58  ;;  %v4660_v58 = vld [vmem:[%s5178_s25 + $0x4] sm:$0xf] }
 0x3ba   : > { %v4845_v1 = vpop.eup %4844  ;;  %v4179_v63 = vld [vmem:[%s5178_s25 + $0x90] sm:$0xf0]  ;;  %v4185_v0 = vld [vmem:[%s5178_s25 + $0x88] sm:$0xf] }
 0x3bb   : > { %v2124_v3 = vmul.f32 %v2118_v60, %v5738_v16  ;;  %v2125_v28 = vmul.f32 %v4845_v1, %v2114_v4  ;;  %v4225_v16 = vld [vmem:[%s5178_s25 + $0xe0] sm:$0xf]  ;;  %v4676_v4 = vld [vmem:[%s5178_s25 + $0x84] sm:$0xf]  ;;  %v4178_v60 = vor.u32 %v4678_v62, %v4177_v59  ;;  %v4679_v1 = vld [vmem:[%s5178_s25 + $0x94] sm:$0xf0]  ;;  %v4114_v59 = vor.u32 %v4662_v57, %v4113_v53 }
 0x3bc   : > { %v4847_v44 = vpop.eup %4846  ;;  %v4226_v24 = vor.u32 %v4690_v11, %v4225_v16  ;;  %v4163_v11 = vld [vmem:[%s5178_s25 + $0x70] sm:$0xf0]  ;;  %v4718_v53 = vld [vmem:[%s5178_s25 + $0xcc] sm:$0xf0]  ;;  %v4716_v57 = vld [vmem:[%s5178_s25 + $0xc4] sm:$0xf] }
 0x3bd   : > { %v5810_v5 = vadd.f32 %v2125_v28, %v2124_v3  ;;  %v2122_v8 = vmul.f32 0.5, %v4847_v44  ;;  %v4182_v3 = vor.u32 %v4676_v4, %v4179_v63  ;;  %v4186_v28 = vor.u32 %v4679_v1, %v4185_v0  ;;  %v4677_v44 = vld [vmem:[%s5178_s25 + $0x8c] sm:$0xf]  ;;  %v4115_v62 = vld [vmem:[%s5178_s25 + $0x10] sm:$0xf0] }
 0x3be   : > { %2599 = vmatpush.bf16.msrb.mxu0 %v4226_v24  ;;  %v4675_v24 = vld [vmem:[%s5178_s25 + $0x74] sm:$0xf0]  ;;  %v4121_v4 = vld [vmem:[%s5178_s25 + $0x8] sm:$0xf]  ;;  %v4118_v63 = vor.u32 %v4660_v58, %v4115_v62  ;;  %v4661_v1 = vld [vmem:[%s5178_s25 + $0xc] sm:$0xf] }
 0x3bf   : > { %4848 = vtanh.f32 %v5810_v5  ;;  %v2123_v9 = vadd.f32 0.5, %v2122_v8  ;;  %v4187_v8 = vld [vmem:[%s5178_s25 + $0x98] sm:$0xf0]  ;;  %2615 = vmatpush.bf16.msrb.mxu1 %v4182_v3  ;;  %2628 = vmatpush.bf16.msrb.mxu2 %v4186_v28  ;;  %v4170_v47 = vor.u32 %v4675_v24, %v4169_v21  ;;  %v4345_v62 = vld [vmem:[%s5178_s25 + $0xc8] sm:$0xf] }
 0x3c0   : > { %v4123_v3 = vld [vmem:[%s5178_s25 + $0x18] sm:$0xf0] }
 0x3c1   : > { %v4126_v28 = vor.u32 %v4661_v1, %v4123_v3  ;;  %v4347_v1 = vld [vmem:[%s5178_s25 + $0xd8] sm:$0xf0] }
 0x3c2   : > { %2600 = vmatpush.bf16.msrb.mxu0 %v4210_v18  ;;  %v4671_v18 = vld [vmem:[%s5178_s25 + $0x54] sm:$0xf0] }
 0x3c3   : > { %2629 = vmatpush.bf16.msrb.mxu2 %v4170_v47  ;;  %v4154_v30 = vor.u32 %v4671_v18, %v4153_v17 }
 0x3c5   : > { %v4849_v10 = vpop.eup %4848 }
 0x3c6   : > { %v2128_v29 = vmul.f32 %v4849_v10, %v2123_v9  ;;  %2601 = vmatpush.bf16.msrb.mxu0 %v4194_v51  ;;  %v4190_v9 = vor.u32 %v4677_v44, %v4187_v8  ;;  %v4161_v10 = vld [vmem:[%s5178_s25 + $0x60] sm:$0xf]  ;;  %v4667_v51 = vld [vmem:[%s5178_s25 + $0x34] sm:$0xf0] }
 0x3c7   : > { %2630 = vmatpush.bf16.msrb.mxu2 %v4154_v30  ;;  %v4138_v32 = vor.u32 %v4667_v51, %v4137_v13  ;;  %v4723_v13 = vld [vmem:[%s5178_s25 + $0xf4] sm:$0xf0] }
 0x3c8   : > { %2129 = vst [vmem:[#allocation2 + $0x8] sm:$0xff] %v2128_v29  ;;  %v2134_v31 = vpack.c.bf16 %v2128_v29, %v2128_v29  ;;  %v4674_v29 = vld [vmem:[%s5178_s25 + $0x6c] sm:$0xf0]  ;;  %2641 = vmatpush.bf16.msrb.mxu3 %v4190_v9 }
 0x3c9   : > { %v4162_v16 = vor.u32 %v4674_v29, %v4161_v10 }
 0x3ca   : > { %2335 = vmatmul.bf16.vlgmr.msra.gmra.mxu0 %v2134_v31  ;;  %2348 = vmatmul.bf16.vlgmr.msra.gmra.mxu1 %v2134_v31 }
 0x3cb   : > { %2361 = vmatmul.bf16.vlgmr.msra.gmra.mxu2 %v2134_v31  ;;  %2374 = vmatmul.bf16.vlgmr.msra.gmra.mxu3 %v2134_v31  ;;  %v4672_v31 = vld [vmem:[%s5178_s25 + $0x64] sm:$0xf] }
 0x3cc   : > { %2602 = vmatpush.bf16.msrb.mxu0 %v4178_v60  ;;  %v4166_v22 = vor.u32 %v4672_v31, %v4163_v11  ;;  %2642 = vmatpush.bf16.msrb.mxu3 %v4174_v35  ;;  %v4663_v60 = vld [vmem:[%s5178_s25 + $0x14] sm:$0xf0] }
 0x3cd   : > { %2631 = vmatpush.bf16.msrb.mxu2 %v4138_v32  ;;  %v4122_v0 = vor.u32 %v4663_v60, %v4121_v4  ;;  %v4721_v32 = vld [vmem:[%s5178_s25 + $0xec] sm:$0xf]  ;;  %v4719_v4 = vld [vmem:[%s5178_s25 + $0xd4] sm:$0xf0] }
 0x3ce   : > { %2616 = vmatpush.bf16.msrb.mxu1 %v4166_v22  ;;  %v4366_v27 = vor.u32 %v4721_v32, %v4363_v52  ;;  %v4275_v32 = vld [vmem:[%s5178_s25 + $0x50] sm:$0xf0]  ;;  %v4281_v52 = vld [vmem:[%s5178_s25 + $0x48] sm:$0xf] }
 0x3d0   : > { %2603 = vmatpush.bf16.msrb.mxu0 %v4162_v16  ;;  %2643 = vmatpush.bf16.msrb.mxu3 %v4158_v46 }
 0x3d1   : > { %2632 = vmatpush.bf16.msrb.mxu2 %v4122_v0  ;;  %v4717_v0 = vld [vmem:[%s5178_s25 + $0xcc] sm:$0xf] }
 0x3d2   : > { %2617 = vmatpush.bf16.msrb.mxu1 %v4150_v23  ;;  %v4350_v3 = vor.u32 %v4717_v0, %v4347_v1  ;;  %v4259_v0 = vld [vmem:[%s5178_s25 + $0x30] sm:$0xf0]  ;;  %v4265_v1 = vld [vmem:[%s5178_s25 + $0x28] sm:$0xf] }
 0x3d4   : > { %2604 = vmatpush.bf16.msrb.mxu0 %v4146_v54  ;;  %2644 = vmatpush.bf16.msrb.mxu3 %v4142_v33  ;;  %v4337_v33 = vld [vmem:[%s5178_s25 + $0xc0] sm:$0xf] }
 0x3d5   : > { %v4338_v58 = vor.u32 %v4718_v53, %v4337_v33 }
 0x3d6   : > { %2618 = vmatpush.bf16.msrb.mxu1 %v4134_v25  ;;  %v4362_v25 = vor.u32 %v4723_v13, %v4361_v50  ;;  %v4273_v50 = vld [vmem:[%s5178_s25 + $0x40] sm:$0xf]  ;;  %v4702_v13 = vld [vmem:[%s5178_s25 + $0x4c] sm:$0xf0] }
 0x3d8   : > { %2605 = vmatpush.bf16.msrb.mxu0 %v4130_v48  ;;  %2645 = vmatpush.bf16.msrb.mxu3 %v4126_v28  ;;  %v4355_v48 = vld [vmem:[%s5178_s25 + $0xf0] sm:$0xf0]  ;;  %v4321_v28 = vld [vmem:[%s5178_s25 + $0xa0] sm:$0xf] }
 0x3d9   : > { %v4358_v51 = vor.u32 %v4720_v37, %v4355_v48  ;;  %2897 = vmatpush.bf16.msra.mxu2 %v4362_v25  ;;  %v4705_v37 = vld [vmem:[%s5178_s25 + $0x6c] sm:$0xf]  ;;  %v4274_v25 = vor.u32 %v4702_v13, %v4273_v50 }
 0x3da   : > { %2619 = vmatpush.bf16.msrb.mxu1 %v4118_v63  ;;  %v4346_v63 = vor.u32 %v4719_v4, %v4345_v62  ;;  %v4257_v62 = vld [vmem:[%s5178_s25 + $0x20] sm:$0xf]  ;;  %v4698_v4 = vld [vmem:[%s5178_s25 + $0x2c] sm:$0xf0] }
 0x3dc   : > { %2606 = vmatpush.bf16.msrb.mxu0 %v4114_v59  ;;  %2910 = vmatpush.bf16.msra.mxu3 %v4366_v27  ;;  %v4339_v59 = vld [vmem:[%s5178_s25 + $0xd0] sm:$0xf0]  ;;  %v4703_v27 = vld [vmem:[%s5178_s25 + $0x54] sm:$0xf0] }
 0x3dd   : > { %v4342_v60 = vor.u32 %v4716_v57, %v4339_v59  ;;  %2898 = vmatpush.bf16.msra.mxu2 %v4346_v63  ;;  %v4282_v53 = vor.u32 %v4703_v27, %v4281_v52  ;;  %v4701_v57 = vld [vmem:[%s5178_s25 + $0x4c] sm:$0xf]  ;;  %v4258_v63 = vor.u32 %v4698_v4, %v4257_v62 }
 0x3de   : > { %2884 = vmatpush.bf16.msra.mxu1 %v4358_v51  ;;  %v4700_v51 = vld [vmem:[%s5178_s25 + $0x44] sm:$0xf] }
 0x3df   : > { %v4278_v33 = vor.u32 %v4700_v51, %v4275_v32 }
 0x3e0   : > { %2911 = vmatpush.bf16.msra.mxu3 %v4350_v3  ;;  %v4699_v3 = vld [vmem:[%s5178_s25 + $0x34] sm:$0xf0] }
 0x3e2   : > { %2885 = vmatpush.bf16.msra.mxu1 %v4342_v60  ;;  %v4696_v60 = vld [vmem:[%s5178_s25 + $0x24] sm:$0xf] }
 0x447   : > { %v2336_v44 = vpop.f32.mrf.mxu0  ;;  %v2349_v8 = vpop.f32.mrf.mxu1 }
 0x448   : > { %v2379_v9 = vadd.f32 %v2336_v44, %v5437_v45  ;;  %v2380_v10 = vadd.f32 %v2349_v8, %v5442_v55  ;;  %v4714_v44 = vld [vmem:[%s5178_s25 + $0xac] sm:$0xf0]  ;;  %v4712_v8 = vld [vmem:[%s5178_s25 + $0xa4] sm:$0xf] }
 0x44a   : > { %v2383_v29 = vmul.f32 0.5, %v2379_v9  ;;  %v2387_v31 = vmul.f32 0.5, %v2380_v10  ;;  %v4322_v9 = vor.u32 %v4714_v44, %v4321_v28  ;;  %v4323_v10 = vld [vmem:[%s5178_s25 + $0xb0] sm:$0xf0]  ;;  %v4262_v28 = vor.u32 %v4696_v60, %v4259_v0 }
 0x44b   : > { %v4266_v44 = vor.u32 %v4699_v3, %v4265_v1 }
 0x44c   : > { %4850 = vtanh.f32 %v2383_v29  ;;  %v4329_v29 = vld [vmem:[%s5178_s25 + $0xa8] sm:$0xf] }
 0x44d   : > { %4852 = vtanh.f32 %v2387_v31  ;;  %v4715_v31 = vld [vmem:[%s5178_s25 + $0xb4] sm:$0xf0] }
 0x44e   : > { %v2362_v16 = vpop.f32.mrf.mxu2  ;;  %v2375_v11 = vpop.f32.mrf.mxu3 }
 0x44f   : > { %v2381_v21 = vadd.f32 %v2362_v16, %v5456_v12  ;;  %v2382_v24 = vadd.f32 %v2375_v11, %v5462_v19  ;;  %v2338_v22 = vpop.f32.mrf.mxu0  ;;  %v2351_v47 = vpop.f32.mrf.mxu1  ;;  %v4326_v16 = vor.u32 %v4712_v8, %v4323_v10  ;;  %v4330_v11 = vor.u32 %v4715_v31, %v4329_v29  ;;  %v4697_v8 = vld [vmem:[%s5178_s25 + $0x2c] sm:$0xf]  ;;  %v4241_v29 = vld [vmem:[%s5178_s25] sm:$0xf]  ;;  %v4694_v31 = vld [vmem:[%s5178_s25 + $0xc] sm:$0xf0] }
 0x450   : > { %v4305_v47 = vld [vmem:[%s5178_s25 + $0x80] sm:$0xf] }
 0x451   : > { %4854 = vtanh.f32 %v2381_v21  ;;  %v2392_v49 = vmul.f32 0.5, %v2382_v24  ;;  %v4713_v21 = vld [vmem:[%s5178_s25 + $0xac] sm:$0xf]  ;;  %v4331_v24 = vld [vmem:[%s5178_s25 + $0xb8] sm:$0xf0]  ;;  %2886 = vmatpush.bf16.msra.mxu1 %v4326_v16  ;;  %2899 = vmatpush.bf16.msra.mxu2 %v4330_v11  ;;  %v4242_v11 = vor.u32 %v4694_v31, %v4241_v29 }
 0x452   : > { %v4851_v26 = vpop.eup %4850  ;;  %v4334_v22 = vor.u32 %v4713_v21, %v4331_v24  ;;  %v4692_v16 = vld [vmem:[%s5178_s25 + $0x4] sm:$0xf]  ;;  %v4243_v21 = vld [vmem:[%s5178_s25 + $0x10] sm:$0xf0]  ;;  %v4249_v24 = vld [vmem:[%s5178_s25 + $0x8] sm:$0xf] }
 0x453   : > { %v4853_v35 = vpop.eup %4852  ;;  %v2385_v38 = vmul.f32 0.5, %v4851_v26  ;;  %4856 = vtanh.f32 %v2392_v49  ;;  %v4710_v49 = vld [vmem:[%s5178_s25 + $0x8c] sm:$0xf0]  ;;  %v4708_v26 = vld [vmem:[%s5178_s25 + $0x84] sm:$0xf] }
 0x454   : > { %v2389_v45 = vmul.f32 0.5, %v4853_v35  ;;  %2912 = vmatpush.bf16.msra.mxu3 %v4334_v22  ;;  %v4306_v35 = vor.u32 %v4710_v49, %v4305_v47  ;;  %v4695_v22 = vld [vmem:[%s5178_s25 + $0x14] sm:$0xf0]  ;;  %v4246_v47 = vor.u32 %v4692_v16, %v4243_v21 }
 0x455   : > { %v2386_v55 = vadd.f32 0.5, %v2385_v38  ;;  %v4307_v38 = vld [vmem:[%s5178_s25 + $0x90] sm:$0xf0]  ;;  %v4250_v49 = vor.u32 %v4695_v22, %v4249_v24 }
 0x456   : > { %v2390_v39 = vadd.f32 0.5, %v2389_v45  ;;  %v2364_v41 = vpop.f32.mrf.mxu2  ;;  %v2377_v54 = vpop.f32.mrf.mxu3  ;;  %v4313_v45 = vld [vmem:[%s5178_s25 + $0x88] sm:$0xf] }
 0x457   : > { %v4855_v61 = vpop.eup %4854  ;;  %v4709_v54 = vld [vmem:[%s5178_s25 + $0x8c] sm:$0xf] }
 0x458   : > { %v2396_v17 = vmul.f32 %v2390_v39, %v5810_v5  ;;  %v2397_v12 = vmul.f32 %v4855_v61, %v2386_v55  ;;  %v4353_v5 = vld [vmem:[%s5178_s25 + $0xe0] sm:$0xf]  ;;  %v4711_v55 = vld [vmem:[%s5178_s25 + $0x94] sm:$0xf0]  ;;  %v4310_v39 = vor.u32 %v4708_v26, %v4307_v38  ;;  %v4315_v61 = vld [vmem:[%s5178_s25 + $0x98] sm:$0xf0] }
 0x459   : > { %v4857_v19 = vpop.eup %4856  ;;  %v4354_v42 = vor.u32 %v4722_v36, %v4353_v5  ;;  %v4314_v41 = vor.u32 %v4711_v55, %v4313_v45  ;;  %v4693_v26 = vld [vmem:[%s5178_s25 + $0xc] sm:$0xf] }
 0x45a   : > { %v5882_v18 = vadd.f32 %v2397_v12, %v2396_v17  ;;  %v2394_v23 = vmul.f32 0.5, %v4857_v19  ;;  %v4318_v17 = vor.u32 %v4709_v54, %v4315_v61  ;;  %2887 = vmatpush.bf16.msra.mxu1 %v4310_v39  ;;  %v4289_v12 = vld [vmem:[%s5178_s25 + $0x60] sm:$0xf]  ;;  %v4706_v19 = vld [vmem:[%s5178_s25 + $0x6c] sm:$0xf0] }
 0x45b   : > { %2871 = vmatpush.bf16.msra.mxu0 %v4354_v42  ;;  %2900 = vmatpush.bf16.msra.mxu2 %v4314_v41  ;;  %v4299_v42 = vld [vmem:[%s5178_s25 + $0x78] sm:$0xf0] }
 0x45c   : > { %4858 = vtanh.f32 %v5882_v18  ;;  %v2395_v30 = vadd.f32 0.5, %v2394_v23  ;;  %v4704_v23 = vld [vmem:[%s5178_s25 + $0x64] sm:$0xf]  ;;  %2913 = vmatpush.bf16.msra.mxu3 %v4318_v17  ;;  %v4302_v48 = vor.u32 %v4705_v37, %v4299_v42 }
 0x45f   : > { %2872 = vmatpush.bf16.msra.mxu0 %v4338_v58  ;;  %v4283_v58 = vld [vmem:[%s5178_s25 + $0x58] sm:$0xf0] }
 0x460   : > { %2914 = vmatpush.bf16.msra.mxu3 %v4302_v48  ;;  %v4286_v59 = vor.u32 %v4701_v57, %v4283_v58 }
 0x462   : > { %v4859_v43 = vpop.eup %4858 }
 0x463   : > { %v2400_v56 = vmul.f32 %v4859_v43, %v2395_v30  ;;  %2873 = vmatpush.bf16.msra.mxu0 %v4322_v9  ;;  %v4290_v30 = vor.u32 %v4706_v19, %v4289_v12  ;;  %v4291_v43 = vld [vmem:[%s5178_s25 + $0x70] sm:$0xf0]  ;;  %v4267_v9 = vld [vmem:[%s5178_s25 + $0x38] sm:$0xf0] }
 0x464   : > { %v4294_v5 = vor.u32 %v4704_v23, %v4291_v43  ;;  %2915 = vmatpush.bf16.msra.mxu3 %v4286_v59  ;;  %v4270_v10 = vor.u32 %v4697_v8, %v4267_v9 }
 0x465   : > { %2401 = vst [vmem:[#allocation2 + $0x20] sm:$0xff] %v2400_v56  ;;  %v2406_v46 = vpack.c.bf16 %v2400_v56, %v2400_v56  ;;  %v4297_v56 = vld [vmem:[%s5178_s25 + $0x68] sm:$0xf] }
 0x466   : > { %2888 = vmatpush.bf16.msra.mxu1 %v4294_v5 }
 0x467   : > { %2607 = vmatmul.bf16.vlgmr.msrb.gmra.mxu0 %v2406_v46  ;;  %2620 = vmatmul.bf16.vlgmr.msrb.gmra.mxu1 %v2406_v46 }
 0x468   : > { %2633 = vmatmul.bf16.vlgmr.msrb.gmra.mxu2 %v2406_v46  ;;  %2646 = vmatmul.bf16.vlgmr.msrb.gmra.mxu3 %v2406_v46  ;;  %v4707_v46 = vld [vmem:[%s5178_s25 + $0x74] sm:$0xf0] }
 0x469   : > { %2874 = vmatpush.bf16.msra.mxu0 %v4306_v35  ;;  %v4298_v36 = vor.u32 %v4707_v46, %v4297_v56  ;;  %2916 = vmatpush.bf16.msra.mxu3 %v4270_v10  ;;  %v4251_v35 = vld [vmem:[%s5178_s25 + $0x18] sm:$0xf0] }
 0x46a   : > { %2889 = vmatpush.bf16.msra.mxu1 %v4278_v33  ;;  %v4254_v38 = vor.u32 %v4693_v26, %v4251_v35 }
 0x46b   : > { %2901 = vmatpush.bf16.msra.mxu2 %v4298_v36 }
 0x46d   : > { %2875 = vmatpush.bf16.msra.mxu0 %v4290_v30  ;;  %2917 = vmatpush.bf16.msra.mxu3 %v4254_v38 }
 0x46e   : > { %2890 = vmatpush.bf16.msra.mxu1 %v4262_v28 }
 0x46f   : > { %2902 = vmatpush.bf16.msra.mxu2 %v4282_v53 }
 0x471   : > { %2876 = vmatpush.bf16.msra.mxu0 %v4274_v25 }
 0x472   : > { %2891 = vmatpush.bf16.msra.mxu1 %v4246_v47 }
 0x473   : > { %2903 = vmatpush.bf16.msra.mxu2 %v4266_v44 }
 0x475   : > { %2877 = vmatpush.bf16.msra.mxu0 %v4258_v63 }
 0x477   : > { %2904 = vmatpush.bf16.msra.mxu2 %v4250_v49 }
 0x479   : > { %2878 = vmatpush.bf16.msra.mxu0 %v4242_v11 }
 0x4e4   : > { %v2608_v45 = vpop.f32.mrf.mxu0  ;;  %v2621_v55 = vpop.f32.mrf.mxu1 }
 0x4e5   : > { %v2651_v39 = vadd.f32 %v2608_v45, %v5465_v20  ;;  %v2652_v41 = vadd.f32 %v2621_v55, %v5470_v40 }
 0x4e7   : > { %v2655_v54 = vmul.f32 0.5, %v2651_v39  ;;  %v2659_v61 = vmul.f32 0.5, %v2652_v41 }
 0x4e9   : > { %4860 = vtanh.f32 %v2655_v54 }
 0x4ea   : > { %4862 = vtanh.f32 %v2659_v61 }
 0x4eb   : > { %v2634_v17 = vpop.f32.mrf.mxu2  ;;  %v2647_v12 = vpop.f32.mrf.mxu3 }
 0x4ec   : > { %v2653_v19 = vadd.f32 %v2634_v17, %v5484_v6  ;;  %v2654_v23 = vadd.f32 %v2647_v12, %v5490_v14  ;;  %v2610_v30 = vpop.f32.mrf.mxu0  ;;  %v2623_v43 = vpop.f32.mrf.mxu1 }
 0x4ee   : > { %4864 = vtanh.f32 %v2653_v19  ;;  %v2664_v56 = vmul.f32 0.5, %v2654_v23 }
 0x4ef   : > { %v4861_v46 = vpop.eup %4860 }
 0x4f0   : > { %v4863_v5 = vpop.eup %4862  ;;  %v2657_v36 = vmul.f32 0.5, %v4861_v46  ;;  %4866 = vtanh.f32 %v2664_v56 }
 0x4f1   : > { %v2661_v20 = vmul.f32 0.5, %v4863_v5 }
 0x4f2   : > { %v2658_v40 = vadd.f32 0.5, %v2657_v36 }
 0x4f3   : > { %v2662_v37 = vadd.f32 0.5, %v2661_v20  ;;  %v2636_v42 = vpop.f32.mrf.mxu2  ;;  %v2649_v48 = vpop.f32.mrf.mxu3 }
 0x4f4   : > { %v4865_v50 = vpop.eup %4864 }
 0x4f5   : > { %v2668_v13 = vmul.f32 %v2662_v37, %v5882_v18  ;;  %v2669_v51 = vmul.f32 %v4865_v50, %v2658_v40 }
 0x4f6   : > { %v4867_v6 = vpop.eup %4866 }
 0x4f7   : > { %v2670_v25 = vadd.f32 %v2669_v51, %v2668_v13  ;;  %v2666_v14 = vmul.f32 0.5, %v4867_v6 }
 0x4f9   : > { %4868 = vtanh.f32 %v2670_v25  ;;  %v2667_v32 = vadd.f32 0.5, %v2666_v14 }
 0x4ff   : > { %v4869_v52 = vpop.eup %4868 }
 0x500   : > { %v2672_v27 = vmul.f32 %v4869_v52, %v2667_v32 }
 0x502   : > { %2673 = vst [vmem:[#allocation2 + $0x28] sm:$0xff] %v2672_v27  ;;  %v2678_v33 = vpack.c.bf16 %v2672_v27, %v2672_v27 }
 0x504   : > { %2879 = vmatmul.bf16.vlgmr.msra.gmra.mxu0 %v2678_v33  ;;  %2892 = vmatmul.bf16.vlgmr.msra.gmra.mxu1 %v2678_v33 }
 0x505   : > { %2905 = vmatmul.bf16.vlgmr.msra.gmra.mxu2 %v2678_v33  ;;  %2918 = vmatmul.bf16.vlgmr.msra.gmra.mxu3 %v2678_v33 }
 0x581   : > { %v2880_v53 = vpop.f32.mrf.mxu0  ;;  %v2893_v57 = vpop.f32.mrf.mxu1 }
 0x582   : > { %v2923_v58 = vadd.f32 %v2880_v53, %v5493_v15  ;;  %v2924_v18 = vadd.f32 %v2893_v57, %v5498_v34 }
 0x584   : > { %v2927_v59 = vmul.f32 0.5, %v2923_v58  ;;  %v2931_v62 = vmul.f32 0.5, %v2924_v18 }
 0x586   : > { %4870 = vtanh.f32 %v2927_v59 }
 0x587   : > { %4872 = vtanh.f32 %v2931_v62 }
 0x588   : > { %v2906_v4 = vpop.f32.mrf.mxu2  ;;  %v2919_v60 = vpop.f32.mrf.mxu3 }
 0x589   : > { %v2925_v63 = vadd.f32 %v2906_v4, %v5513_v2  ;;  %v2926_v0 = vadd.f32 %v2919_v60, %v5516_v7  ;;  %v2882_v1 = vpop.f32.mrf.mxu0  ;;  %v2895_v3 = vpop.f32.mrf.mxu1 }
 0x58b   : > { %4874 = vtanh.f32 %v2925_v63  ;;  %v2936_v28 = vmul.f32 0.5, %v2926_v0 }
 0x58c   : > { %v4871_v44 = vpop.eup %4870 }
 0x58d   : > { %v4873_v8 = vpop.eup %4872  ;;  %v2929_v9 = vmul.f32 0.5, %v4871_v44  ;;  %4876 = vtanh.f32 %v2936_v28 }
 0x58e   : > { %v2933_v15 = vmul.f32 0.5, %v4873_v8 }
 0x58f   : > { %v2930_v34 = vadd.f32 0.5, %v2929_v9 }
 0x590   : > { %v2934_v10 = vadd.f32 0.5, %v2933_v15  ;;  %v2908_v29 = vpop.f32.mrf.mxu2  ;;  %v2921_v31 = vpop.f32.mrf.mxu3 }
 0x591   : > { %v4875_v16 = vpop.eup %4874 }
 0x592   : > { %v2940_v11 = vmul.f32 %v2934_v10, %v2670_v25  ;;  %v2941_v21 = vmul.f32 %v4875_v16, %v2930_v34 }
 0x593   : > { %v4877_v24 = vpop.eup %4876 }
 0x594   : > { %v2942_v2 = vadd.f32 %v2941_v21, %v2940_v11  ;;  %v2938_v7 = vmul.f32 0.5, %v4877_v24 }
 0x596   : > { %4878 = vtanh.f32 %v2942_v2  ;;  %v2939_v22 = vadd.f32 0.5, %v2938_v7 }
 0x59b   : > { %2949 = sbr.rel (%p4367_p1) target bundleno = 1738 (0x6ca), region = 72 }
 0x59c   : > { %v4879_v47 = vpop.eup %4878 }
 0x59d   : > { %v2944_v49 = vmul.f32 %v4879_v47, %v2939_v22 }
 0x59f   : > { %2945 = vst [vmem:[#allocation2 + $0x38] sm:$0xff] %v2944_v49 }
 0x5a0   : > { %v4731_v26 = vld [vmem:[#allocation8 + $0x38] sm:$0xff]  ;;  %v4730_v35 = vld [vmem:[#allocation8 + $0x30] sm:$0xff]  ;;  %v4729_v55 = vld [vmem:[#allocation8 + $0x28] sm:$0xff]  ;;  %v2950_v43 = vpack.c.bf16 %v2944_v49, %v2944_v49 }
 0x5a1   : > { %3019 = vmatpush.bf16.msra.mxu0 %v4731_v26  ;;  %v4739_v38 = vld [vmem:[%s6011_s6 + $0x38] sm:$0xff]  ;;  %v4738_v45 = vld [vmem:[%s6011_s6 + $0x30] sm:$0xff]  ;;  %v4737_v39 = vld [vmem:[%s6011_s6 + $0x28] sm:$0xff] }
 0x5a2   : > { %3102 = vmatpush.bf16.msra.mxu1 %v4739_v38  ;;  %v4728_v41 = vld [vmem:[#allocation8 + $0x20] sm:$0xff]  ;;  %v4727_v61 = vld [vmem:[#allocation8 + $0x18] sm:$0xff]  ;;  %v4726_v12 = vld [vmem:[#allocation8 + $0x10] sm:$0xff] }
 0x5a3   : > { %v4736_v54 = vld [vmem:[%s6011_s6 + $0x20] sm:$0xff]  ;;  %v4735_v17 = vld [vmem:[%s6011_s6 + $0x18] sm:$0xff]  ;;  %v4734_v19 = vld [vmem:[%s6011_s6 + $0x10] sm:$0xff] }
 0x5a4   : > { %v4725_v23 = vld [vmem:[#allocation8 + $0x8] sm:$0xff]  ;;  %v4724_v30 = vld [vmem:[#allocation8] sm:$0xff] }
 0x5a5   : > { %3020 = vmatpush.bf16.msra.mxu0 %v4730_v35  ;;  %v4733_v56 = vld [vmem:[%s6011_s6 + $0x8] sm:$0xff]  ;;  %v4732_v46 = vld [vmem:[%s6011_s6] sm:$0xff] }
 0x5a6   : > { %3103 = vmatpush.bf16.msra.mxu1 %v4738_v45  ;;  %v4880_v5 = vld [vmem:[%s6010_s5] ss:$0 sm:$0xff] }
 0x5a7   : > { %v4881_v48 = vld [vmem:[%s6012_s7] ss:$0 sm:$0xff] }
 0x5a9   : > { %3021 = vmatpush.bf16.msra.mxu0 %v4729_v55 }
 0x5aa   : > { %3104 = vmatpush.bf16.msra.mxu1 %v4737_v39 }
 0x5ad   : > { %3022 = vmatpush.bf16.msra.mxu0 %v4728_v41 }
 0x5ae   : > { %3105 = vmatpush.bf16.msra.mxu1 %v4736_v54 }
 0x5b1   : > { %3023 = vmatpush.bf16.msra.mxu0 %v4727_v61 }
 0x5b2   : > { %3106 = vmatpush.bf16.msra.mxu1 %v4735_v17 }
 0x5b5   : > { %3024 = vmatpush.bf16.msra.mxu0 %v4726_v12 }
 0x5b6   : > { %3107 = vmatpush.bf16.msra.mxu1 %v4734_v19 }
 0x5b9   : > { %3025 = vmatpush.bf16.msra.mxu0 %v4725_v23 }
 0x5ba   : > { %3108 = vmatpush.bf16.msra.mxu1 %v4733_v56 }
 0x5bd   : > { %3026 = vmatpush.bf16.msra.mxu0 %v4724_v30 }
 0x5be   : > { %3109 = vmatpush.bf16.msra.mxu1 %v4732_v46 }
 0x5c0   : > { %3027 = vmatmul.bf16.vlgmr.msra.gmra.mxu0 %v2950_v43 }
 0x63d   : > { %v3028_v36 = vpop.f32.mrf.mxu0 }
 0x63e   : > { %v3029_v20 = vadd.f32 %v4880_v5, %v3028_v36 }
 0x640   : > { %v3032_v40 = vmax.f32 %v3029_v20, 0.0 }
 0x642   : > { %v3033_v37 = vpack.c.bf16 %v3032_v40, %v3032_v40 }
 0x644   : > { %3110 = vmatmul.bf16.vlgmr.msra.gmra.mxu1 %v3033_v37 }
 0x645   : > { %v3030_v42 = vpop.f32.mrf.mxu0 }
 0x6c1   : > { %v3111_v50 = vpop.f32.mrf.mxu1 }
 0x6c2   : > { %v3112_v13 = vadd.f32 %v4881_v48, %v3111_v50 }
 0x6c4   : > { %3115 = vst [vmem:[%s6013_s8] sm:$0xff] %v3112_v13 }
 0x6c9   : > { %v3113_v51 = vpop.f32.mrf.mxu1 }
 0x6ca PF: > { %s6026_s26 = sld [smem:[#allocation12_spill]]  ;;  %p21_p4 = scmp.ge.s32.totalorder %s5111_s17, 5  }
 0x6cb   : > { %s6027_s29 = sld [smem:[#allocation13_spill]]  ;;  %s6028_s27 = smov %s5006_s28 }
 0x6cc   : > { %s6030_s30 = smov %s5111_s17  ;;  %23 = sbr.rel (!%p21_p4) target bundleno = 8 (0x8), region = 116 }
 0x6d0   : > { %s6029_s28 = smov %s6026_s26 }
 0x6d1   :  { %3127 = vsyncpa [#allocation5], 1 }
 0x6d2   :  { %3129 = vsyncpa [#allocation5 + $0x1], 1 }
 0x6d3   :  { %3130 = vsyncpa [#allocation7], 1 }
 0x6d4   :  { %3132 = vsyncpa [#allocation7 + $0x1], 1 }

</bundles_post_ra>
